<compile_context>
chip_gen: v6e
topology: v6e:2x2x1
jax: 0.10.0
libtpu: 0.0.40
codegen_flags: <defaults>
</compile_context>

<pallas_src>
import functools

import jax
import jax.numpy as jnp
from jax import lax
from jax.experimental import pallas as pl
from jax.experimental.pallas import tpu as pltpu


# ---------------------------------------------------------------------------
# Generation-dependent VMEM budget (review items 7-9)
# ---------------------------------------------------------------------------
def _vmem_limit_bytes():
    try:
        cap = int(pltpu.get_tpu_info().vmem_capacity_bytes)
    except Exception:
        cap = 64 << 20  # conservative default (v7x-sized)
    # leave headroom for the compiler / second core; cap at 100 MiB
    return max(32 << 20, min((cap * 3) // 4, 100 << 20))


_VMEM_LIMIT = _vmem_limit_bytes()
_SLACK = 6 << 20


# ---------------------------------------------------------------------------
# Kernel 1: "resident" 3x3 conv — whole image per block, kh folded in-body.
#   A   : [B, (H+2)*W, 3*Cin]   (width-im2col slab, bf16; only used at low res
#                                where its absolute size is small)
#   W   : [3, 3*Cin, TN]        (resident across the whole image for a given j)
#   out : [B, H*W, TN]
# ---------------------------------------------------------------------------
def _conv_resident_kernel(a_ref, w_ref, ss_ref, o_ref, *, hw, wcols, relu):
    acc = jnp.dot(a_ref[0, 0:hw, :], w_ref[0],
                  preferred_element_type=jnp.float32)
    acc = acc + jnp.dot(a_ref[0, wcols:wcols + hw, :], w_ref[1],
                        preferred_element_type=jnp.float32)
    acc = acc + jnp.dot(a_ref[0, 2 * wcols:2 * wcols + hw, :], w_ref[2],
                        preferred_element_type=jnp.float32)
    y = acc * ss_ref[0:1, :] + ss_ref[1:2, :]   # folded conv-bias + eval BN
    if relu:
        y = jnp.maximum(y, 0.0)
    o_ref[0] = y.astype(o_ref.dtype)


def conv3x3_resident(x, w4, ss, relu, out_dtype):
    """3x3 conv, padding=1.  x:[B,H,W,Cin] NHWC; w4:[3,3,Cin,Cout]; ss:[2,Cout]."""
    B, H, W, Cin = x.shape
    Cout = w4.shape[-1]
    TN = Cout if Cout <= 512 else 512
    HW = H * W

    xp = jnp.pad(x.astype(jnp.bfloat16), ((0, 0), (1, 1), (1, 1), (0, 0)))
    xw = jnp.concatenate([xp[:, :, kw:kw + W, :] for kw in range(3)], axis=-1)
    a = xw.reshape(B, (H + 2) * W, 3 * Cin)
    wt = w4.astype(jnp.bfloat16).reshape(3, 3 * Cin, Cout)   # (kh, kw*Cin+ci, co)
    ssf = ss.astype(jnp.float32)

    out = pl.pallas_call(
        functools.partial(_conv_resident_kernel, hw=HW, wcols=W, relu=relu),
        out_shape=jax.ShapeDtypeStruct((B, HW, Cout), out_dtype),
        grid=(B, Cout // TN),
        in_specs=[
            pl.BlockSpec((1, (H + 2) * W, 3 * Cin), lambda b, j: (b, 0, 0)),
            pl.BlockSpec((3, 3 * Cin, TN), lambda b, j: (0, 0, j)),
            pl.BlockSpec((2, TN), lambda b, j: (0, j)),
        ],
        out_specs=pl.BlockSpec((1, HW, TN), lambda b, j: (b, 0, j)),
        compiler_params=pltpu.CompilerParams(
            dimension_semantics=("parallel", "parallel"),
            vmem_limit_bytes=_VMEM_LIMIT),
    )(a, wt, ssf)
    return out.reshape(B, H, W, Cout)


# ---------------------------------------------------------------------------
# Kernel 2: "rowtile" 3x3 conv — multi-row tiles with a 2-row halo window,
# all 9 taps in-kernel (no width-im2col HBM slab; ~ (tr+2)/tr HBM overhead).
#   A   : [B*n_t, tr+2, W+2, Cin]   (overlapping row windows, bf16)
#   W   : [9, Cin, TN]              (resident across spatial tiles for a j)
#   out : [B*n_t, tr*W, TN]
# ---------------------------------------------------------------------------
def _conv_rowtile_kernel(a_ref, w_ref, ss_ref, o_ref, *, tr, width, relu):
    cin = a_ref.shape[-1]
    tn = o_ref.shape[-1]
    m = tr * width
    acc = jnp.zeros((m, tn), jnp.float32)
    for kh in range(3):
        for kw in range(3):
            tap = a_ref[0, kh:kh + tr, kw:kw + width, :].reshape(m, cin)
            acc = acc + jnp.dot(tap, w_ref[kh * 3 + kw],
                                preferred_element_type=jnp.float32)
    y = acc * ss_ref[0:1, :] + ss_ref[1:2, :]
    if relu:
        y = jnp.maximum(y, 0.0)
    o_ref[0] = y.astype(o_ref.dtype)


def conv3x3_rowtile(x, w4, ss, relu, out_dtype, tr):
    B, H, W, Cin = x.shape
    Cout = w4.shape[-1]
    assert H % tr == 0 and W % 8 == 0
    TN = Cout if Cout <= 512 else 512
    n_t = H // tr

    xp = jnp.pad(x.astype(jnp.bfloat16), ((0, 0), (1, 1), (1, 1), (0, 0)))
    # overlapping (tr+2)-row windows; small halo overhead, no 3x im2col slab.
    win = jnp.stack([xp[:, t * tr:t * tr + tr + 2] for t in range(n_t)], axis=1)
    win = win.reshape(B * n_t, tr + 2, W + 2, Cin)
    wt = w4.astype(jnp.bfloat16).reshape(9, Cin, Cout)        # (kh*3+kw, ci, co)
    ssf = ss.astype(jnp.float32)

    out = pl.pallas_call(
        functools.partial(_conv_rowtile_kernel, tr=tr, width=W, relu=relu),
        out_shape=jax.ShapeDtypeStruct((B * n_t, tr * W, Cout), out_dtype),
        grid=(B * n_t, Cout // TN),
        in_specs=[
            pl.BlockSpec((1, tr + 2, W + 2, Cin), lambda bt, j: (bt, 0, 0, 0)),
            pl.BlockSpec((9, Cin, TN), lambda bt, j: (0, 0, j)),
            pl.BlockSpec((2, TN), lambda bt, j: (0, j)),
        ],
        out_specs=pl.BlockSpec((1, tr * W, TN), lambda bt, j: (bt, 0, j)),
        compiler_params=pltpu.CompilerParams(
            dimension_semantics=("parallel", "parallel"),
            vmem_limit_bytes=_VMEM_LIMIT),
    )(win, wt, ssf)
    return out.reshape(B, n_t, tr, W, Cout).reshape(B, H, W, Cout)


# ---------------------------------------------------------------------------
# XLA fallback (Cin<16 first conv, ragged spatial sizes) + dispatcher
# ---------------------------------------------------------------------------
def conv3x3_xla(x, w4, ss, relu, out_dtype):
    y = lax.conv_general_dilated(
        x.astype(jnp.bfloat16), w4.astype(jnp.bfloat16),
        window_strides=(1, 1), padding=((1, 1), (1, 1)),
        dimension_numbers=('NHWC', 'HWIO', 'NHWC'),
        preferred_element_type=jnp.float32)
    y = y * ss[0].astype(jnp.float32) + ss[1].astype(jnp.float32)
    if relu:
        y = jnp.maximum(y, 0.0)
    return y.astype(out_dtype)


def _pick_tr(H, W, Cin, TN, limit):
    """Largest row-tile (divisor of H, capped) whose VMEM footprint fits."""
    for tr in range(min(H, 256), 0, -1):
        if H % tr:
            continue
        m = tr * W
        if m > 32768:
            continue
        need = (2 * (tr + 2) * (W + 2) * Cin * 2      # A window (double-buffered)
                + 2 * 9 * Cin * TN * 2                # weights
                + 2 * m * TN * 2                      # output block
                + 2 * m * TN * 4                      # f32 accumulator chain
                + m * Cin * 2                         # per-tap LHS value
                + _SLACK)
        if need <= limit:
            return tr
    return None


def conv_bn_relu(x, p, relu=True, out_dtype=jnp.bfloat16):
    """Conv3x3 + folded eval-BN (+ ReLU), dispatching to the best Pallas path."""
    B, H, W, Cin = x.shape
    Cout = p['w'].shape[-1]
    if Cin < 16 or W % 8 != 0:
        return conv3x3_xla(x, p['w'], p['ss'], relu, out_dtype)

    TN = Cout if Cout <= 512 else 512
    HW = H * W
    resident_need = (2 * (H + 2) * W * 3 * Cin * 2    # A slab block
                     + 2 * 3 * 3 * Cin * TN * 2       # weights
                     + 2 * HW * TN * 2                # output block
                     + 2 * HW * TN * 4                # f32 accumulator chain
                     + 2 * HW * 3 * Cin * 2           # per-tap LHS values
                     + _SLACK)
    if resident_need <= _VMEM_LIMIT:
        return conv3x3_resident(x, p['w'], p['ss'], relu, out_dtype)

    tr = _pick_tr(H, W, Cin, TN, _VMEM_LIMIT)
    if tr is not None:
        return conv3x3_rowtile(x, p['w'], p['ss'], relu, out_dtype, tr)
    return conv3x3_xla(x, p['w'], p['ss'], relu, out_dtype)


# ---------------------------------------------------------------------------
# Pool / upsample / low-channel heads (JAX glue)
# ---------------------------------------------------------------------------
def maxpool(x, k):
    B, H, W, C = x.shape
    return x.reshape(B, H // k, k, W // k, k, C).max(axis=(2, 4))


def upsample(x, s):
    # nn.Upsample(mode='bilinear', align_corners=False) == half-pixel bilinear
    B, H, W, C = x.shape
    return jax.image.resize(x, (B, H * s, W * s, C), method='bilinear',
                            antialias=False)


def head_conv3x3(x, w4, b):
    # Cout == 1: lane-sparse, bandwidth-bound -> bf16 XLA conv, f32 accumulation.
    y = lax.conv_general_dilated(
        x.astype(jnp.bfloat16), w4.astype(jnp.bfloat16),
        window_strides=(1, 1), padding=((1, 1), (1, 1)),
        dimension_numbers=('NHWC', 'HWIO', 'NHWC'),
        preferred_element_type=jnp.float32)
    return y + b.astype(jnp.float32)


# ---------------------------------------------------------------------------
# Deterministic parameter construction (synthetic kaiming-style init)
# ---------------------------------------------------------------------------
class ParamGen:
    def __init__(self, key):
        self.key = key
        self.i = 0

    def _next(self):
        self.i += 1
        return jax.random.fold_in(self.key, self.i)

    def conv_bn(self, cin, cout, ksize=3):
        fan_in = cin * ksize * ksize
        std = (2.0 / fan_in) ** 0.5
        w = std * jax.random.normal(self._next(), (ksize, ksize, cin, cout),
                                    jnp.float32)
        b = jnp.zeros((cout,), jnp.float32)
        gamma = 1.0 + 0.02 * jax.random.normal(self._next(), (cout,), jnp.float32)
        beta = jnp.zeros((cout,), jnp.float32)
        # NOTE: eval-mode BN with running_mean=0, running_var=1 (synthetic init);
        # real checkpoints must fold their actual running stats into `ss`.
        scale = gamma / jnp.sqrt(1.0 + 1e-5)
        shift = beta + b * scale                 # conv bias folded into shift
        return dict(w=w, ss=jnp.stack([scale, shift], axis=0))

    def conv_plain(self, cin, cout, ksize=3):
        fan_in = cin * ksize * ksize
        std = (2.0 / fan_in) ** 0.5
        w = std * jax.random.normal(self._next(), (ksize, ksize, cin, cout),
                                    jnp.float32)
        b = jnp.zeros((cout,), jnp.float32)
        return dict(w=w, b=b)


def init_params(key, in_channels=3, n_classes=1):
    g = ParamGen(key)
    P = {}
    filters = [64, 128, 256, 512, 1024]
    chans = [in_channels] + filters
    for i in range(1, 6):                         # encoder: unetConv2 = 2x(conv+BN+ReLU)
        P[f'enc{i}_1'] = g.conv_bn(chans[i - 1], chans[i])
        P[f'enc{i}_2'] = g.conv_bn(chans[i], chans[i])
    cat, up = filters[0], filters[0] * 5          # CatChannels=64, UpChannels=320
    # stage 4d
    P['h1_PT_hd4'] = g.conv_bn(64, cat);   P['h2_PT_hd4'] = g.conv_bn(128, cat)
    P['h3_PT_hd4'] = g.conv_bn(256, cat);  P['h4_Cat_hd4'] = g.conv_bn(512, cat)
    P['hd5_UT_hd4'] = g.conv_bn(1024, cat); P['conv4d_1'] = g.conv_bn(up, up)
    # stage 3d
    P['h1_PT_hd3'] = g.conv_bn(64, cat);   P['h2_PT_hd3'] = g.conv_bn(128, cat)
    P['h3_Cat_hd3'] = g.conv_bn(256, cat); P['hd4_UT_hd3'] = g.conv_bn(up, cat)
    P['hd5_UT_hd3'] = g.conv_bn(1024, cat); P['conv3d_1'] = g.conv_bn(up, up)
    # stage 2d
    P['h1_PT_hd2'] = g.conv_bn(64, cat);   P['h2_Cat_hd2'] = g.conv_bn(128, cat)
    P['hd3_UT_hd2'] = g.conv_bn(up, cat);  P['hd4_UT_hd2'] = g.conv_bn(up, cat)
    P['hd5_UT_hd2'] = g.conv_bn(1024, cat); P['conv2d_1'] = g.conv_bn(up, up)
    # stage 1d
    P['h1_Cat_hd1'] = g.conv_bn(64, cat);  P['hd2_UT_hd1'] = g.conv_bn(up, cat)
    P['hd3_UT_hd1'] = g.conv_bn(up, cat);  P['hd4_UT_hd1'] = g.conv_bn(up, cat)
    P['hd5_UT_hd1'] = g.conv_bn(1024, cat); P['conv1d_1'] = g.conv_bn(up, up)
    # heads (no BN)
    for i in range(1, 5):
        P[f'outconv{i}'] = g.conv_plain(up, n_classes)
    P['outconv5'] = g.conv_plain(1024, n_classes)
    P['cls'] = g.conv_plain(1024, 2, ksize=1)
    return P


# ---------------------------------------------------------------------------
# Full forward pass (matches UNet_3Plus_DeepSup_CGM.forward, eval mode)
# ---------------------------------------------------------------------------
def forward(params, x_nchw):
    P = params
    x = jnp.transpose(x_nchw, (0, 2, 3, 1)).astype(jnp.bfloat16)   # NCHW -> NHWC

    cbr = lambda t, name: conv_bn_relu(t, P[name], relu=True)

    # ----- encoder -----
    h1 = cbr(cbr(x, 'enc1_1'), 'enc1_2')
    h2 = cbr(cbr(maxpool(h1, 2), 'enc2_1'), 'enc2_2')
    h3 = cbr(cbr(maxpool(h2, 2), 'enc3_1'), 'enc3_2')
    h4 = cbr(cbr(maxpool(h3, 2), 'enc4_1'), 'enc4_2')
    hd5 = cbr(cbr(maxpool(h4, 2), 'enc5_1'), 'enc5_2')

    # ----- classification-guided module (Dropout = identity in eval) -----
    # Cout=2 -> bf16 einsum with f32 accumulation (no fp32 copy of hd5).
    cls_w = P['cls']['w'][0, 0].astype(jnp.bfloat16)               # [1024, 2]
    cls_logits = jnp.einsum('bhwc,co->bhwo', hd5, cls_w,
                            preferred_element_type=jnp.float32) + P['cls']['b']
    cls_prob = jax.nn.sigmoid(cls_logits.max(axis=(1, 2)))         # AdaptiveMaxPool2d(1)
    cls_max = jnp.argmax(cls_prob, axis=1).astype(jnp.float32)[:, None]   # [B,1]

    # ----- stage 4d -----
    hd4 = cbr(jnp.concatenate([
        cbr(maxpool(h1, 8), 'h1_PT_hd4'),
        cbr(maxpool(h2, 4), 'h2_PT_hd4'),
        cbr(maxpool(h3, 2), 'h3_PT_hd4'),
        cbr(h4, 'h4_Cat_hd4'),
        cbr(upsample(hd5, 2), 'hd5_UT_hd4')], axis=-1), 'conv4d_1')
    # ----- stage 3d -----
    hd3 = cbr(jnp.concatenate([
        cbr(maxpool(h1, 4), 'h1_PT_hd3'),
        cbr(maxpool(h2, 2), 'h2_PT_hd3'),
        cbr(h3, 'h3_Cat_hd3'),
        cbr(upsample(hd4, 2), 'hd4_UT_hd3'),
        cbr(upsample(hd5, 4), 'hd5_UT_hd3')], axis=-1), 'conv3d_1')
    # ----- stage 2d -----
    hd2 = cbr(jnp.concatenate([
        cbr(maxpool(h1, 2), 'h1_PT_hd2'),
        cbr(h2, 'h2_Cat_hd2'),
        cbr(upsample(hd3, 2), 'hd3_UT_hd2'),
        cbr(upsample(hd4, 4), 'hd4_UT_hd2'),
        cbr(upsample(hd5, 8), 'hd5_UT_hd2')], axis=-1), 'conv2d_1')
    # ----- stage 1d -----
    hd1 = cbr(jnp.concatenate([
        cbr(h1, 'h1_Cat_hd1'),
        cbr(upsample(hd2, 2), 'hd2_UT_hd1'),
        cbr(upsample(hd3, 4), 'hd3_UT_hd1'),
        cbr(upsample(hd4, 8), 'hd4_UT_hd1'),
        cbr(upsample(hd5, 16), 'hd5_UT_hd1')], axis=-1), 'conv1d_1')

    # ----- deep supervision heads (Cout=1, bf16 conv w/ f32 accumulation) -----
    d5 = upsample(head_conv3x3(hd5, P['outconv5']['w'], P['outconv5']['b']), 16)
    d4 = upsample(head_conv3x3(hd4, P['outconv4']['w'], P['outconv4']['b']), 8)
    d3 = upsample(head_conv3x3(hd3, P['outconv3']['w'], P['outconv3']['b']), 4)
    d2 = upsample(head_conv3x3(hd2, P['outconv2']['w'], P['outconv2']['b']), 2)
    d1 = head_conv3x3(hd1, P['outconv1']['w'], P['outconv1']['b'])

    def dot_product(d):                           # einsum('ijk,ij->ijk'); n_classes==1
        return d * cls_max[:, None, None, :]

    outs = tuple(jax.nn.sigmoid(dot_product(d)) for d in (d1, d2, d3, d4, d5))
    # back to NCHW to match the PyTorch return convention
    return tuple(jnp.transpose(o, (0, 3, 1, 2)) for o in outs)


# ---------------------------------------------------------------------------
if __name__ == "__main__":
    key = jax.random.PRNGKey(0)

    # --- standalone numerical checks of the two Pallas conv paths ---
    ck = jax.random.fold_in(key, 99)
    cx = jax.random.normal(jax.random.fold_in(ck, 0), (1, 32, 32, 64), jnp.float32)
    cw = 0.05 * jax.random.normal(jax.random.fold_in(ck, 1), (3, 3, 64, 64),
                                  jnp.float32)
    css = jnp.stack([jnp.ones((64,), jnp.float32),
                     0.1 * jax.random.normal(jax.random.fold_in(ck, 2), (64,),
                                             jnp.float32)], axis=0)
    ref = jax.block_until_ready(conv3x3_xla(cx, cw, css, True, jnp.float32))
    got_res = jax.block_until_ready(conv3x3_resident(cx, cw, css, True, jnp.float32))
    got_row = jax.block_until_ready(conv3x3_rowtile(cx, cw, css, True, jnp.float32, tr=8))
    assert bool(jnp.allclose(ref, got_res, atol=3e-2, rtol=3e-2)), \
        float(jnp.max(jnp.abs(ref - got_res)))
    assert bool(jnp.allclose(ref, got_row, atol=3e-2, rtol=3e-2)), \
        float(jnp.max(jnp.abs(ref - got_row)))

    # --- full forward pass ---
    params = init_params(jax.random.fold_in(key, 1))
    # input spatial must be divisible by 16 (4 levels of 2x pooling)
    x = jax.random.normal(jax.random.fold_in(key, 2), (2, 3, 16, 16), jnp.float32)

    fwd = jax.jit(forward)
    d1, d2, d3, d4, d5 = jax.block_until_ready(fwd(params, x))

    for o in (d1, d2, d3, d4, d5):
        assert o.shape == (2, 1, 16, 16), o.shape
        assert bool(jnp.all(jnp.isfinite(o)))
    print("KERNEL_OK")
</pallas_src>

<mosaic_0001>
module attributes {stable_mosaic.version = 11 : i64} {
  func.func @_conv_resident_kernel(%arg0: i32, %arg1: i32, %arg2: memref<1x1088x192xbf16, #tpu.memory_space<vmem>>, %arg3: memref<3x192x64xbf16, #tpu.memory_space<vmem>>, %arg4: memref<2x64xf32, #tpu.memory_space<vmem>>, %arg5: memref<1x1024x64xf32, #tpu.memory_space<vmem>>) attributes {dimension_semantics = [#tpu.dimension_semantics<parallel>, #tpu.dimension_semantics<parallel>], iteration_bounds = array<i64: 1, 1>, scalar_prefetch = 0 : i64, scratch_operands = 0 : i64, tpu.core_type = #tpu.core_type<tc>, window_params = [{transform_indices = @transform_0, window_bounds = array<i64: 1, 1088, 192>}, {transform_indices = @transform_1, window_bounds = array<i64: 3, 192, 64>}, {transform_indices = @transform_2, window_bounds = array<i64: 2, 64>}, {transform_indices = @transform_3, window_bounds = array<i64: 1, 1024, 64>}]} {
    %c0 = arith.constant 0 : index
    %c0_0 = arith.constant 0 : index
    %c0_1 = arith.constant 0 : index
    %0 = vector.load %arg2[%c0, %c0_0, %c0_1] : memref<1x1088x192xbf16, #tpu.memory_space<vmem>>, vector<1x1024x192xbf16>
    %1 = vector.shape_cast %0 : vector<1x1024x192xbf16> to vector<1024x192xbf16>
    %c0_2 = arith.constant 0 : index
    %c0_3 = arith.constant 0 : index
    %c0_4 = arith.constant 0 : index
    %2 = vector.load %arg3[%c0_2, %c0_3, %c0_4] : memref<3x192x64xbf16, #tpu.memory_space<vmem>>, vector<1x192x64xbf16>
    %3 = vector.shape_cast %2 : vector<1x192x64xbf16> to vector<192x64xbf16>
    %cst = arith.constant dense<0.000000e+00> : vector<1024x64xf32>
    %4 = tpu.matmul %1, %3, %cst {dimension_numbers = #tpu.dot_dimension_numbers<[1], [0], [0], [1], [0, 0, 1, 1], [], []>} : vector<1024x192xbf16>, vector<192x64xbf16>, vector<1024x64xf32> -> vector<1024x64xf32>
    %c0_5 = arith.constant 0 : index
    %c32 = arith.constant 32 : index
    %c0_6 = arith.constant 0 : index
    %5 = vector.load %arg2[%c0_5, %c32, %c0_6] : memref<1x1088x192xbf16, #tpu.memory_space<vmem>>, vector<1x1024x192xbf16>
    %6 = vector.shape_cast %5 : vector<1x1024x192xbf16> to vector<1024x192xbf16>
    %c1 = arith.constant 1 : index
    %c0_7 = arith.constant 0 : index
    %c0_8 = arith.constant 0 : index
    %7 = vector.load %arg3[%c1, %c0_7, %c0_8] : memref<3x192x64xbf16, #tpu.memory_space<vmem>>, vector<1x192x64xbf16>
    %8 = vector.shape_cast %7 : vector<1x192x64xbf16> to vector<192x64xbf16>
    %cst_9 = arith.constant dense<0.000000e+00> : vector<1024x64xf32>
    %9 = tpu.matmul %6, %8, %cst_9 {dimension_numbers = #tpu.dot_dimension_numbers<[1], [0], [0], [1], [0, 0, 1, 1], [], []>} : vector<1024x192xbf16>, vector<192x64xbf16>, vector<1024x64xf32> -> vector<1024x64xf32>
    %10 = arith.addf %4, %9 : vector<1024x64xf32>
    %c0_10 = arith.constant 0 : index
    %c64 = arith.constant 64 : index
    %c0_11 = arith.constant 0 : index
    %11 = vector.load %arg2[%c0_10, %c64, %c0_11] : memref<1x1088x192xbf16, #tpu.memory_space<vmem>>, vector<1x1024x192xbf16>
    %12 = vector.shape_cast %11 : vector<1x1024x192xbf16> to vector<1024x192xbf16>
    %c2 = arith.constant 2 : index
    %c0_12 = arith.constant 0 : index
    %c0_13 = arith.constant 0 : index
    %13 = vector.load %arg3[%c2, %c0_12, %c0_13] : memref<3x192x64xbf16, #tpu.memory_space<vmem>>, vector<1x192x64xbf16>
    %14 = vector.shape_cast %13 : vector<1x192x64xbf16> to vector<192x64xbf16>
    %cst_14 = arith.constant dense<0.000000e+00> : vector<1024x64xf32>
    %15 = tpu.matmul %12, %14, %cst_14 {dimension_numbers = #tpu.dot_dimension_numbers<[1], [0], [0], [1], [0, 0, 1, 1], [], []>} : vector<1024x192xbf16>, vector<192x64xbf16>, vector<1024x64xf32> -> vector<1024x64xf32>
    %16 = arith.addf %10, %15 : vector<1024x64xf32>
    %c0_15 = arith.constant 0 : index
    %c0_16 = arith.constant 0 : index
    %17 = vector.load %arg4[%c0_15, %c0_16] : memref<2x64xf32, #tpu.memory_space<vmem>>, vector<1x64xf32>
    %18 = vector.broadcast %17 : vector<1x64xf32> to vector<1024x64xf32>
    %19 = arith.mulf %16, %18 : vector<1024x64xf32>
    %c1_17 = arith.constant 1 : index
    %c0_18 = arith.constant 0 : index
    %20 = vector.load %arg4[%c1_17, %c0_18] : memref<2x64xf32, #tpu.memory_space<vmem>>, vector<1x64xf32>
    %21 = vector.broadcast %20 : vector<1x64xf32> to vector<1024x64xf32>
    %22 = arith.addf %19, %21 : vector<1024x64xf32>
    %cst_19 = arith.constant 0.000000e+00 : f32
    %23 = vector.broadcast %cst_19 : f32 to vector<1024x64xf32>
    %24 = arith.maximumf %22, %23 : vector<1024x64xf32>
    %c0_20 = arith.constant 0 : index
    %c0_21 = arith.constant 0 : index
    %c0_22 = arith.constant 0 : index
    %25 = vector.load %arg5[%c0_20, %c0_21, %c0_22] : memref<1x1024x64xf32, #tpu.memory_space<vmem>>, vector<1x1024x64xf32>
    %26 = vector.shape_cast %25 : vector<1x1024x64xf32> to vector<1024x64xf32>
    %27 = vector.shape_cast %24 : vector<1024x64xf32> to vector<1x1024x64xf32>
    tpu.vector_store %arg5[%c0_20, %c0_21, %c0_22], %27 {strides = array<i32>} : memref<1x1024x64xf32, #tpu.memory_space<vmem>>, vector<1x1024x64xf32>,
    return
  }
  func.func @transform_0(%arg0: i32, %arg1: i32) -> (i32, i32, i32) {
    %c0_i32 = arith.constant 0 : i32
    %c0_i32_0 = arith.constant 0 : i32
    %c0_i32_1 = arith.constant 0 : i32
    return %arg0, %c0_i32, %c0_i32_0 : i32, i32, i32
  }
  func.func @transform_1(%arg0: i32, %arg1: i32) -> (i32, i32, i32) {
    %c0_i32 = arith.constant 0 : i32
    %c0_i32_0 = arith.constant 0 : i32
    %c0_i32_1 = arith.constant 0 : i32
    return %c0_i32, %c0_i32_0, %arg1 : i32, i32, i32
  }
  func.func @transform_2(%arg0: i32, %arg1: i32) -> (i32, i32) {
    %c0_i32 = arith.constant 0 : i32
    %c0_i32_0 = arith.constant 0 : i32
    return %c0_i32, %arg1 : i32, i32
  }
  func.func @transform_3(%arg0: i32, %arg1: i32) -> (i32, i32, i32) {
    %c0_i32 = arith.constant 0 : i32
    %c0_i32_0 = arith.constant 0 : i32
    return %arg0, %c0_i32, %arg1 : i32, i32, i32
  }
}

</mosaic_0001>

<bundles_post_ra>
// kernel: tpu_custom_call.1
= control target key start
LH: loop header
LB: loop body
LE: loop exit
PB: predicated region body
PF: predicated region fallthrough
CT: control target
= control target key end

     0   :  { %v5458_v0 = vmov 0   ;;  %vm844_vm0 = vcmask 523264   ;;  %s8314_s1 = inlined_call_operand.vmem [shape: bf16[3,192,64], index: 1, kind: input, shape index: {}]   ;;  %s8315_s0 = inlined_call_operand.vmem [shape: bf16[1,1088,192], index: 0, kind: input, shape index: {}]   ;;  %s8316_s2 = inlined_call_operand.vmem [shape: f32[2,64], index: 2, kind: input, shape index: {}]   ;;  %s8317_s3 = inlined_call_operand.vmem [shape: f32[1,1024,64], index: 3, kind: output, shape index: {}]  }
   0x1   :  { %1037 = vmatprep.subr.bf16.mxu0 %v5458_v0  ;;  %4953 = vmatprep.subr.bf16.mxu1 %v5458_v0  ;;  %v4978_v1 = vld [vmem:[%s8314_s1 + $0x98] sm:$0xff]   ;;  %v4979_v2 = vld [vmem:[%s8314_s1 + $0x90] sm:$0xff]   ;;  %v4980_v3 = vld [vmem:[%s8314_s1 + $0x88] sm:$0xff]  }
   0x2   :  { %1038 = vmatpush1.bf16.msra.mxu0 %v4978_v1  ;;  %4965 = vmatpush1.bf16.msra.mxu1 %v4978_v1  ;;  %v4981_v4 = vld [vmem:[%s8314_s1 + $0x80] sm:$0xff]   ;;  %v4982_v6 = vld [vmem:[%s8314_s1 + $0x78] sm:$0xff]   ;;  %v4983_v8 = vld [vmem:[%s8314_s1 + $0x70] sm:$0xff]  }
   0x3   :  { %1039 = vmatprep.subr.bf16.mxu0 %v5458_v0  ;;  %4954 = vmatprep.subr.bf16.mxu1 %v5458_v0  ;;  %v4992_v5 = vld [vmem:[%s8315_s0 + $0x24] ss:$8 sps:$4 sm:$0xff]   ;;  %v4986_v11 = vld [vmem:[%s8314_s1 + $0xb8] sm:$0xff]   ;;  %v4987_v12 = vld [vmem:[%s8314_s1 + $0xb0] sm:$0xff]  }
   0x4   :  { %v4995_v7 = vld [vmem:[%s8315_s0 + $0x224] ss:$8 sps:$4 sm:$0xff]   ;;  %4579 = vmatprep.mubr.msk.bf16.mxu0 %vm844_vm0, %v4992_v5  ;;  %v4990_v15 = vld [vmem:[%s8315_s0 + $0x20] ss:$8 sps:$4 sm:$0xff]   ;;  %v4996_v17 = vld [vmem:[%s8314_s1 + $0x38] sm:$0xff]  }
   0x5   :  { %4611 = vmatprep.mubr.msk.bf16.mxu1 %vm844_vm0, %v4995_v7  ;;  %v4984_v9 = vld [vmem:[%s8314_s1 + $0x68] sm:$0xff]   ;;  %v4985_v10 = vld [vmem:[%s8314_s1 + $0x60] sm:$0xff]   ;;  %v4997_v18 = vld [vmem:[%s8314_s1 + $0xf8] sm:$0xff]  }
   0x6   :  { %1040 = vmatpush1.bf16.msra.mxu0 %v4979_v2  ;;  %4966 = vmatpush1.bf16.msra.mxu1 %v4979_v2  ;;  %v4988_v13 = vld [vmem:[%s8314_s1 + $0xa8] sm:$0xff]   ;;  %v4989_v14 = vld [vmem:[%s8314_s1 + $0xa0] sm:$0xff]   ;;  %v4998_v19 = vld [vmem:[%s8315_s0 + $0x34] ss:$8 sps:$4 sm:$0xff]  }
   0x7   :  { %1041 = vmatprep.subr.bf16.mxu0 %v5458_v0  ;;  %4955 = vmatprep.subr.bf16.mxu1 %v5458_v0  ;;  %v4993_v16 = vld [vmem:[%s8315_s0 + $0x220] ss:$8 sps:$4 sm:$0xff]   ;;  %v5000_v20 = vld [vmem:[%s8315_s0 + $0x234] ss:$8 sps:$4 sm:$0xff]   ;;  %v5002_v23 = vld [vmem:[%s8315_s0 + $0x30] ss:$8 sps:$4 sm:$0xff]  }
   0x8   :  { %v5014_v21 = vld [vmem:[%s8314_s1 + $0x30] sm:$0xff]   ;;  %v5004_v25 = vld [vmem:[%s8315_s0 + $0x44] ss:$8 sps:$4 sm:$0xff]   ;;  %v5008_v30 = vld [vmem:[%s8315_s0 + $0x40] ss:$8 sps:$4 sm:$0xff]  }
   0x9   :  { %v5017_v22 = vld [vmem:[%s8314_s1 + $0xf0] sm:$0xff]   ;;  %v5006_v26 = vld [vmem:[%s8315_s0 + $0x244] ss:$8 sps:$4 sm:$0xff]   ;;  %v5009_v32 = vld [vmem:[%s8315_s0 + $0x240] ss:$8 sps:$4 sm:$0xff]  }
   0xa   :  { %1042 = vmatpush1.bf16.msra.mxu0 %v4980_v3  ;;  %4967 = vmatpush1.bf16.msra.mxu1 %v4980_v3  ;;  %v5003_v24 = vld [vmem:[%s8315_s0 + $0x230] ss:$8 sps:$4 sm:$0xff]   ;;  %v5030_v27 = vld [vmem:[%s8314_s1 + $0x28] sm:$0xff]   ;;  %v5050_v29 = vld [vmem:[%s8314_s1 + $0x20] sm:$0xff]  }
   0xb   :  { %1043 = vmatprep.subr.bf16.mxu0 %v5458_v0  ;;  %4956 = vmatprep.subr.bf16.mxu1 %v5458_v0  ;;  %v5031_v28 = vld [vmem:[%s8314_s1 + $0xe8] sm:$0xff]   ;;  %v5051_v31 = vld [vmem:[%s8314_s1 + $0xe0] sm:$0xff]   ;;  %v5010_v33 = vld [vmem:[%s8315_s0 + $0x54] ss:$8 sps:$4 sm:$0xff]  }
   0xc   :  { %v5012_v34 = vld [vmem:[%s8315_s0 + $0x254] ss:$8 sps:$4 sm:$0xff]   ;;  %v5015_v38 = vld [vmem:[%s8315_s0 + $0x50] ss:$8 sps:$4 sm:$0xff]   ;;  %v5018_v41 = vld [vmem:[%s8315_s0 + $0x64] ss:$8 sps:$4 sm:$0xff]  }
   0xd   :  { %v5068_v35 = vld [vmem:[%s8314_s1 + $0x18] sm:$0xff]   ;;  %v5084_v37 = vld [vmem:[%s8314_s1 + $0x10] sm:$0xff]   ;;  %v5020_v42 = vld [vmem:[%s8315_s0 + $0x264] ss:$8 sps:$4 sm:$0xff]  }
   0xe   :  { %1044 = vmatpush1.bf16.msra.mxu0 %v4981_v4  ;;  %4968 = vmatpush1.bf16.msra.mxu1 %v4981_v4  ;;  %v5071_v36 = vld [vmem:[%s8314_s1 + $0xd8] sm:$0xff]   ;;  %v5085_v39 = vld [vmem:[%s8314_s1 + $0xd0] sm:$0xff]   ;;  %v5104_v43 = vld [vmem:[%s8314_s1 + $0x8] sm:$0xff]  }
   0xf   :  { %1045 = vmatprep.subr.bf16.mxu0 %v5458_v0  ;;  %4957 = vmatprep.subr.bf16.mxu1 %v5458_v0  ;;  %v5016_v40 = vld [vmem:[%s8315_s0 + $0x250] ss:$8 sps:$4 sm:$0xff]   ;;  %v5105_v44 = vld [vmem:[%s8314_s1 + $0xc8] sm:$0xff]   ;;  %v5024_v47 = vld [vmem:[%s8315_s0 + $0x74] ss:$8 sps:$4 sm:$0xff]  }
  0x10   :  { %v5022_v45 = vld [vmem:[%s8315_s0 + $0x60] ss:$8 sps:$4 sm:$0xff]   ;;  %v5026_v48 = vld [vmem:[%s8315_s0 + $0x274] ss:$8 sps:$4 sm:$0xff]   ;;  %v5028_v51 = vld [vmem:[%s8315_s0 + $0x70] ss:$8 sps:$4 sm:$0xff]  }
  0x11   :  { %v5023_v46 = vld [vmem:[%s8315_s0 + $0x260] ss:$8 sps:$4 sm:$0xff]   ;;  %v5029_v52 = vld [vmem:[%s8315_s0 + $0x270] ss:$8 sps:$4 sm:$0xff]   ;;  %v5032_v53 = vld [vmem:[%s8315_s0 + $0x84] ss:$8 sps:$4 sm:$0xff]  }
  0x12   :  { %1046 = vmatpush1.bf16.msra.mxu0 %v4982_v6  ;;  %4969 = vmatpush1.bf16.msra.mxu1 %v4982_v6  ;;  %v5122_v49 = vld [vmem:[%s8314_s1] sm:$0xff]   ;;  %v5138_v55 = vld [vmem:[%s8314_s1 + $0x58] sm:$0xff]   ;;  %v5158_v6 = vld [vmem:[%s8314_s1 + $0x50] sm:$0xff]  }
  0x13   :  { %1047 = vmatprep.subr.bf16.mxu0 %v5458_v0  ;;  %4958 = vmatprep.subr.bf16.mxu1 %v5458_v0  ;;  %v5125_v50 = vld [vmem:[%s8314_s1 + $0xc0] sm:$0xff]   ;;  %v5139_v56 = vld [vmem:[%s8314_s1 + $0x118] sm:$0xff]  }
  0x14   :  { %v5034_v54 = vld [vmem:[%s8315_s0 + $0x284] ss:$8 sps:$4 sm:$0xff]   ;;  %v5706_v57 = vld [vmem:[%s8315_s0 + $0x80] ss:$8 sps:$4 sm:$0xff]   ;;  %v5714_v59 = vld [vmem:[%s8315_s0 + $0x94] ss:$8 sps:$4 sm:$0xff]  }
  0x15   :  { %v5037_v58 = vld [vmem:[%s8315_s0 + $0x280] ss:$8 sps:$4 sm:$0xff]   ;;  %v5040_v60 = vld [vmem:[%s8315_s0 + $0x294] ss:$8 sps:$4 sm:$0xff]   ;;  %v5728_v61 = vld [vmem:[%s8315_s0 + $0x90] ss:$8 sps:$4 sm:$0xff]  }
  0x16   :  { %1048 = vmatpush1.bf16.msra.mxu0 %v4983_v8  ;;  %4970 = vmatpush1.bf16.msra.mxu1 %v4983_v8  ;;  %v5043_v62 = vld [vmem:[%s8315_s0 + $0x290] ss:$8 sps:$4 sm:$0xff]   ;;  %v5736_v63 = vld [vmem:[%s8315_s0 + $0xa4] ss:$8 sps:$4 sm:$0xff]   ;;  %v5748_v2 = vld [vmem:[%s8315_s0 + $0xa0] ss:$8 sps:$4 sm:$0xff]  }
  0x17   :  { %1049 = vmatprep.subr.bf16.mxu0 %v5458_v0  ;;  %4959 = vmatprep.subr.bf16.mxu1 %v5458_v0  ;;  %v5046_v1 = vld [vmem:[%s8315_s0 + $0x2a4] ss:$8 sps:$4 sm:$0xff]   ;;  %v5049_v3 = vld [vmem:[%s8315_s0 + $0x2a0] ss:$8 sps:$4 sm:$0xff]   ;;  %v5756_v4 = vld [vmem:[%s8315_s0 + $0xb4] ss:$8 sps:$4 sm:$0xff]  }
  0x18   :  { %v5054_v5 = vld [vmem:[%s8315_s0 + $0x2b4] ss:$8 sps:$4 sm:$0xff]   ;;  %v5771_v7 = vld [vmem:[%s8315_s0 + $0xb0] ss:$8 sps:$4 sm:$0xff]  }
  0x19   :  { %v5057_v8 = vld [vmem:[%s8315_s0 + $0x2b0] ss:$8 sps:$4 sm:$0xff]  }
  0x1a   :  { %1050 = vmatpush1.bf16.msra.mxu0 %v4984_v9  ;;  %4971 = vmatpush1.bf16.msra.mxu1 %v4984_v9  ;;  %v5159_v9 = vld [vmem:[%s8314_s1 + $0x110] sm:$0xff]  }
  0x1b   :  { %1051 = vmatprep.subr.bf16.mxu0 %v5458_v0  ;;  %4960 = vmatprep.subr.bf16.mxu1 %v5458_v0 }
  0x1e   :  { %1052 = vmatpush1.bf16.msra.mxu0 %v4985_v10  ;;  %4972 = vmatpush1.bf16.msra.mxu1 %v4985_v10  ;;  %v5783_v10 = vld [vmem:[%s8315_s0 + $0xc4] ss:$8 sps:$4 sm:$0xff]  }
  0x1f   :  { %1061 = vmatprep.subr.bf16.mxu0 %v5458_v0  ;;  %4961 = vmatprep.subr.bf16.mxu1 %v5458_v0 }
  0x22   :  { %1062 = vmatpush2.bf16.msra.mxu0 %v4986_v11  ;;  %4973 = vmatpush2.bf16.msra.mxu1 %v4986_v11  ;;  %v5060_v11 = vld [vmem:[%s8315_s0 + $0x2c4] ss:$8 sps:$4 sm:$0xff]  }
  0x23   :  { %1063 = vmatprep.subr.bf16.mxu0 %v5458_v0  ;;  %4962 = vmatprep.subr.bf16.mxu1 %v5458_v0 }
  0x26   :  { %1064 = vmatpush2.bf16.msra.mxu0 %v4987_v12  ;;  %4974 = vmatpush2.bf16.msra.mxu1 %v4987_v12  ;;  %v5796_v12 = vld [vmem:[%s8315_s0 + $0xc0] ss:$8 sps:$4 sm:$0xff]  }
  0x27   :  { %1065 = vmatprep.subr.bf16.mxu0 %v5458_v0  ;;  %4963 = vmatprep.subr.bf16.mxu1 %v5458_v0 }
  0x2a   :  { %1066 = vmatpush2.bf16.msra.mxu0 %v4988_v13  ;;  %4975 = vmatpush2.bf16.msra.mxu1 %v4988_v13  ;;  %v5063_v13 = vld [vmem:[%s8315_s0 + $0x2c0] ss:$8 sps:$4 sm:$0xff]  }
  0x2b   :  { %1067 = vmatprep.subr.bf16.mxu0 %v5458_v0  ;;  %4964 = vmatprep.subr.bf16.mxu1 %v5458_v0 }
  0x2e   :  { %1068 = vmatpush2.bf16.msra.mxu0 %v4989_v14  ;;  %4976 = vmatpush2.bf16.msra.mxu1 %v4989_v14  ;;  %v5804_v14 = vld [vmem:[%s8315_s0 + $0xd4] ss:$8 sps:$4 sm:$0xff]  }
  0x2f   :  { %1678 = vmatprep.subr.bf16.mxu1 %v5458_v0  ;;  %3216 = vmatprep.subr.bf16.mxu0 %v5458_v0 }
  0x31   :  { %1070 = vmatmul.mubr.bf16.vlgmr.msra.gmra.mxu0 %v4990_v15  ;;  %1326 = vmatmul.mubr.bf16.vlgmr.msra.gmra.mxu1 %v4993_v16  ;;  %v5066_v15 = vld [vmem:[%s8315_s0 + $0x2d4] ss:$8 sps:$4 sm:$0xff]   ;;  %v5816_v16 = vld [vmem:[%s8315_s0 + $0xd0] ss:$8 sps:$4 sm:$0xff]  }
  0x32   :  { %1679 = vmatpush1.bf16.msra.mxu1 %v4996_v17  ;;  %3217 = vmatpush1.bf16.msra.mxu0 %v4997_v18  ;;  %v5070_v17 = vld [vmem:[%s8315_s0 + $0x2d0] ss:$8 sps:$4 sm:$0xff]   ;;  %v5824_v18 = vld [vmem:[%s8315_s0 + $0xe4] ss:$8 sps:$4 sm:$0xff]  }
  0x33   :  { %4580 = vmatprep.mubr.msk.bf16.mxu0 %vm844_vm0, %v4998_v19  ;;  %4612 = vmatprep.mubr.msk.bf16.mxu1 %vm844_vm0, %v5000_v20  ;;  %v5074_v19 = vld [vmem:[%s8315_s0 + $0x2e4] ss:$8 sps:$4 sm:$0xff]  }
  0x34   :  { %1680 = vmatprep.subr.bf16.mxu1 %v5458_v0  ;;  %3218 = vmatprep.subr.bf16.mxu0 %v5458_v0  ;;  %v5176_v20 = vld [vmem:[%s8314_s1 + $0x48] sm:$0xff]  }
  0x36   :  { %1681 = vmatpush1.bf16.msra.mxu1 %v5014_v21  ;;  %3219 = vmatpush1.bf16.msra.mxu0 %v5017_v22  ;;  %v5179_v21 = vld [vmem:[%s8314_s1 + $0x108] sm:$0xff]  }
  0x37   :  { %1682 = vmatprep.subr.bf16.mxu1 %v5458_v0  ;;  %3220 = vmatprep.subr.bf16.mxu0 %v5458_v0  ;;  %v5844_v22 = vld [vmem:[%s8315_s0 + $0xe0] ss:$8 sps:$4 sm:$0xff]  }
  0x39   :  { %1078 = vmatmul.mubr.bf16.gmra.mxu0 %v5002_v23  ;;  %1334 = vmatmul.mubr.bf16.gmra.mxu1 %v5003_v24  ;;  %v5077_v23 = vld [vmem:[%s8315_s0 + $0x2e0] ss:$8 sps:$4 sm:$0xff]   ;;  %v5852_v24 = vld [vmem:[%s8315_s0 + $0xf4] ss:$8 sps:$4 sm:$0xff]  }
  0x3a   :  { %4581 = vmatprep.mubr.msk.bf16.mxu0 %vm844_vm0, %v5004_v25  ;;  %4613 = vmatprep.mubr.msk.bf16.mxu1 %vm844_vm0, %v5006_v26  ;;  %v5080_v25 = vld [vmem:[%s8315_s0 + $0x2f4] ss:$8 sps:$4 sm:$0xff]   ;;  %v5083_v26 = vld [vmem:[%s8315_s0 + $0x2f0] ss:$8 sps:$4 sm:$0xff]  }
  0x3b   :  { %1683 = vmatpush1.bf16.msra.mxu1 %v5030_v27  ;;  %3221 = vmatpush1.bf16.msra.mxu0 %v5031_v28  ;;  %v5872_v27 = vld [vmem:[%s8315_s0 + $0x104] ss:$8 sps:$4 sm:$0xff]  }
  0x3c   :  { %1684 = vmatprep.subr.bf16.mxu1 %v5458_v0  ;;  %3222 = vmatprep.subr.bf16.mxu0 %v5458_v0  ;;  %v5088_v28 = vld [vmem:[%s8315_s0 + $0x304] ss:$8 sps:$4 sm:$0xff]  }
  0x3f   :  { %1685 = vmatpush1.bf16.msra.mxu1 %v5050_v29  ;;  %3223 = vmatpush1.bf16.msra.mxu0 %v5051_v31  ;;  %v5884_v29 = vld [vmem:[%s8315_s0 + $0x100] ss:$8 sps:$4 sm:$0xff]  }
  0x40   :  { %1686 = vmatprep.subr.bf16.mxu1 %v5458_v0  ;;  %3224 = vmatprep.subr.bf16.mxu0 %v5458_v0  ;;  %v5192_v31 = vld [vmem:[%s8314_s1 + $0x40] sm:$0xff]  }
  0x41   :  { %1086 = vmatmul.mubr.bf16.gmra.mxu0 %v5008_v30  ;;  %1342 = vmatmul.mubr.bf16.gmra.mxu1 %v5009_v32  ;;  %v5091_v30 = vld [vmem:[%s8315_s0 + $0x300] ss:$8 sps:$4 sm:$0xff]   ;;  %v5895_v32 = vld [vmem:[%s8315_s0 + $0x114] ss:$8 sps:$4 sm:$0xff]  }
  0x42   :  { %4582 = vmatprep.mubr.msk.bf16.mxu0 %vm844_vm0, %v5010_v33  ;;  %4614 = vmatprep.mubr.msk.bf16.mxu1 %vm844_vm0, %v5012_v34  ;;  %v5094_v33 = vld [vmem:[%s8315_s0 + $0x314] ss:$8 sps:$4 sm:$0xff]   ;;  %v5193_v34 = vld [vmem:[%s8314_s1 + $0x100] sm:$0xff]  }
  0x43   :  { %1687 = vmatpush1.bf16.msra.mxu1 %v5068_v35  ;;  %3225 = vmatpush1.bf16.msra.mxu0 %v5071_v36  ;;  %v5910_v35 = vld [vmem:[%s8315_s0 + $0x110] ss:$8 sps:$4 sm:$0xff]  }
  0x44   :  { %1688 = vmatprep.subr.bf16.mxu1 %v5458_v0  ;;  %3226 = vmatprep.subr.bf16.mxu0 %v5458_v0  ;;  %v5097_v36 = vld [vmem:[%s8315_s0 + $0x310] ss:$8 sps:$4 sm:$0xff]  }
  0x47   :  { %1689 = vmatpush1.bf16.msra.mxu1 %v5084_v37  ;;  %3227 = vmatpush1.bf16.msra.mxu0 %v5085_v39  ;;  %v5918_v37 = vld [vmem:[%s8315_s0 + $0x124] ss:$8 sps:$4 sm:$0xff]   ;;  %v5930_v39 = vld [vmem:[%s8315_s0 + $0x120] ss:$8 sps:$4 sm:$0xff]  }
  0x48   :  { %1690 = vmatprep.subr.bf16.mxu1 %v5458_v0  ;;  %3228 = vmatprep.subr.bf16.mxu0 %v5458_v0 }
  0x49   :  { %1094 = vmatmul.mubr.bf16.gmra.mxu0 %v5015_v38  ;;  %1350 = vmatmul.mubr.bf16.gmra.mxu1 %v5016_v40  ;;  %v5100_v38 = vld [vmem:[%s8315_s0 + $0x324] ss:$8 sps:$4 sm:$0xff]   ;;  %v5103_v40 = vld [vmem:[%s8315_s0 + $0x320] ss:$8 sps:$4 sm:$0xff]  }
  0x4a   :  { %4583 = vmatprep.mubr.msk.bf16.mxu0 %vm844_vm0, %v5018_v41  ;;  %4615 = vmatprep.mubr.msk.bf16.mxu1 %vm844_vm0, %v5020_v42  ;;  %v5938_v41 = vld [vmem:[%s8315_s0 + $0x134] ss:$8 sps:$4 sm:$0xff]  }
  0x4b   :  { %1691 = vmatpush1.bf16.msra.mxu1 %v5104_v43  ;;  %3229 = vmatpush1.bf16.msra.mxu0 %v5105_v44  ;;  %v5108_v42 = vld [vmem:[%s8315_s0 + $0x334] ss:$8 sps:$4 sm:$0xff]   ;;  %v5950_v43 = vld [vmem:[%s8315_s0 + $0x130] ss:$8 sps:$4 sm:$0xff]  }
  0x4c   :  { %1692 = vmatprep.subr.bf16.mxu1 %v5458_v0  ;;  %3230 = vmatprep.subr.bf16.mxu0 %v5458_v0  ;;  %v5111_v44 = vld [vmem:[%s8315_s0 + $0x330] ss:$8 sps:$4 sm:$0xff]  }
  0x4f   :  { %1693 = vmatpush1.bf16.msra.mxu1 %v5122_v49  ;;  %3231 = vmatpush1.bf16.msra.mxu0 %v5125_v50  ;;  %v5978_v49 = vld [vmem:[%s8315_s0 + $0x154] ss:$8 sps:$4 sm:$0xff]  }
  0x50   :  { %1702 = vmatprep.subr.bf16.mxu1 %v5458_v0  ;;  %3240 = vmatprep.subr.bf16.mxu0 %v5458_v0  ;;  %v5120_v50 = vld [vmem:[%s8315_s0 + $0x354] ss:$8 sps:$4 sm:$0xff]  }
  0x51   :  { %1102 = vmatmul.mubr.bf16.gmra.mxu0 %v5022_v45  ;;  %1358 = vmatmul.mubr.bf16.gmra.mxu1 %v5023_v46  ;;  %v5958_v45 = vld [vmem:[%s8315_s0 + $0x144] ss:$8 sps:$4 sm:$0xff]  }
  0x52   :  { %4584 = vmatprep.mubr.msk.bf16.mxu0 %vm844_vm0, %v5024_v47  ;;  %4616 = vmatprep.mubr.msk.bf16.mxu1 %vm844_vm0, %v5026_v48  ;;  %v5114_v46 = vld [vmem:[%s8315_s0 + $0x344] ss:$8 sps:$4 sm:$0xff]   ;;  %v5970_v47 = vld [vmem:[%s8315_s0 + $0x140] ss:$8 sps:$4 sm:$0xff]  }
  0x53   :  { %1703 = vmatpush2.bf16.msra.mxu1 %v5138_v55  ;;  %3241 = vmatpush2.bf16.msra.mxu0 %v5139_v56  ;;  %v5117_v48 = vld [vmem:[%s8315_s0 + $0x340] ss:$8 sps:$4 sm:$0xff]  }
  0x54   :  { %1704 = vmatprep.subr.bf16.mxu1 %v5458_v0  ;;  %3242 = vmatprep.subr.bf16.mxu0 %v5458_v0  ;;  %v6010_v55 = vld [vmem:[%s8315_s0 + $0x160] ss:$8 sps:$4 sm:$0xff]  }
  0x55   :  { %v5131_v56 = vld [vmem:[%s8315_s0 + $0x360] ss:$8 sps:$4 sm:$0xff]  }
  0x57   :  { %1705 = vmatpush2.bf16.msra.mxu1 %v5158_v6  ;;  %3243 = vmatpush2.bf16.msra.mxu0 %v5159_v9  ;;  %v6050_v6 = vld [vmem:[%s8315_s0 + $0x180] ss:$8 sps:$4 sm:$0xff]   ;;  %v6058_v9 = vld [vmem:[%s8315_s0 + $0x194] ss:$8 sps:$4 sm:$0xff]  }
  0x58   :  { %1706 = vmatprep.subr.bf16.mxu1 %v5458_v0  ;;  %3244 = vmatprep.subr.bf16.mxu0 %v5458_v0 }
  0x59   :  { %1110 = vmatmul.mubr.bf16.gmra.mxu0 %v5028_v51  ;;  %1366 = vmatmul.mubr.bf16.gmra.mxu1 %v5029_v52  ;;  %v5990_v51 = vld [vmem:[%s8315_s0 + $0x150] ss:$8 sps:$4 sm:$0xff]  }
  0x5a   :  { %4585 = vmatprep.mubr.msk.bf16.mxu0 %vm844_vm0, %v5032_v53  ;;  %4617 = vmatprep.mubr.msk.bf16.mxu1 %vm844_vm0, %v5034_v54  ;;  %v5124_v52 = vld [vmem:[%s8315_s0 + $0x350] ss:$8 sps:$4 sm:$0xff]   ;;  %v5998_v53 = vld [vmem:[%s8315_s0 + $0x164] ss:$8 sps:$4 sm:$0xff]  }
  0x5b   :  { %1707 = vmatpush2.bf16.msra.mxu1 %v5176_v20  ;;  %3245 = vmatpush2.bf16.msra.mxu0 %v5179_v21  ;;  %v5128_v54 = vld [vmem:[%s8315_s0 + $0x364] ss:$8 sps:$4 sm:$0xff]   ;;  %v5156_v20 = vld [vmem:[%s8315_s0 + $0x1a0] ss:$8 sps:$4 sm:$0xff]  }
  0x5c   :  { %1708 = vmatprep.subr.bf16.mxu1 %v5458_v0  ;;  %3246 = vmatprep.subr.bf16.mxu0 %v5458_v0  ;;  %v5864_v0 = vld [vmem:[%s8315_s0 + $0xf0] ss:$8 sps:$4 sm:$0xff]   ;;  %v5157_v21 = vld [vmem:[%s8315_s0 + $0x3a0] ss:$8 sps:$4 sm:$0xff]  }
  0x5f   :  { %1709 = vmatpush2.bf16.msra.mxu1 %v5192_v31  ;;  %3247 = vmatpush2.bf16.msra.mxu0 %v5193_v34 }
  0x61   :  { %1118 = vmatmul.mubr.bf16.gmra.mxu0 %v5706_v57  ;;  %1374 = vmatmul.mubr.bf16.gmra.mxu1 %v5037_v58  ;;  %v6018_v58 = vld [vmem:[%s8315_s0 + $0x174] ss:$8 sps:$4 sm:$0xff]  }
  0x62   :  { %4586 = vmatprep.mubr.msk.bf16.mxu0 %vm844_vm0, %v5714_v59  ;;  %4618 = vmatprep.mubr.msk.bf16.mxu1 %vm844_vm0, %v5040_v60  ;;  %v5134_v60 = vld [vmem:[%s8315_s0 + $0x374] ss:$8 sps:$4 sm:$0xff]  }
  0x69   :  { %1126 = vmatmul.mubr.bf16.gmra.mxu0 %v5728_v61  ;;  %1382 = vmatmul.mubr.bf16.gmra.mxu1 %v5043_v62  ;;  %v6030_v62 = vld [vmem:[%s8315_s0 + $0x170] ss:$8 sps:$4 sm:$0xff]  }
  0x6a   :  { %4587 = vmatprep.mubr.msk.bf16.mxu0 %vm844_vm0, %v5736_v63  ;;  %4619 = vmatprep.mubr.msk.bf16.mxu1 %vm844_vm0, %v5046_v1  ;;  %v5137_v1 = vld [vmem:[%s8315_s0 + $0x370] ss:$8 sps:$4 sm:$0xff]  }
  0x71   :  { %1134 = vmatmul.mubr.bf16.gmra.mxu0 %v5748_v2  ;;  %1390 = vmatmul.mubr.bf16.gmra.mxu1 %v5049_v3  ;;  %v6038_v3 = vld [vmem:[%s8315_s0 + $0x184] ss:$8 sps:$4 sm:$0xff]  }
  0x72   :  { %4588 = vmatprep.mubr.msk.bf16.mxu0 %vm844_vm0, %v5756_v4  ;;  %4620 = vmatprep.mubr.msk.bf16.mxu1 %vm844_vm0, %v5054_v5  ;;  %v5142_v5 = vld [vmem:[%s8315_s0 + $0x384] ss:$8 sps:$4 sm:$0xff]  }
  0x79   :  { %1142 = vmatmul.mubr.bf16.gmra.mxu0 %v5771_v7  ;;  %1398 = vmatmul.mubr.bf16.gmra.mxu1 %v5057_v8  ;;  %v5145_v8 = vld [vmem:[%s8315_s0 + $0x380] ss:$8 sps:$4 sm:$0xff]  }
  0x7a   :  { %4589 = vmatprep.mubr.msk.bf16.mxu0 %vm844_vm0, %v5783_v10  ;;  %4621 = vmatprep.mubr.msk.bf16.mxu1 %vm844_vm0, %v5060_v11  ;;  %v5148_v11 = vld [vmem:[%s8315_s0 + $0x394] ss:$8 sps:$4 sm:$0xff]  }
  0x81   :  { %1150 = vmatmul.mubr.bf16.gmra.mxu0 %v5796_v12  ;;  %1406 = vmatmul.mubr.bf16.gmra.mxu1 %v5063_v13  ;;  %v6070_v13 = vld [vmem:[%s8315_s0 + $0x190] ss:$8 sps:$4 sm:$0xff]  }
  0x82   :  { %4590 = vmatprep.mubr.msk.bf16.mxu0 %vm844_vm0, %v5804_v14  ;;  %4622 = vmatprep.mubr.msk.bf16.mxu1 %vm844_vm0, %v5066_v15  ;;  %v5151_v15 = vld [vmem:[%s8315_s0 + $0x390] ss:$8 sps:$4 sm:$0xff]  }
  0x89   :  { %1158 = vmatmul.mubr.bf16.gmra.mxu0 %v5816_v16  ;;  %1414 = vmatmul.mubr.bf16.gmra.mxu1 %v5070_v17  ;;  %v6078_v17 = vld [vmem:[%s8315_s0 + $0x1a4] ss:$8 sps:$4 sm:$0xff]  }
  0x8a   :  { %4591 = vmatprep.mubr.msk.bf16.mxu0 %vm844_vm0, %v5824_v18  ;;  %4623 = vmatprep.mubr.msk.bf16.mxu1 %vm844_vm0, %v5074_v19  ;;  %v5154_v19 = vld [vmem:[%s8315_s0 + $0x3a4] ss:$8 sps:$4 sm:$0xff]  }
  0x91   :  { %1166 = vmatmul.mubr.bf16.gmra.mxu0 %v5844_v22  ;;  %1422 = vmatmul.mubr.bf16.gmra.mxu1 %v5077_v23  ;;  %v5160_v23 = vld [vmem:[%s8315_s0 + $0x1b4] ss:$8 sps:$4 sm:$0xff]  }
  0x92   :  { %4592 = vmatprep.mubr.msk.bf16.mxu0 %vm844_vm0, %v5852_v24  ;;  %4624 = vmatprep.mubr.msk.bf16.mxu1 %vm844_vm0, %v5080_v25  ;;  %v5162_v25 = vld [vmem:[%s8315_s0 + $0x3b4] ss:$8 sps:$4 sm:$0xff]  }
  0x99   :  { %1174 = vmatmul.mubr.bf16.gmra.mxu0 %v5864_v0  ;;  %1430 = vmatmul.mubr.bf16.gmra.mxu1 %v5083_v26 }
  0x9a   :  { %4593 = vmatprep.mubr.msk.bf16.mxu0 %vm844_vm0, %v5872_v27  ;;  %4625 = vmatprep.mubr.msk.bf16.mxu1 %vm844_vm0, %v5088_v28 }
  0xa1   :  { %1182 = vmatmul.mubr.bf16.gmra.mxu0 %v5884_v29  ;;  %1438 = vmatmul.mubr.bf16.gmra.mxu1 %v5091_v30 }
  0xa2   :  { %4594 = vmatprep.mubr.msk.bf16.mxu0 %vm844_vm0, %v5895_v32  ;;  %4626 = vmatprep.mubr.msk.bf16.mxu1 %vm844_vm0, %v5094_v33 }
  0xa9   :  { %1190 = vmatmul.mubr.bf16.gmra.mxu0 %v5910_v35  ;;  %1446 = vmatmul.mubr.bf16.gmra.mxu1 %v5097_v36  ;;  %v5164_v36 = vld [vmem:[%s8315_s0 + $0x1b0] ss:$8 sps:$4 sm:$0xff]  }
  0xaa   :  { %4595 = vmatprep.mubr.msk.bf16.mxu0 %vm844_vm0, %v5918_v37  ;;  %4627 = vmatprep.mubr.msk.bf16.mxu1 %vm844_vm0, %v5100_v38  ;;  %v5165_v38 = vld [vmem:[%s8315_s0 + $0x3b0] ss:$8 sps:$4 sm:$0xff]  }
  0xb1   :  { %1198 = vmatmul.mubr.bf16.gmra.mxu0 %v5930_v39  ;;  %1454 = vmatmul.mubr.bf16.gmra.mxu1 %v5103_v40  ;;  %v5166_v40 = vld [vmem:[%s8315_s0 + $0x1c4] ss:$8 sps:$4 sm:$0xff]  }
  0xb2   :  { %4596 = vmatprep.mubr.msk.bf16.mxu0 %vm844_vm0, %v5938_v41  ;;  %4628 = vmatprep.mubr.msk.bf16.mxu1 %vm844_vm0, %v5108_v42  ;;  %v5168_v42 = vld [vmem:[%s8315_s0 + $0x3c4] ss:$8 sps:$4 sm:$0xff]  }
  0xb9   :  { %1206 = vmatmul.mubr.bf16.gmra.mxu0 %v5950_v43  ;;  %1462 = vmatmul.mubr.bf16.gmra.mxu1 %v5111_v44 }
  0xba   :  { %4597 = vmatprep.mubr.msk.bf16.mxu0 %vm844_vm0, %v5958_v45  ;;  %4629 = vmatprep.mubr.msk.bf16.mxu1 %vm844_vm0, %v5114_v46 }
  0xc1   :  { %1214 = vmatmul.mubr.bf16.gmra.mxu0 %v5970_v47  ;;  %1470 = vmatmul.mubr.bf16.gmra.mxu1 %v5117_v48 }
  0xc2   :  { %4598 = vmatprep.mubr.msk.bf16.mxu0 %vm844_vm0, %v5978_v49  ;;  %4630 = vmatprep.mubr.msk.bf16.mxu1 %vm844_vm0, %v5120_v50 }
  0xc9   :  { %1222 = vmatmul.mubr.bf16.gmra.mxu0 %v5990_v51  ;;  %1478 = vmatmul.mubr.bf16.gmra.mxu1 %v5124_v52 }
  0xca   :  { %4599 = vmatprep.mubr.msk.bf16.mxu0 %vm844_vm0, %v5998_v53  ;;  %4631 = vmatprep.mubr.msk.bf16.mxu1 %vm844_vm0, %v5128_v54 }
  0xd1   :  { %1230 = vmatmul.mubr.bf16.gmra.mxu0 %v6010_v55  ;;  %1486 = vmatmul.mubr.bf16.gmra.mxu1 %v5131_v56 }
  0xd2   :  { %4600 = vmatprep.mubr.msk.bf16.mxu0 %vm844_vm0, %v6018_v58  ;;  %4632 = vmatprep.mubr.msk.bf16.mxu1 %vm844_vm0, %v5134_v60 }
  0xd9   :  { %1238 = vmatmul.mubr.bf16.gmra.mxu0 %v6030_v62  ;;  %1494 = vmatmul.mubr.bf16.gmra.mxu1 %v5137_v1  ;;  %v5170_v1 = vld [vmem:[%s8315_s0 + $0x1c0] ss:$8 sps:$4 sm:$0xff]  }
  0xda   :  { %4601 = vmatprep.mubr.msk.bf16.mxu0 %vm844_vm0, %v6038_v3  ;;  %4633 = vmatprep.mubr.msk.bf16.mxu1 %vm844_vm0, %v5142_v5  ;;  %v5171_v5 = vld [vmem:[%s8315_s0 + $0x3c0] ss:$8 sps:$4 sm:$0xff]  }
  0xe1   :  { %1246 = vmatmul.mubr.bf16.gmra.mxu0 %v6050_v6  ;;  %1502 = vmatmul.mubr.bf16.gmra.mxu1 %v5145_v8  ;;  %v5172_v8 = vld [vmem:[%s8315_s0 + $0x1d4] ss:$8 sps:$4 sm:$0xff]  }
  0xe2   :  { %4602 = vmatprep.mubr.msk.bf16.mxu0 %vm844_vm0, %v6058_v9  ;;  %4634 = vmatprep.mubr.msk.bf16.mxu1 %vm844_vm0, %v5148_v11  ;;  %v5174_v11 = vld [vmem:[%s8315_s0 + $0x3d4] ss:$8 sps:$4 sm:$0xff]  }
  0xe9   :  { %1254 = vmatmul.mubr.bf16.gmra.mxu0 %v6070_v13  ;;  %1510 = vmatmul.mubr.bf16.gmra.mxu1 %v5151_v15 }
  0xea   :  { %4603 = vmatprep.mubr.msk.bf16.mxu0 %vm844_vm0, %v6078_v17  ;;  %4635 = vmatprep.mubr.msk.bf16.mxu1 %vm844_vm0, %v5154_v19 }
  0xf1   :  { %v6099_v26 = vpop.f32.mrf.mxu0  ;;  %1262 = vmatmul.mubr.bf16.gmra.mxu0 %v5156_v20  ;;  %v6101_v28 = vpop.f32.mrf.mxu1  ;;  %1518 = vmatmul.mubr.bf16.gmra.mxu1 %v5157_v21 }
  0xf2   :  { %8318 = vst [vmem:[#allocation2_spill] sm:$0xff] %v6101_v28  ;;  %4604 = vmatprep.mubr.msk.bf16.mxu0 %vm844_vm0, %v5160_v23  ;;  %4636 = vmatprep.mubr.msk.bf16.mxu1 %vm844_vm0, %v5162_v25 }
  0xf3   :  { %v1073_v30 = vpop.f32.mrf.mxu0  ;;  %v1329_v31 = vpop.f32.mrf.mxu1 }
  0xf5   :  { %v6105_v33 = vpop.f32.mrf.mxu0  ;;  %v6107_v34 = vpop.f32.mrf.mxu1 }
  0xf6   :  { %8319 = vst [vmem:[#allocation3_spill] sm:$0xff] %v6107_v34 }
  0xf7   :  { %v1076_v44 = vpop.f32.mrf.mxu0  ;;  %v1332_v46 = vpop.f32.mrf.mxu1 }
  0xf9   :  { %v6121_v48 = vpop.f32.mrf.mxu0  ;;  %1270 = vmatmul.mubr.bf16.gmra.mxu0 %v5164_v36  ;;  %v6123_v50 = vpop.f32.mrf.mxu1  ;;  %1526 = vmatmul.mubr.bf16.gmra.mxu1 %v5165_v38  ;;  %v5177_v36 = vld [vmem:[%s8315_s0 + $0x1d0] ss:$8 sps:$4 sm:$0xff]  }
  0xfa   :  { %8320 = vst [vmem:[#allocation4_spill] sm:$0xff] %v6123_v50  ;;  %4605 = vmatprep.mubr.msk.bf16.mxu0 %vm844_vm0, %v5166_v40  ;;  %4637 = vmatprep.mubr.msk.bf16.mxu1 %vm844_vm0, %v5168_v42  ;;  %v5178_v38 = vld [vmem:[%s8315_s0 + $0x3d0] ss:$8 sps:$4 sm:$0xff]   ;;  %v5180_v40 = vld [vmem:[%s8315_s0 + $0x1e4] ss:$8 sps:$4 sm:$0xff]  }
  0xfb   :  { %v1081_v52 = vpop.f32.mrf.mxu0  ;;  %v1337_v54 = vpop.f32.mrf.mxu1  ;;  %v5182_v42 = vld [vmem:[%s8315_s0 + $0x3e4] ss:$8 sps:$4 sm:$0xff]  }
  0xfd   :  { %v6127_v56 = vpop.f32.mrf.mxu0  ;;  %v6129_v60 = vpop.f32.mrf.mxu1 }
  0xfe   :  { %8321 = vst [vmem:[#allocation5_spill] sm:$0xff] %v6129_v60 }
  0xff   :  { %v1084_v15 = vpop.f32.mrf.mxu0  ;;  %v1340_v19 = vpop.f32.mrf.mxu1 }
 0x100   :  { %v5184_v15 = vld [vmem:[%s8315_s0 + $0x1e0] ss:$8 sps:$4 sm:$0xff]  }
 0x101   :  { %v6143_v20 = vpop.f32.mrf.mxu0  ;;  %1278 = vmatmul.mubr.bf16.gmra.mxu0 %v5170_v1  ;;  %v6145_v21 = vpop.f32.mrf.mxu1  ;;  %1534 = vmatmul.mubr.bf16.gmra.mxu1 %v5171_v5  ;;  %v5185_v19 = vld [vmem:[%s8315_s0 + $0x3e0] ss:$8 sps:$4 sm:$0xff]  }
 0x102   :  { %8322 = vst [vmem:[#allocation6_spill] sm:$0xff] %v6145_v21  ;;  %4606 = vmatprep.mubr.msk.bf16.mxu0 %vm844_vm0, %v5172_v8  ;;  %4638 = vmatprep.mubr.msk.bf16.mxu1 %vm844_vm0, %v5174_v11 }
 0x103   :  { %v1089_v23 = vpop.f32.mrf.mxu0  ;;  %v1345_v25 = vpop.f32.mrf.mxu1 }
 0x104   :  { %v5186_v23 = vld [vmem:[%s8315_s0 + $0x1f4] ss:$8 sps:$4 sm:$0xff]  }
 0x105   :  { %v6149_v30 = vpop.f32.mrf.mxu0  ;;  %v6151_v31 = vpop.f32.mrf.mxu1  ;;  %v5188_v25 = vld [vmem:[%s8315_s0 + $0x3f4] ss:$8 sps:$4 sm:$0xff]  }
 0x106   :  { %8323 = vst [vmem:[#allocation7_spill] sm:$0xff] %v6151_v31 }
 0x107   :  { %v1092_v44 = vpop.f32.mrf.mxu0  ;;  %v1348_v46 = vpop.f32.mrf.mxu1 }
 0x109   :  { %v6165_v52 = vpop.f32.mrf.mxu0  ;;  %1286 = vmatmul.mubr.bf16.gmra.mxu0 %v5177_v36  ;;  %v6167_v54 = vpop.f32.mrf.mxu1  ;;  %1542 = vmatmul.mubr.bf16.gmra.mxu1 %v5178_v38 }
 0x10a   :  { %8324 = vst [vmem:[#allocation8_spill] sm:$0xff] %v6167_v54  ;;  %4607 = vmatprep.mubr.msk.bf16.mxu0 %vm844_vm0, %v5180_v40  ;;  %4639 = vmatprep.mubr.msk.bf16.mxu1 %vm844_vm0, %v5182_v42 }
 0x10b   :  { %v1097_v1 = vpop.f32.mrf.mxu0  ;;  %v1353_v5 = vpop.f32.mrf.mxu1 }
 0x10d   :  { %v6171_v8 = vpop.f32.mrf.mxu0  ;;  %v6173_v11 = vpop.f32.mrf.mxu1 }
 0x10e   :  { %8325 = vst [vmem:[#allocation9_spill] sm:$0xff] %v6173_v11 }
 0x10f   :  { %v1100_v36 = vpop.f32.mrf.mxu0  ;;  %v1356_v38 = vpop.f32.mrf.mxu1 }
 0x110   :  { %v5190_v36 = vld [vmem:[%s8315_s0 + $0x1f0] ss:$8 sps:$4 sm:$0xff]  }
 0x111   :  { %v6187_v40 = vpop.f32.mrf.mxu0  ;;  %1294 = vmatmul.mubr.bf16.gmra.mxu0 %v5184_v15  ;;  %v6189_v42 = vpop.f32.mrf.mxu1  ;;  %1550 = vmatmul.mubr.bf16.gmra.mxu1 %v5185_v19  ;;  %v5191_v15 = vld [vmem:[%s8315_s0 + $0x3f0] ss:$8 sps:$4 sm:$0xff]   ;;  %v5194_v19 = vld [vmem:[%s8315_s0 + $0x204] ss:$8 sps:$4 sm:$0xff]  }
 0x112   :  { %8326 = vst [vmem:[#allocation10_spill] sm:$0xff] %v6189_v42  ;;  %4608 = vmatprep.mubr.msk.bf16.mxu0 %vm844_vm0, %v5186_v23  ;;  %4640 = vmatprep.mubr.msk.bf16.mxu1 %vm844_vm0, %v5188_v25  ;;  %v5196_v23 = vld [vmem:[%s8315_s0 + $0x404] ss:$8 sps:$4 sm:$0xff]  }
 0x113   :  { %v1105_v44 = vpop.f32.mrf.mxu0  ;;  %v1361_v46 = vpop.f32.mrf.mxu1 }
 0x115   :  { %v6193_v1 = vpop.f32.mrf.mxu0  ;;  %v6195_v5 = vpop.f32.mrf.mxu1 }
 0x116   :  { %8327 = vst [vmem:[#allocation11_spill] sm:$0xff] %v6195_v5 }
 0x117   :  { %v1108_v25 = vpop.f32.mrf.mxu0  ;;  %v1364_v38 = vpop.f32.mrf.mxu1 }
 0x118   :  { %v5198_v25 = vld [vmem:[%s8315_s0 + $0x200] ss:$8 sps:$4 sm:$0xff]  }
 0x119   :  { %v6209_v44 = vpop.f32.mrf.mxu0  ;;  %1302 = vmatmul.mubr.bf16.gmra.mxu0 %v5190_v36  ;;  %v6211_v46 = vpop.f32.mrf.mxu1  ;;  %1558 = vmatmul.mubr.bf16.gmra.mxu1 %v5191_v15  ;;  %v5199_v36 = vld [vmem:[%s8315_s0 + $0x400] ss:$8 sps:$4 sm:$0xff]   ;;  %v5200_v15 = vld [vmem:[%s8315_s0 + $0x214] ss:$8 sps:$4 sm:$0xff]  }
 0x11a   :  { %8328 = vst [vmem:[#allocation12_spill] sm:$0xff] %v6211_v46  ;;  %4609 = vmatprep.mubr.msk.bf16.mxu0 %vm844_vm0, %v5194_v19  ;;  %4641 = vmatprep.mubr.msk.bf16.mxu1 %vm844_vm0, %v5196_v23 }
 0x11b   :  { %v1113_v5 = vpop.f32.mrf.mxu0  ;;  %v1369_v42 = vpop.f32.mrf.mxu1 }
 0x11c   :  { %v5202_v42 = vld [vmem:[%s8315_s0 + $0x414] ss:$8 sps:$4 sm:$0xff]  }
 0x11d   :  { %v6215_v11 = vpop.f32.mrf.mxu0  ;;  %v6217_v54 = vpop.f32.mrf.mxu1 }
 0x11e   :  { %8329 = vst [vmem:[#allocation13_spill] sm:$0xff] %v6217_v54 }
 0x11f   :  { %v1116_v5 = vpop.f32.mrf.mxu0  ;;  %v1372_v19 = vpop.f32.mrf.mxu1 }
 0x120   :  { %v5204_v5 = vld [vmem:[%s8315_s0 + $0x210] ss:$8 sps:$4 sm:$0xff]  }
 0x121   :  { %v6231_v23 = vpop.f32.mrf.mxu0  ;;  %1310 = vmatmul.mubr.bf16.gmra.mxu0 %v5198_v25  ;;  %v6233_v38 = vpop.f32.mrf.mxu1  ;;  %1566 = vmatmul.mubr.bf16.gmra.mxu1 %v5199_v36  ;;  %v5205_v25 = vld [vmem:[%s8315_s0 + $0x410] ss:$8 sps:$4 sm:$0xff]   ;;  %v5208_v36 = vld [vmem:[%s8315_s0 + $0x4] ss:$8 sps:$4 sm:$0xff]  }
 0x122   :  { %8330 = vst [vmem:[#allocation14_spill] sm:$0xff] %v6233_v38  ;;  %4610 = vmatprep.mubr.msk.bf16.mxu0 %vm844_vm0, %v5200_v15  ;;  %4642 = vmatprep.mubr.msk.bf16.mxu1 %vm844_vm0, %v5202_v42 }
 0x123   :  { %v1121_v54 = vpop.f32.mrf.mxu0  ;;  %v1377_v46 = vpop.f32.mrf.mxu1 }
 0x124   :  { %v5211_v54 = vld [vmem:[%s8315_s0 + $0x44] ss:$8 sps:$4 sm:$0xff]  }
 0x125   :  { %v6237_v31 = vpop.f32.mrf.mxu0  ;;  %v6239_v21 = vpop.f32.mrf.mxu1 }
 0x126   :  { %8331 = vst [vmem:[#allocation15_spill] sm:$0xff] %v6239_v21 }
 0x127   :  { %v1124_v46 = vpop.f32.mrf.mxu0  ;;  %v1380_v15 = vpop.f32.mrf.mxu1 }
 0x128   :  { %v5206_v46 = vld [vmem:[%s8315_s0] ss:$8 sps:$4 sm:$0xff]  }
 0x129   :  { %v6253_v42 = vpop.f32.mrf.mxu0  ;;  %1318 = vmatmul.mubr.bf16.gmra.mxu0 %v5204_v5  ;;  %v6255_v19 = vpop.f32.mrf.mxu1  ;;  %1574 = vmatmul.mubr.bf16.gmra.mxu1 %v5205_v25  ;;  %v5209_v5 = vld [vmem:[%s8315_s0 + $0x40] ss:$8 sps:$4 sm:$0xff]   ;;  %v5212_v25 = vld [vmem:[%s8315_s0 + $0x14] ss:$8 sps:$4 sm:$0xff]  }
 0x12a   :  { %8332 = vst [vmem:[#allocation16_spill] sm:$0xff] %v6255_v19  ;;  %4659 = vmatprep.mubr.msk.bf16.mxu1 %vm844_vm0, %v5208_v36  ;;  %4887 = vmatprep.mubr.msk.bf16.mxu0 %vm844_vm0, %v5211_v54 }
 0x12b   :  { %v1129_v21 = vpop.f32.mrf.mxu0  ;;  %v1385_v38 = vpop.f32.mrf.mxu1 }
 0x12c   :  { %v5214_v21 = vld [vmem:[%s8315_s0 + $0x54] ss:$8 sps:$4 sm:$0xff]  }
 0x12d   :  { %v6259_v60 = vpop.f32.mrf.mxu0  ;;  %v6261_v50 = vpop.f32.mrf.mxu1 }
 0x12e   :  { %8333 = vst [vmem:[#allocation17_spill] sm:$0xff] %v6261_v50 }
 0x12f   :  { %v1132_v38 = vpop.f32.mrf.mxu0  ;;  %v1388_v36 = vpop.f32.mrf.mxu1 }
 0x130   :  { %v5216_v38 = vld [vmem:[%s8315_s0 + $0x10] ss:$8 sps:$4 sm:$0xff]  }
 0x131   :  { %v6275_v54 = vpop.f32.mrf.mxu0  ;;  %v6277_v15 = vpop.f32.mrf.mxu1  ;;  %1711 = vmatmul.mubr.bf16.vlgmr.msra.gmra.mxu1 %v5206_v46  ;;  %3249 = vmatmul.mubr.bf16.vlgmr.msra.gmra.mxu0 %v5209_v5  ;;  %v5217_v36 = vld [vmem:[%s8315_s0 + $0x50] ss:$8 sps:$4 sm:$0xff]   ;;  %v5218_v46 = vld [vmem:[%s8315_s0 + $0x64] ss:$8 sps:$4 sm:$0xff]  }
 0x132   :  { %8334 = vst [vmem:[#allocation18_spill] sm:$0xff] %v6277_v15  ;;  %4660 = vmatprep.mubr.msk.bf16.mxu1 %vm844_vm0, %v5212_v25  ;;  %4888 = vmatprep.mubr.msk.bf16.mxu0 %vm844_vm0, %v5214_v21  ;;  %v5364_v21 = vld [vmem:[%s8315_s0 + $0x24] ss:$8 sps:$4 sm:$0xff]  }
 0x133   :  { %v1137_v50 = vpop.f32.mrf.mxu0  ;;  %v1393_v19 = vpop.f32.mrf.mxu1 }
 0x135   :  { %v6281_v34 = vpop.f32.mrf.mxu0  ;;  %v6283_v28 = vpop.f32.mrf.mxu1 }
 0x136   :  { %8335 = vst [vmem:[#allocation19_spill] sm:$0xff] %v6281_v34  ;;  %8336 = vst [vmem:[#allocation20_spill] sm:$0xff] %v6283_v28 }
 0x137   :  { %v1140_v5 = vpop.f32.mrf.mxu0  ;;  %v1396_v25 = vpop.f32.mrf.mxu1 }
 0x138   :  { %v5220_v25 = vld [vmem:[%s8315_s0 + $0x60] ss:$8 sps:$4 sm:$0xff]  }
 0x139   :  { %v6294_v50 = vpop.f32.mrf.mxu0  ;;  %v6296_v19 = vpop.f32.mrf.mxu1  ;;  %1719 = vmatmul.mubr.bf16.gmra.mxu1 %v5216_v38  ;;  %3257 = vmatmul.mubr.bf16.gmra.mxu0 %v5217_v36  ;;  %v5221_v38 = vld [vmem:[%s8315_s0 + $0x74] ss:$8 sps:$4 sm:$0xff]  }
 0x13a   :  { %8337 = vst [vmem:[#allocation21_spill] sm:$0xff] %v6294_v50  ;;  %8338 = vst [vmem:[#allocation22_spill] sm:$0xff] %v6296_v19  ;;  %4661 = vmatprep.mubr.msk.bf16.mxu1 %vm844_vm0, %v5364_v21  ;;  %4889 = vmatprep.mubr.msk.bf16.mxu0 %vm844_vm0, %v5218_v46 }
 0x13b   :  { %v1145_v28 = vpop.f32.mrf.mxu0  ;;  %v1401_v15 = vpop.f32.mrf.mxu1 }
 0x13c   :  { %v5365_v28 = vld [vmem:[%s8315_s0 + $0x20] ss:$8 sps:$4 sm:$0xff]   ;;  %v5366_v15 = vld [vmem:[%s8315_s0 + $0x34] ss:$8 sps:$4 sm:$0xff]  }
 0x13d   :  { %v6303_v34 = vpop.f32.mrf.mxu0  ;;  %v6305_v5 = vpop.f32.mrf.mxu1 }
 0x13e   :  { %8339 = vst [vmem:[#allocation23_spill] sm:$0xff] %v6303_v34  ;;  %8340 = vst [vmem:[#allocation24_spill] sm:$0xff] %v6305_v5 }
 0x13f   :  { %v1148_v36 = vpop.f32.mrf.mxu0  ;;  %v1404_v19 = vpop.f32.mrf.mxu1 }
 0x141   :  { %v6313_v50 = vpop.f32.mrf.mxu0  ;;  %v6315_v21 = vpop.f32.mrf.mxu1  ;;  %1727 = vmatmul.mubr.bf16.gmra.mxu1 %v5365_v28  ;;  %3265 = vmatmul.mubr.bf16.gmra.mxu0 %v5220_v25  ;;  %v5224_v25 = vld [vmem:[%s8315_s0 + $0x84] ss:$8 sps:$4 sm:$0xff]  }
 0x142   :  { %8341 = vst [vmem:[#allocation25_spill] sm:$0xff] %v6313_v50  ;;  %8342 = vst [vmem:[#allocation26_spill] sm:$0xff] %v6315_v21  ;;  %4662 = vmatprep.mubr.msk.bf16.mxu1 %vm844_vm0, %v5366_v15  ;;  %4890 = vmatprep.mubr.msk.bf16.mxu0 %vm844_vm0, %v5221_v38  ;;  %v5223_v21 = vld [vmem:[%s8315_s0 + $0x70] ss:$8 sps:$4 sm:$0xff]  }
 0x143   :  { %v1153_v46 = vpop.f32.mrf.mxu0  ;;  %v1409_v19 = vpop.f32.mrf.mxu1  ;;  %v5367_v38 = vld [vmem:[%s8315_s0 + $0x30] ss:$8 sps:$4 sm:$0xff]  }
 0x144   :  { %v5368_v46 = vld [vmem:[%s8315_s0 + $0x44] ss:$8 sps:$4 sm:$0xff]  }
 0x145   :  { %v6325_v36 = vpop.f32.mrf.mxu0  ;;  %v6327_v5 = vpop.f32.mrf.mxu1 }
 0x146   :  { %8343 = vst [vmem:[#allocation27_spill] sm:$0xff] %v6325_v36  ;;  %8344 = vst [vmem:[#allocation28_spill] sm:$0xff] %v6327_v5 }
 0x147   :  { %v1156_v28 = vpop.f32.mrf.mxu0  ;;  %v1412_v50 = vpop.f32.mrf.mxu1 }
 0x149   :  { %v6335_v34 = vpop.f32.mrf.mxu0  ;;  %v6337_v15 = vpop.f32.mrf.mxu1  ;;  %1735 = vmatmul.mubr.bf16.gmra.mxu1 %v5367_v38  ;;  %3273 = vmatmul.mubr.bf16.gmra.mxu0 %v5223_v21  ;;  %v5227_v21 = vld [vmem:[%s8315_s0 + $0x94] ss:$8 sps:$4 sm:$0xff]  }
 0x14a   :  { %8345 = vst [vmem:[#allocation29_spill] sm:$0xff] %v6335_v34  ;;  %8346 = vst [vmem:[#allocation30_spill] sm:$0xff] %v6337_v15  ;;  %4663 = vmatprep.mubr.msk.bf16.mxu1 %vm844_vm0, %v5368_v46  ;;  %4891 = vmatprep.mubr.msk.bf16.mxu0 %vm844_vm0, %v5224_v25  ;;  %v5226_v15 = vld [vmem:[%s8315_s0 + $0x80] ss:$8 sps:$4 sm:$0xff]  }
 0x14b   :  { %v1161_v19 = vpop.f32.mrf.mxu0  ;;  %v1417_v50 = vpop.f32.mrf.mxu1  ;;  %v5369_v25 = vld [vmem:[%s8315_s0 + $0x40] ss:$8 sps:$4 sm:$0xff]  }
 0x14c   :  { %v5370_v19 = vld [vmem:[%s8315_s0 + $0x54] ss:$8 sps:$4 sm:$0xff]  }
 0x14d   :  { %v6347_v28 = vpop.f32.mrf.mxu0  ;;  %v6349_v5 = vpop.f32.mrf.mxu1 }
 0x14e   :  { %8347 = vst [vmem:[#allocation31_spill] sm:$0xff] %v6347_v28  ;;  %8348 = vst [vmem:[#allocation32_spill] sm:$0xff] %v6349_v5 }
 0x14f   :  { %v1164_v38 = vpop.f32.mrf.mxu0  ;;  %v1420_v34 = vpop.f32.mrf.mxu1 }
 0x151   :  { %v6357_v36 = vpop.f32.mrf.mxu0  ;;  %v6359_v46 = vpop.f32.mrf.mxu1  ;;  %1743 = vmatmul.mubr.bf16.gmra.mxu1 %v5369_v25  ;;  %3281 = vmatmul.mubr.bf16.gmra.mxu0 %v5226_v15  ;;  %v5230_v15 = vld [vmem:[%s8315_s0 + $0xa4] ss:$8 sps:$4 sm:$0xff]  }
 0x152   :  { %8349 = vst [vmem:[#allocation33_spill] sm:$0xff] %v6357_v36  ;;  %8350 = vst [vmem:[#allocation34_spill] sm:$0xff] %v6359_v46  ;;  %4664 = vmatprep.mubr.msk.bf16.mxu1 %vm844_vm0, %v5370_v19  ;;  %4892 = vmatprep.mubr.msk.bf16.mxu0 %vm844_vm0, %v5227_v21  ;;  %v5229_v46 = vld [vmem:[%s8315_s0 + $0x90] ss:$8 sps:$4 sm:$0xff]  }
 0x153   :  { %v1169_v50 = vpop.f32.mrf.mxu0  ;;  %v1425_v34 = vpop.f32.mrf.mxu1  ;;  %v5371_v21 = vld [vmem:[%s8315_s0 + $0x50] ss:$8 sps:$4 sm:$0xff]  }
 0x154   :  { %v5372_v50 = vld [vmem:[%s8315_s0 + $0x64] ss:$8 sps:$4 sm:$0xff]  }
 0x155   :  { %v6369_v38 = vpop.f32.mrf.mxu0  ;;  %v6371_v5 = vpop.f32.mrf.mxu1 }
 0x156   :  { %8351 = vst [vmem:[#allocation35_spill] sm:$0xff] %v6369_v38  ;;  %8352 = vst [vmem:[#allocation36_spill] sm:$0xff] %v6371_v5 }
 0x157   :  { %v1172_v25 = vpop.f32.mrf.mxu0  ;;  %v1428_v36 = vpop.f32.mrf.mxu1 }
 0x159   :  { %v6379_v28 = vpop.f32.mrf.mxu0  ;;  %v6381_v19 = vpop.f32.mrf.mxu1  ;;  %1751 = vmatmul.mubr.bf16.gmra.mxu1 %v5371_v21  ;;  %3289 = vmatmul.mubr.bf16.gmra.mxu0 %v5229_v46  ;;  %v5233_v46 = vld [vmem:[%s8315_s0 + $0xb4] ss:$8 sps:$4 sm:$0xff]  }
 0x15a   :  { %8353 = vst [vmem:[#allocation37_spill] sm:$0xff] %v6379_v28  ;;  %8354 = vst [vmem:[#allocation38_spill] sm:$0xff] %v6381_v19  ;;  %4665 = vmatprep.mubr.msk.bf16.mxu1 %vm844_vm0, %v5372_v50  ;;  %4893 = vmatprep.mubr.msk.bf16.mxu0 %vm844_vm0, %v5230_v15  ;;  %v5232_v19 = vld [vmem:[%s8315_s0 + $0xa0] ss:$8 sps:$4 sm:$0xff]  }
 0x15b   :  { %v1177_v34 = vpop.f32.mrf.mxu0  ;;  %v1433_v36 = vpop.f32.mrf.mxu1  ;;  %v5373_v15 = vld [vmem:[%s8315_s0 + $0x60] ss:$8 sps:$4 sm:$0xff]  }
 0x15c   :  { %v5374_v34 = vld [vmem:[%s8315_s0 + $0x74] ss:$8 sps:$4 sm:$0xff]  }
 0x15d   :  { %v6391_v25 = vpop.f32.mrf.mxu0  ;;  %v6393_v5 = vpop.f32.mrf.mxu1 }
 0x15e   :  { %8355 = vst [vmem:[#allocation39_spill] sm:$0xff] %v6391_v25  ;;  %8356 = vst [vmem:[#allocation40_spill] sm:$0xff] %v6393_v5 }
 0x15f   :  { %v1180_v21 = vpop.f32.mrf.mxu0  ;;  %v1436_v28 = vpop.f32.mrf.mxu1 }
 0x161   :  { %v6401_v38 = vpop.f32.mrf.mxu0  ;;  %v6403_v50 = vpop.f32.mrf.mxu1  ;;  %1759 = vmatmul.mubr.bf16.gmra.mxu1 %v5373_v15  ;;  %3297 = vmatmul.mubr.bf16.gmra.mxu0 %v5232_v19  ;;  %v5236_v19 = vld [vmem:[%s8315_s0 + $0xc4] ss:$8 sps:$4 sm:$0xff]  }
 0x162   :  { %8357 = vst [vmem:[#allocation41_spill] sm:$0xff] %v6401_v38  ;;  %8358 = vst [vmem:[#allocation42_spill] sm:$0xff] %v6403_v50  ;;  %4666 = vmatprep.mubr.msk.bf16.mxu1 %vm844_vm0, %v5374_v34  ;;  %4894 = vmatprep.mubr.msk.bf16.mxu0 %vm844_vm0, %v5233_v46  ;;  %v5235_v50 = vld [vmem:[%s8315_s0 + $0xb0] ss:$8 sps:$4 sm:$0xff]  }
 0x163   :  { %v1185_v36 = vpop.f32.mrf.mxu0  ;;  %v1441_v28 = vpop.f32.mrf.mxu1  ;;  %v5375_v46 = vld [vmem:[%s8315_s0 + $0x70] ss:$8 sps:$4 sm:$0xff]  }
 0x164   :  { %v5376_v36 = vld [vmem:[%s8315_s0 + $0x84] ss:$8 sps:$4 sm:$0xff]  }
 0x165   :  { %v6413_v21 = vpop.f32.mrf.mxu0  ;;  %v6415_v5 = vpop.f32.mrf.mxu1 }
 0x166   :  { %8359 = vst [vmem:[#allocation43_spill] sm:$0xff] %v6413_v21  ;;  %8360 = vst [vmem:[#allocation44_spill] sm:$0xff] %v6415_v5 }
 0x167   :  { %v1188_v15 = vpop.f32.mrf.mxu0  ;;  %v1444_v38 = vpop.f32.mrf.mxu1 }
 0x169   :  { %v6423_v25 = vpop.f32.mrf.mxu0  ;;  %v6425_v34 = vpop.f32.mrf.mxu1  ;;  %1767 = vmatmul.mubr.bf16.gmra.mxu1 %v5375_v46  ;;  %3305 = vmatmul.mubr.bf16.gmra.mxu0 %v5235_v50  ;;  %v5239_v50 = vld [vmem:[%s8315_s0 + $0xd4] ss:$8 sps:$4 sm:$0xff]  }
 0x16a   :  { %8361 = vst [vmem:[#allocation45_spill] sm:$0xff] %v6423_v25  ;;  %8362 = vst [vmem:[#allocation46_spill] sm:$0xff] %v6425_v34  ;;  %4667 = vmatprep.mubr.msk.bf16.mxu1 %vm844_vm0, %v5376_v36  ;;  %4895 = vmatprep.mubr.msk.bf16.mxu0 %vm844_vm0, %v5236_v19  ;;  %v5238_v34 = vld [vmem:[%s8315_s0 + $0xc0] ss:$8 sps:$4 sm:$0xff]  }
 0x16b   :  { %v1193_v28 = vpop.f32.mrf.mxu0  ;;  %v1449_v38 = vpop.f32.mrf.mxu1 }
 0x16d   :  { %v6435_v15 = vpop.f32.mrf.mxu0  ;;  %v6437_v5 = vpop.f32.mrf.mxu1 }
 0x16e   :  { %8363 = vst [vmem:[#allocation47_spill] sm:$0xff] %v6437_v5 }
 0x16f   :  { %v1196_v46 = vpop.f32.mrf.mxu0  ;;  %v1452_v25 = vpop.f32.mrf.mxu1 }
 0x170   :  { %v5241_v25 = vld [vmem:[%s8315_s0 + $0xd0] ss:$8 sps:$4 sm:$0xff]  }
 0x171   :  { %v6445_v21 = vpop.f32.mrf.mxu0  ;;  %v6447_v36 = vpop.f32.mrf.mxu1  ;;  %1775 = vmatmul.mubr.bf16.gmra.mxu1 %v5706_v57  ;;  %3313 = vmatmul.mubr.bf16.gmra.mxu0 %v5238_v34  ;;  %v5242_v57 = vld [vmem:[%s8315_s0 + $0xe4] ss:$8 sps:$4 sm:$0xff]  }
 0x172   :  { %8364 = vst [vmem:[#allocation48_spill] sm:$0xff] %v6447_v36  ;;  %4668 = vmatprep.mubr.msk.bf16.mxu1 %vm844_vm0, %v5714_v59  ;;  %4896 = vmatprep.mubr.msk.bf16.mxu0 %vm844_vm0, %v5239_v50 }
 0x173   :  { %v1201_v19 = vpop.f32.mrf.mxu0  ;;  %v1457_v28 = vpop.f32.mrf.mxu1 }
 0x175   :  { %v6453_v38 = vpop.f32.mrf.mxu0  ;;  %v6455_v5 = vpop.f32.mrf.mxu1 }
 0x176   :  { %8365 = vst [vmem:[#allocation49_spill] sm:$0xff] %v6455_v5 }
 0x177   :  { %v1204_v34 = vpop.f32.mrf.mxu0  ;;  %v1460_v46 = vpop.f32.mrf.mxu1 }
 0x178   :  { %v5244_v34 = vld [vmem:[%s8315_s0 + $0xe0] ss:$8 sps:$4 sm:$0xff]  }
 0x179   :  { %v6463_v36 = vpop.f32.mrf.mxu0  ;;  %v6465_v59 = vpop.f32.mrf.mxu1  ;;  %1783 = vmatmul.mubr.bf16.gmra.mxu1 %v5728_v61  ;;  %3321 = vmatmul.mubr.bf16.gmra.mxu0 %v5241_v25  ;;  %v5245_v61 = vld [vmem:[%s8315_s0 + $0xf4] ss:$8 sps:$4 sm:$0xff]  }
 0x17a   :  { %8366 = vst [vmem:[#allocation50_spill] sm:$0xff] %v6465_v59  ;;  %4669 = vmatprep.mubr.msk.bf16.mxu1 %vm844_vm0, %v5736_v63  ;;  %4897 = vmatprep.mubr.msk.bf16.mxu0 %vm844_vm0, %v5242_v57 }
 0x17b   :  { %v1209_v50 = vpop.f32.mrf.mxu0  ;;  %v1465_v19 = vpop.f32.mrf.mxu1 }
 0x17d   :  { %v6471_v28 = vpop.f32.mrf.mxu0  ;;  %v6473_v5 = vpop.f32.mrf.mxu1 }
 0x17e   :  { %8367 = vst [vmem:[#allocation51_spill] sm:$0xff] %v6473_v5 }
 0x17f   :  { %v1212_v25 = vpop.f32.mrf.mxu0  ;;  %v1468_v46 = vpop.f32.mrf.mxu1 }
 0x180   :  { %v5247_v25 = vld [vmem:[%s8315_s0 + $0xf0] ss:$8 sps:$4 sm:$0xff]  }
 0x181   :  { %v6481_v59 = vpop.f32.mrf.mxu0  ;;  %v6483_v63 = vpop.f32.mrf.mxu1  ;;  %1791 = vmatmul.mubr.bf16.gmra.mxu1 %v5748_v2  ;;  %3329 = vmatmul.mubr.bf16.gmra.mxu0 %v5244_v34  ;;  %v5248_v2 = vld [vmem:[%s8315_s0 + $0x104] ss:$8 sps:$4 sm:$0xff]  }
 0x182   :  { %8368 = vst [vmem:[#allocation52_spill] sm:$0xff] %v6483_v63  ;;  %4670 = vmatprep.mubr.msk.bf16.mxu1 %vm844_vm0, %v5756_v4  ;;  %4898 = vmatprep.mubr.msk.bf16.mxu0 %vm844_vm0, %v5245_v61 }
 0x183   :  { %v1217_v57 = vpop.f32.mrf.mxu0  ;;  %v1473_v50 = vpop.f32.mrf.mxu1 }
 0x185   :  { %v6489_v19 = vpop.f32.mrf.mxu0  ;;  %v6491_v5 = vpop.f32.mrf.mxu1 }
 0x186   :  { %8369 = vst [vmem:[#allocation53_spill] sm:$0xff] %v6491_v5 }
 0x187   :  { %v1220_v34 = vpop.f32.mrf.mxu0  ;;  %v1476_v46 = vpop.f32.mrf.mxu1 }
 0x188   :  { %v5250_v34 = vld [vmem:[%s8315_s0 + $0x100] ss:$8 sps:$4 sm:$0xff]  }
 0x189   :  { %v6499_v63 = vpop.f32.mrf.mxu0  ;;  %v6501_v4 = vpop.f32.mrf.mxu1  ;;  %1799 = vmatmul.mubr.bf16.gmra.mxu1 %v5771_v7  ;;  %3337 = vmatmul.mubr.bf16.gmra.mxu0 %v5247_v25  ;;  %v5251_v7 = vld [vmem:[%s8315_s0 + $0x114] ss:$8 sps:$4 sm:$0xff]  }
 0x18a   :  { %8370 = vst [vmem:[#allocation54_spill] sm:$0xff] %v6501_v4  ;;  %4671 = vmatprep.mubr.msk.bf16.mxu1 %vm844_vm0, %v5783_v10  ;;  %4899 = vmatprep.mubr.msk.bf16.mxu0 %vm844_vm0, %v5248_v2 }
 0x18b   :  { %v1225_v61 = vpop.f32.mrf.mxu0  ;;  %v1481_v57 = vpop.f32.mrf.mxu1 }
 0x18d   :  { %v6507_v50 = vpop.f32.mrf.mxu0  ;;  %v6509_v5 = vpop.f32.mrf.mxu1 }
 0x18e   :  { %8371 = vst [vmem:[#allocation55_spill] sm:$0xff] %v6509_v5 }
 0x18f   :  { %v1228_v25 = vpop.f32.mrf.mxu0  ;;  %v1484_v46 = vpop.f32.mrf.mxu1 }
 0x190   :  { %v5253_v25 = vld [vmem:[%s8315_s0 + $0x110] ss:$8 sps:$4 sm:$0xff]  }
 0x191   :  { %v6517_v4 = vpop.f32.mrf.mxu0  ;;  %v6519_v10 = vpop.f32.mrf.mxu1  ;;  %1807 = vmatmul.mubr.bf16.gmra.mxu1 %v5796_v12  ;;  %3345 = vmatmul.mubr.bf16.gmra.mxu0 %v5250_v34  ;;  %v5254_v12 = vld [vmem:[%s8315_s0 + $0x124] ss:$8 sps:$4 sm:$0xff]  }
 0x192   :  { %8372 = vst [vmem:[#allocation56_spill] sm:$0xff] %v6519_v10  ;;  %4672 = vmatprep.mubr.msk.bf16.mxu1 %vm844_vm0, %v5804_v14  ;;  %4900 = vmatprep.mubr.msk.bf16.mxu0 %vm844_vm0, %v5251_v7 }
 0x193   :  { %v1233_v2 = vpop.f32.mrf.mxu0  ;;  %v1489_v61 = vpop.f32.mrf.mxu1 }
 0x195   :  { %v6525_v57 = vpop.f32.mrf.mxu0  ;;  %v6527_v5 = vpop.f32.mrf.mxu1 }
 0x196   :  { %8373 = vst [vmem:[#allocation57_spill] sm:$0xff] %v6527_v5 }
 0x197   :  { %v1236_v34 = vpop.f32.mrf.mxu0  ;;  %v1492_v46 = vpop.f32.mrf.mxu1 }
 0x198   :  { %v5256_v34 = vld [vmem:[%s8315_s0 + $0x120] ss:$8 sps:$4 sm:$0xff]  }
 0x199   :  { %v6535_v10 = vpop.f32.mrf.mxu0  ;;  %v6537_v14 = vpop.f32.mrf.mxu1  ;;  %1815 = vmatmul.mubr.bf16.gmra.mxu1 %v5816_v16  ;;  %3353 = vmatmul.mubr.bf16.gmra.mxu0 %v5253_v25  ;;  %v5257_v16 = vld [vmem:[%s8315_s0 + $0x134] ss:$8 sps:$4 sm:$0xff]  }
 0x19a   :  { %8374 = vst [vmem:[#allocation58_spill] sm:$0xff] %v6537_v14  ;;  %4673 = vmatprep.mubr.msk.bf16.mxu1 %vm844_vm0, %v5824_v18  ;;  %4901 = vmatprep.mubr.msk.bf16.mxu0 %vm844_vm0, %v5254_v12 }
 0x19b   :  { %v1241_v7 = vpop.f32.mrf.mxu0  ;;  %v1497_v2 = vpop.f32.mrf.mxu1 }
 0x19d   :  { %v6543_v61 = vpop.f32.mrf.mxu0  ;;  %v6545_v5 = vpop.f32.mrf.mxu1 }
 0x19e   :  { %8375 = vst [vmem:[#allocation59_spill] sm:$0xff] %v6545_v5 }
 0x19f   :  { %v1244_v25 = vpop.f32.mrf.mxu0  ;;  %v1500_v46 = vpop.f32.mrf.mxu1 }
 0x1a0   :  { %v5259_v25 = vld [vmem:[%s8315_s0 + $0x130] ss:$8 sps:$4 sm:$0xff]  }
 0x1a1   :  { %v6553_v14 = vpop.f32.mrf.mxu0  ;;  %v6555_v18 = vpop.f32.mrf.mxu1  ;;  %1823 = vmatmul.mubr.bf16.gmra.mxu1 %v5844_v22  ;;  %3361 = vmatmul.mubr.bf16.gmra.mxu0 %v5256_v34  ;;  %v5260_v22 = vld [vmem:[%s8315_s0 + $0x144] ss:$8 sps:$4 sm:$0xff]  }
 0x1a2   :  { %8376 = vst [vmem:[#allocation60_spill] sm:$0xff] %v6555_v18  ;;  %4674 = vmatprep.mubr.msk.bf16.mxu1 %vm844_vm0, %v5852_v24  ;;  %4902 = vmatprep.mubr.msk.bf16.mxu0 %vm844_vm0, %v5257_v16 }
 0x1a3   :  { %v1249_v12 = vpop.f32.mrf.mxu0  ;;  %v1505_v7 = vpop.f32.mrf.mxu1 }
 0x1a5   :  { %v6561_v2 = vpop.f32.mrf.mxu0  ;;  %v6563_v5 = vpop.f32.mrf.mxu1 }
 0x1a6   :  { %8377 = vst [vmem:[#allocation61_spill] sm:$0xff] %v6563_v5 }
 0x1a7   :  { %v1252_v34 = vpop.f32.mrf.mxu0  ;;  %v1508_v46 = vpop.f32.mrf.mxu1 }
 0x1a8   :  { %v5262_v34 = vld [vmem:[%s8315_s0 + $0x140] ss:$8 sps:$4 sm:$0xff]  }
 0x1a9   :  { %v6571_v18 = vpop.f32.mrf.mxu0  ;;  %v6573_v24 = vpop.f32.mrf.mxu1  ;;  %1831 = vmatmul.mubr.bf16.gmra.mxu1 %v5864_v0  ;;  %3369 = vmatmul.mubr.bf16.gmra.mxu0 %v5259_v25  ;;  %v5263_v0 = vld [vmem:[%s8315_s0 + $0x154] ss:$8 sps:$4 sm:$0xff]  }
 0x1aa   :  { %8378 = vst [vmem:[#allocation62_spill] sm:$0xff] %v6573_v24  ;;  %4675 = vmatprep.mubr.msk.bf16.mxu1 %vm844_vm0, %v5872_v27  ;;  %4903 = vmatprep.mubr.msk.bf16.mxu0 %vm844_vm0, %v5260_v22 }
 0x1ab   :  { %v1257_v16 = vpop.f32.mrf.mxu0  ;;  %v1513_v12 = vpop.f32.mrf.mxu1 }
 0x1ad   :  { %v6579_v7 = vpop.f32.mrf.mxu0  ;;  %v6581_v5 = vpop.f32.mrf.mxu1 }
 0x1ae   :  { %8379 = vst [vmem:[#allocation63_spill] sm:$0xff] %v6581_v5 }
 0x1af   :  { %v1260_v25 = vpop.f32.mrf.mxu0  ;;  %v1516_v46 = vpop.f32.mrf.mxu1 }
 0x1b0   :  { %v5265_v25 = vld [vmem:[%s8315_s0 + $0x150] ss:$8 sps:$4 sm:$0xff]  }
 0x1b1   :  { %v6589_v24 = vpop.f32.mrf.mxu0  ;;  %v6591_v27 = vpop.f32.mrf.mxu1  ;;  %1839 = vmatmul.mubr.bf16.gmra.mxu1 %v5884_v29  ;;  %3377 = vmatmul.mubr.bf16.gmra.mxu0 %v5262_v34  ;;  %v5266_v29 = vld [vmem:[%s8315_s0 + $0x164] ss:$8 sps:$4 sm:$0xff]  }
 0x1b2   :  { %8380 = vst [vmem:[#allocation64_spill] sm:$0xff] %v6591_v27  ;;  %4676 = vmatprep.mubr.msk.bf16.mxu1 %vm844_vm0, %v5895_v32  ;;  %4904 = vmatprep.mubr.msk.bf16.mxu0 %vm844_vm0, %v5263_v0 }
 0x1b3   :  { %v1265_v22 = vpop.f32.mrf.mxu0  ;;  %v1521_v16 = vpop.f32.mrf.mxu1 }
 0x1b5   :  { %v6597_v12 = vpop.f32.mrf.mxu0  ;;  %v6599_v5 = vpop.f32.mrf.mxu1 }
 0x1b6   :  { %8381 = vst [vmem:[#allocation65_spill] sm:$0xff] %v6599_v5 }
 0x1b7   :  { %v1268_v34 = vpop.f32.mrf.mxu0  ;;  %v1524_v46 = vpop.f32.mrf.mxu1 }
 0x1b8   :  { %v5268_v34 = vld [vmem:[%s8315_s0 + $0x160] ss:$8 sps:$4 sm:$0xff]  }
 0x1b9   :  { %v6607_v27 = vpop.f32.mrf.mxu0  ;;  %v6609_v32 = vpop.f32.mrf.mxu1  ;;  %1847 = vmatmul.mubr.bf16.gmra.mxu1 %v5910_v35  ;;  %3385 = vmatmul.mubr.bf16.gmra.mxu0 %v5265_v25  ;;  %v5269_v35 = vld [vmem:[%s8315_s0 + $0x174] ss:$8 sps:$4 sm:$0xff]  }
 0x1ba   :  { %8382 = vst [vmem:[#allocation66_spill] sm:$0xff] %v6609_v32  ;;  %4677 = vmatprep.mubr.msk.bf16.mxu1 %vm844_vm0, %v5918_v37  ;;  %4905 = vmatprep.mubr.msk.bf16.mxu0 %vm844_vm0, %v5266_v29 }
 0x1bb   :  { %v1273_v0 = vpop.f32.mrf.mxu0  ;;  %v1529_v22 = vpop.f32.mrf.mxu1 }
 0x1bd   :  { %v6615_v16 = vpop.f32.mrf.mxu0  ;;  %v6617_v5 = vpop.f32.mrf.mxu1 }
 0x1be   :  { %8383 = vst [vmem:[#allocation67_spill] sm:$0xff] %v6617_v5 }
 0x1bf   :  { %v1276_v25 = vpop.f32.mrf.mxu0  ;;  %v1532_v46 = vpop.f32.mrf.mxu1 }
 0x1c0   :  { %v5271_v25 = vld [vmem:[%s8315_s0 + $0x170] ss:$8 sps:$4 sm:$0xff]  }
 0x1c1   :  { %v6625_v32 = vpop.f32.mrf.mxu0  ;;  %v6627_v37 = vpop.f32.mrf.mxu1  ;;  %1855 = vmatmul.mubr.bf16.gmra.mxu1 %v5930_v39  ;;  %3393 = vmatmul.mubr.bf16.gmra.mxu0 %v5268_v34  ;;  %v5272_v39 = vld [vmem:[%s8315_s0 + $0x184] ss:$8 sps:$4 sm:$0xff]  }
 0x1c2   :  { %8384 = vst [vmem:[#allocation68_spill] sm:$0xff] %v6627_v37  ;;  %4678 = vmatprep.mubr.msk.bf16.mxu1 %vm844_vm0, %v5938_v41  ;;  %4906 = vmatprep.mubr.msk.bf16.mxu0 %vm844_vm0, %v5269_v35 }
 0x1c3   :  { %v1281_v29 = vpop.f32.mrf.mxu0  ;;  %v1537_v0 = vpop.f32.mrf.mxu1 }
 0x1c5   :  { %v6633_v22 = vpop.f32.mrf.mxu0  ;;  %v6635_v5 = vpop.f32.mrf.mxu1 }
 0x1c6   :  { %8385 = vst [vmem:[#allocation69_spill] sm:$0xff] %v6635_v5 }
 0x1c7   :  { %v1284_v34 = vpop.f32.mrf.mxu0  ;;  %v1540_v46 = vpop.f32.mrf.mxu1 }
 0x1c8   :  { %v5274_v34 = vld [vmem:[%s8315_s0 + $0x180] ss:$8 sps:$4 sm:$0xff]  }
 0x1c9   :  { %v6643_v37 = vpop.f32.mrf.mxu0  ;;  %v6645_v41 = vpop.f32.mrf.mxu1  ;;  %1863 = vmatmul.mubr.bf16.gmra.mxu1 %v5950_v43  ;;  %3401 = vmatmul.mubr.bf16.gmra.mxu0 %v5271_v25  ;;  %v5275_v43 = vld [vmem:[%s8315_s0 + $0x194] ss:$8 sps:$4 sm:$0xff]  }
 0x1ca   :  { %8386 = vst [vmem:[#allocation70_spill] sm:$0xff] %v6645_v41  ;;  %4679 = vmatprep.mubr.msk.bf16.mxu1 %vm844_vm0, %v5958_v45  ;;  %4907 = vmatprep.mubr.msk.bf16.mxu0 %vm844_vm0, %v5272_v39 }
 0x1cb   :  { %v1289_v35 = vpop.f32.mrf.mxu0  ;;  %v1545_v29 = vpop.f32.mrf.mxu1 }
 0x1cd   :  { %v6651_v0 = vpop.f32.mrf.mxu0  ;;  %v6653_v5 = vpop.f32.mrf.mxu1 }
 0x1ce   :  { %8387 = vst [vmem:[#allocation71_spill] sm:$0xff] %v6653_v5 }
 0x1cf   :  { %v1292_v25 = vpop.f32.mrf.mxu0  ;;  %v1548_v46 = vpop.f32.mrf.mxu1 }
 0x1d0   :  { %v5277_v25 = vld [vmem:[%s8315_s0 + $0x190] ss:$8 sps:$4 sm:$0xff]  }
 0x1d1   :  { %v6661_v41 = vpop.f32.mrf.mxu0  ;;  %v6663_v45 = vpop.f32.mrf.mxu1  ;;  %1871 = vmatmul.mubr.bf16.gmra.mxu1 %v5970_v47  ;;  %3409 = vmatmul.mubr.bf16.gmra.mxu0 %v5274_v34  ;;  %v5278_v47 = vld [vmem:[%s8315_s0 + $0x1a4] ss:$8 sps:$4 sm:$0xff]  }
 0x1d2   :  { %8388 = vst [vmem:[#allocation72_spill] sm:$0xff] %v6663_v45  ;;  %4680 = vmatprep.mubr.msk.bf16.mxu1 %vm844_vm0, %v5978_v49  ;;  %4908 = vmatprep.mubr.msk.bf16.mxu0 %vm844_vm0, %v5275_v43 }
 0x1d3   :  { %v1297_v39 = vpop.f32.mrf.mxu0  ;;  %v1553_v35 = vpop.f32.mrf.mxu1 }
 0x1d5   :  { %v6669_v29 = vpop.f32.mrf.mxu0  ;;  %v6671_v5 = vpop.f32.mrf.mxu1 }
 0x1d6   :  { %8389 = vst [vmem:[#allocation73_spill] sm:$0xff] %v6671_v5 }
 0x1d7   :  { %v1300_v34 = vpop.f32.mrf.mxu0  ;;  %v1556_v46 = vpop.f32.mrf.mxu1 }
 0x1d8   :  { %v5280_v34 = vld [vmem:[%s8315_s0 + $0x1a0] ss:$8 sps:$4 sm:$0xff]  }
 0x1d9   :  { %v6679_v45 = vpop.f32.mrf.mxu0  ;;  %v6681_v49 = vpop.f32.mrf.mxu1  ;;  %1879 = vmatmul.mubr.bf16.gmra.mxu1 %v5990_v51  ;;  %3417 = vmatmul.mubr.bf16.gmra.mxu0 %v5277_v25  ;;  %v5281_v51 = vld [vmem:[%s8315_s0 + $0x1b4] ss:$8 sps:$4 sm:$0xff]  }
 0x1da   :  { %8390 = vst [vmem:[#allocation74_spill] sm:$0xff] %v6681_v49  ;;  %4681 = vmatprep.mubr.msk.bf16.mxu1 %vm844_vm0, %v5998_v53  ;;  %4909 = vmatprep.mubr.msk.bf16.mxu0 %vm844_vm0, %v5278_v47 }
 0x1db   :  { %v1305_v43 = vpop.f32.mrf.mxu0  ;;  %v1561_v39 = vpop.f32.mrf.mxu1 }
 0x1dd   :  { %v6687_v35 = vpop.f32.mrf.mxu0  ;;  %v6689_v5 = vpop.f32.mrf.mxu1 }
 0x1de   :  { %8391 = vst [vmem:[#allocation75_spill] sm:$0xff] %v6687_v35  ;;  %8392 = vst [vmem:[#allocation76_spill] sm:$0xff] %v6689_v5 }
 0x1df   :  { %v1308_v25 = vpop.f32.mrf.mxu0  ;;  %v1564_v46 = vpop.f32.mrf.mxu1 }
 0x1e0   :  { %v5283_v25 = vld [vmem:[%s8315_s0 + $0x1b0] ss:$8 sps:$4 sm:$0xff]  }
 0x1e1   :  { %v6697_v49 = vpop.f32.mrf.mxu0  ;;  %v6699_v53 = vpop.f32.mrf.mxu1  ;;  %1887 = vmatmul.mubr.bf16.gmra.mxu1 %v6010_v55  ;;  %3425 = vmatmul.mubr.bf16.gmra.mxu0 %v5280_v34  ;;  %v5284_v55 = vld [vmem:[%s8315_s0 + $0x1c4] ss:$8 sps:$4 sm:$0xff]  }
 0x1e2   :  { %8393 = vst [vmem:[#allocation77_spill] sm:$0xff] %v6697_v49  ;;  %8394 = vst [vmem:[#allocation78_spill] sm:$0xff] %v6699_v53  ;;  %4682 = vmatprep.mubr.msk.bf16.mxu1 %vm844_vm0, %v6018_v58  ;;  %4910 = vmatprep.mubr.msk.bf16.mxu0 %vm844_vm0, %v5281_v51  ;;  %v2271_v51 = vld [vmem:[%s8315_s0 + $0x1c0] sm:$0xff] }
 0x1e3   :  { %v1313_v47 = vpop.f32.mrf.mxu0  ;;  %v1569_v43 = vpop.f32.mrf.mxu1 }
 0x1e4   :  { %v2272_v47 = vld [vmem:[%s8315_s0 + $0x1c8] sm:$0xff] }
 0x1e5   :  { %v6705_v39 = vpop.f32.mrf.mxu0  ;;  %v6707_v5 = vpop.f32.mrf.mxu1 }
 0x1e6   :  { %8395 = vst [vmem:[#allocation79_spill] sm:$0xff] %v6705_v39  ;;  %8396 = vst [vmem:[#allocation80_spill] sm:$0xff] %v6707_v5 }
 0x1e7   :  { %v1316_v34 = vpop.f32.mrf.mxu0  ;;  %v1572_v46 = vpop.f32.mrf.mxu1 }
 0x1e9   :  { %v6715_v53 = vpop.f32.mrf.mxu0  ;;  %v6717_v58 = vpop.f32.mrf.mxu1  ;;  %1895 = vmatmul.mubr.bf16.gmra.mxu1 %v6030_v62  ;;  %3433 = vmatmul.mubr.bf16.gmra.mxu0 %v5283_v25  ;;  %v4795_v62 = vcombine.low %v2271_v51, %v2272_v47  ;;  %v2273_v51 = vld [vmem:[%s8315_s0 + $0x1d0] sm:$0xff]  ;;  %v2274_v47 = vld [vmem:[%s8315_s0 + $0x1d8] sm:$0xff] }
 0x1ea   :  { %8397 = vst [vmem:[#allocation81_spill] sm:$0xff] %v6715_v53  ;;  %8398 = vst [vmem:[#allocation82_spill] sm:$0xff] %v6717_v58  ;;  %4683 = vmatprep.mubr.msk.bf16.mxu1 %vm844_vm0, %v6038_v3  ;;  %4911 = vmatprep.mubr.msk.bf16.mxu0 %vm844_vm0, %v5284_v55  ;;  %v5286_v3 = vld [vmem:[%s8315_s0 + $0x1d4] ss:$8 sps:$4 sm:$0xff]  }
 0x1eb   :  { %v1321_v43 = vpop.f32.mrf.mxu0  ;;  %v1577_v34 = vpop.f32.mrf.mxu1 }
 0x1ed   :  { %v6729_v46 = vpop.f32.mrf.mxu0  ;;  %v6731_v58 = vpop.f32.mrf.mxu1 }
 0x1ee   :  { %8399 = vst [vmem:[#allocation83_spill] sm:$0xff] %v6729_v46  ;;  %8400 = vst [vmem:[#allocation84_spill] sm:$0xff] %v6731_v58  ;;  %v5288_v58 = vld [vmem:[%s8315_s0 + $0x1e4] ss:$8 sps:$4 sm:$0xff]  }
 0x1ef   :  { %v1324_v25 = vpop.f32.mrf.mxu0  ;;  %v1580_v5 = vpop.f32.mrf.mxu1 }
 0x1f1   :  { %v1712_v53 = vpop.f32.mrf.mxu1  ;;  %1903 = vmatmul.mubr.bf16.gmra.mxu1 %v6050_v6  ;;  %v3250_v39 = vpop.f32.mrf.mxu0  ;;  %3441 = vmatmul.mubr.bf16.gmra.mxu0 %v4795_v62  ;;  %v6750_v6 = vld [vmem:[%s8316_s2] ss:$0 sm:$0xff]  ;;  %v4797_v62 = vcombine.low %v2273_v51, %v2274_v47 }
 0x1f2   :  { %v1713_v55 = vadd.f32 %v1712_v53, %v6099_v26  ;;  %4684 = vmatprep.mubr.msk.bf16.mxu1 %vm844_vm0, %v6058_v9  ;;  %4912 = vmatprep.mubr.msk.bf16.mxu0 %vm844_vm0, %v5286_v3  ;;  %v6755_v9 = vld [vmem:[%s8316_s2 + $0x1] ss:$0 sm:$0xff] }
 0x1f3   :  { %v1714_v5 = vpop.f32.mrf.mxu1  ;;  %v3252_v26 = vpop.f32.mrf.mxu0 }
 0x1f4   :  { %v3761_v53 = vadd.f32 %v3250_v39, %v1713_v55 }
 0x1f5   :  { %v1715_v43 = vpop.f32.mrf.mxu1  ;;  %v3253_v34 = vpop.f32.mrf.mxu0 }
 0x1f6   :  { %v3894_v25 = vmul.f32 %v6750_v6, %v3761_v53  ;;  %v1716_v3 = vadd.f32 %v1715_v43, %v6105_v33  ;;  %v2275_v33 = vld [vmem:[%s8315_s0 + $0x1e0] sm:$0xff] }
 0x1f7   :  { %v1717_v46 = vpop.f32.mrf.mxu1  ;;  %v3255_v5 = vpop.f32.mrf.mxu0 }
 0x1f8   :  { %v4027_v39 = vadd.f32 %v6755_v9, %v3894_v25  ;;  %v3762_v55 = vadd.f32 %v3253_v34, %v1716_v3  ;;  %v2276_v46 = vld [vmem:[%s8315_s0 + $0x1e8] sm:$0xff] }
 0x1f9   :  { %v1720_v26 = vpop.f32.mrf.mxu1  ;;  %1911 = vmatmul.mubr.bf16.gmra.mxu1 %v6070_v13  ;;  %v3258_v49 = vpop.f32.mrf.mxu0  ;;  %3449 = vmatmul.mubr.bf16.gmra.mxu0 %v4797_v62  ;;  %v4799_v62 = vcombine.low %v2275_v33, %v2276_v46 }
 0x1fa   :  { %v4155_v35 = vmax.f32 %v4027_v39, 0.0  ;;  %v3895_v51 = vmul.f32 %v6750_v6, %v3762_v55  ;;  %v1721_v47 = vadd.f32 %v1720_v26, %v6121_v48  ;;  %4685 = vmatprep.mubr.msk.bf16.mxu1 %vm844_vm0, %v6078_v17  ;;  %4913 = vmatprep.mubr.msk.bf16.mxu0 %vm844_vm0, %v5288_v58  ;;  %v5290_v58 = vld [vmem:[%s8315_s0 + $0x1f4] ss:$8 sps:$4 sm:$0xff]  }
 0x1fb   :  { %v1722_v13 = vpop.f32.mrf.mxu1  ;;  %v3260_v53 = vpop.f32.mrf.mxu0 }
 0x1fc   :  { %4283 = vst.msk [vmem:[%s8317_s3] sm:$0xff] %vm844_vm0, %v4155_v35  ;;  %v4028_v48 = vadd.f32 %v6755_v9, %v3895_v51  ;;  %v3763_v17 = vadd.f32 %v3258_v49, %v1721_v47  ;;  %v5377_v51 = vld [vmem:[%s8315_s0 + $0x1a0] ss:$8 sps:$4 sm:$0xff]   ;;  %v5378_v13 = vld [vmem:[%s8315_s0 + $0x1b4] ss:$8 sps:$4 sm:$0xff]  }
 0x1fd   :  { %v1723_v43 = vpop.f32.mrf.mxu1  ;;  %v3261_v34 = vpop.f32.mrf.mxu0  ;;  %v2277_v53 = vld [vmem:[%s8315_s0 + $0x1f0] sm:$0xff] }
 0x1fe   :  { %v4156_v25 = vmax.f32 %v4028_v48, 0.0  ;;  %v3896_v3 = vmul.f32 %v6750_v6, %v3763_v17  ;;  %v1724_v5 = vadd.f32 %v1723_v43, %v6127_v56  ;;  %v2278_v48 = vld [vmem:[%s8315_s0 + $0x1f8] sm:$0xff] }
 0x1ff   :  { %v1725_v39 = vpop.f32.mrf.mxu1  ;;  %v3263_v55 = vpop.f32.mrf.mxu0 }
 0x200   :  { %4284 = vst.msk [vmem:[%s8317_s3 + $0x8] sm:$0xff] %vm844_vm0, %v4156_v25  ;;  %v4029_v49 = vadd.f32 %v6755_v9, %v3896_v3  ;;  %v3764_v35 = vadd.f32 %v3261_v34, %v1724_v5  ;;  %v4801_v3 = vcombine.low %v2277_v53, %v2278_v48  ;;  %v5380_v53 = vld [vmem:[%s8315_s0 + $0x1c4] ss:$8 sps:$4 sm:$0xff]  }
 0x201   :  { %v1728_v26 = vpop.f32.mrf.mxu1  ;;  %1919 = vmatmul.mubr.bf16.gmra.mxu1 %v5377_v51  ;;  %v3266_v56 = vpop.f32.mrf.mxu0  ;;  %3457 = vmatmul.mubr.bf16.gmra.mxu0 %v4799_v62  ;;  %v2279_v48 = vld [vmem:[%s8315_s0 + $0x200] sm:$0xff] }
 0x202   :  { %v4157_v47 = vmax.f32 %v4029_v49, 0.0  ;;  %v3897_v33 = vmul.f32 %v6750_v6, %v3764_v35  ;;  %v1729_v46 = vadd.f32 %v1728_v26, %v6143_v20  ;;  %4686 = vmatprep.mubr.msk.bf16.mxu1 %vm844_vm0, %v5378_v13  ;;  %4914 = vmatprep.mubr.msk.bf16.mxu0 %vm844_vm0, %v5290_v58  ;;  %v5292_v58 = vld [vmem:[%s8315_s0 + $0x204] ss:$8 sps:$4 sm:$0xff]  }
 0x203   :  { %v1730_v17 = vpop.f32.mrf.mxu1  ;;  %v3268_v43 = vpop.f32.mrf.mxu0 }
 0x204   :  { %4285 = vst.msk [vmem:[%s8317_s3 + $0x10] sm:$0xff] %vm844_vm0, %v4157_v47  ;;  %v4030_v20 = vadd.f32 %v6755_v9, %v3897_v33  ;;  %v3765_v34 = vadd.f32 %v3266_v56, %v1729_v46  ;;  %v5379_v47 = vld [vmem:[%s8315_s0 + $0x1b0] ss:$8 sps:$4 sm:$0xff]   ;;  %v2280_v17 = vld [vmem:[%s8315_s0 + $0x208] sm:$0xff] }
 0x205   :  { %v1731_v62 = vpop.f32.mrf.mxu1  ;;  %v3269_v25 = vpop.f32.mrf.mxu0 }
 0x206   :  { %v4158_v5 = vmax.f32 %v4030_v20, 0.0  ;;  %v3898_v39 = vmul.f32 %v6750_v6, %v3765_v34  ;;  %v1732_v55 = vadd.f32 %v1731_v62, %v6149_v30 }
 0x207   :  { %v1733_v49 = vpop.f32.mrf.mxu1  ;;  %v3271_v35 = vpop.f32.mrf.mxu0 }
 0x208   :  { %4286 = vst.msk [vmem:[%s8317_s3 + $0x18] sm:$0xff] %vm844_vm0, %v4158_v5  ;;  %v4031_v26 = vadd.f32 %v6755_v9, %v3898_v39  ;;  %v3766_v51 = vadd.f32 %v3269_v25, %v1732_v55 }
 0x209   :  { %v1736_v56 = vpop.f32.mrf.mxu1  ;;  %1927 = vmatmul.mubr.bf16.gmra.mxu1 %v5379_v47  ;;  %v3274_v30 = vpop.f32.mrf.mxu0  ;;  %3465 = vmatmul.mubr.bf16.gmra.mxu0 %v4801_v3  ;;  %v4803_v3 = vcombine.low %v2279_v48, %v2280_v17  ;;  %v5381_v47 = vld [vmem:[%s8315_s0 + $0x1c0] ss:$8 sps:$4 sm:$0xff]   ;;  %v2282_v48 = vld [vmem:[%s8315_s0 + $0x218] sm:$0xff] }
 0x20a   :  { %v4159_v33 = vmax.f32 %v4031_v26, 0.0  ;;  %v3899_v46 = vmul.f32 %v6750_v6, %v3766_v51  ;;  %v1737_v13 = vadd.f32 %v1736_v56, %v6165_v52  ;;  %4687 = vmatprep.mubr.msk.bf16.mxu1 %vm844_vm0, %v5380_v53  ;;  %4915 = vmatprep.mubr.msk.bf16.mxu0 %vm844_vm0, %v5292_v58  ;;  %v5294_v58 = vld [vmem:[%s8315_s0 + $0x214] ss:$8 sps:$4 sm:$0xff]  }
 0x20b   :  { %v1738_v43 = vpop.f32.mrf.mxu1  ;;  %v3276_v20 = vpop.f32.mrf.mxu0  ;;  %v2281_v53 = vld [vmem:[%s8315_s0 + $0x210] sm:$0xff] }
 0x20c   :  { %4287 = vst.msk [vmem:[%s8317_s3 + $0x20] sm:$0xff] %vm844_vm0, %v4159_v33  ;;  %v4032_v52 = vadd.f32 %v6755_v9, %v3899_v46  ;;  %v3767_v34 = vadd.f32 %v3274_v30, %v1737_v13  ;;  %v5382_v13 = vld [vmem:[%s8315_s0 + $0x1d4] ss:$8 sps:$4 sm:$0xff]  }
 0x20d   :  { %v1739_v62 = vpop.f32.mrf.mxu1  ;;  %v3277_v25 = vpop.f32.mrf.mxu0 }
 0x20e   :  { %v4160_v5 = vmax.f32 %v4032_v52, 0.0  ;;  %v3900_v39 = vmul.f32 %v6750_v6, %v3767_v34  ;;  %v1740_v55 = vadd.f32 %v1739_v62, %v6171_v8  ;;  %v4805_v62 = vcombine.low %v2281_v53, %v2282_v48 }
 0x20f   :  { %v1741_v49 = vpop.f32.mrf.mxu1  ;;  %v3279_v35 = vpop.f32.mrf.mxu0 }
 0x210   :  { %4288 = vst.msk [vmem:[%s8317_s3 + $0x28] sm:$0xff] %vm844_vm0, %v4160_v5  ;;  %v4033_v26 = vadd.f32 %v6755_v9, %v3900_v39  ;;  %v3768_v51 = vadd.f32 %v3277_v25, %v1740_v55  ;;  %v5296_v39 = vld [vmem:[%s8315_s0 + $0x224] ss:$8 sps:$4 sm:$0xff]  }
 0x211   :  { %v1744_v56 = vpop.f32.mrf.mxu1  ;;  %1935 = vmatmul.mubr.bf16.gmra.mxu1 %v5381_v47  ;;  %v3282_v8 = vpop.f32.mrf.mxu0  ;;  %3473 = vmatmul.mubr.bf16.gmra.mxu0 %v4803_v3 }
 0x212   :  { %v4161_v30 = vmax.f32 %v4033_v26, 0.0  ;;  %v3901_v33 = vmul.f32 %v6750_v6, %v3768_v51  ;;  %v1745_v46 = vadd.f32 %v1744_v56, %v6187_v40  ;;  %4688 = vmatprep.mubr.msk.bf16.mxu1 %vm844_vm0, %v5382_v13  ;;  %4916 = vmatprep.mubr.msk.bf16.mxu0 %vm844_vm0, %v5294_v58  ;;  %v5383_v51 = vld [vmem:[%s8315_s0 + $0x1d0] ss:$8 sps:$4 sm:$0xff]  }
 0x213   :  { %v1746_v17 = vpop.f32.mrf.mxu1  ;;  %v3284_v43 = vpop.f32.mrf.mxu0 }
 0x214   :  { %4289 = vst.msk [vmem:[%s8317_s3 + $0x30] sm:$0xff] %vm844_vm0, %v4161_v30  ;;  %v4034_v40 = vadd.f32 %v6755_v9, %v3901_v33  ;;  %v3769_v20 = vadd.f32 %v3282_v8, %v1745_v46  ;;  %v5384_v30 = vld [vmem:[%s8315_s0 + $0x1e4] ss:$8 sps:$4 sm:$0xff]  }
 0x215   :  { %v1747_v52 = vpop.f32.mrf.mxu1  ;;  %v3285_v34 = vpop.f32.mrf.mxu0  ;;  %v2283_v33 = vld [vmem:[%s8315_s0 + $0x220] sm:$0xff]  ;;  %v2284_v46 = vld [vmem:[%s8315_s0 + $0x228] sm:$0xff] }
 0x216   :  { %v4162_v25 = vmax.f32 %v4034_v40, 0.0  ;;  %v3902_v3 = vmul.f32 %v6750_v6, %v3769_v20  ;;  %v1748_v5 = vadd.f32 %v1747_v52, %v6193_v1  ;;  %v4807_v40 = vcombine.low %v2283_v33, %v2284_v46 }
 0x217   :  { %v1749_v55 = vpop.f32.mrf.mxu1  ;;  %v3287_v58 = vpop.f32.mrf.mxu0 }
 0x218   :  { %4290 = vst.msk [vmem:[%s8317_s3 + $0x38] sm:$0xff] %vm844_vm0, %v4162_v25  ;;  %v4035_v49 = vadd.f32 %v6755_v9, %v3902_v3  ;;  %v3770_v35 = vadd.f32 %v3285_v34, %v1748_v5  ;;  %v5385_v58 = vld [vmem:[%s8315_s0 + $0x1e0] ss:$8 sps:$4 sm:$0xff]  }
 0x219   :  { %v1752_v26 = vpop.f32.mrf.mxu1  ;;  %1943 = vmatmul.mubr.bf16.gmra.mxu1 %v5383_v51  ;;  %v3290_v1 = vpop.f32.mrf.mxu0  ;;  %3481 = vmatmul.mubr.bf16.gmra.mxu0 %v4805_v62  ;;  %v5298_v62 = vld [vmem:[%s8315_s0 + $0x234] ss:$8 sps:$4 sm:$0xff]  }
 0x21a   :  { %v4163_v56 = vmax.f32 %v4035_v49, 0.0  ;;  %v3903_v47 = vmul.f32 %v6750_v6, %v3770_v35  ;;  %v1753_v8 = vadd.f32 %v1752_v26, %v6209_v44  ;;  %4689 = vmatprep.mubr.msk.bf16.mxu1 %vm844_vm0, %v5384_v30  ;;  %4917 = vmatprep.mubr.msk.bf16.mxu0 %vm844_vm0, %v5296_v39  ;;  %v5386_v51 = vld [vmem:[%s8315_s0 + $0x1f4] ss:$8 sps:$4 sm:$0xff]  }
 0x21b   :  { %v1754_v13 = vpop.f32.mrf.mxu1  ;;  %v3292_v53 = vpop.f32.mrf.mxu0 }
 0x21c   :  { %4291 = vst.msk [vmem:[%s8317_s3 + $0x40] sm:$0xff] %vm844_vm0, %v4163_v56  ;;  %v4036_v44 = vadd.f32 %v6755_v9, %v3903_v47  ;;  %v3771_v48 = vadd.f32 %v3290_v1, %v1753_v8  ;;  %v2285_v1 = vld [vmem:[%s8315_s0 + $0x230] sm:$0xff]  ;;  %v2286_v56 = vld [vmem:[%s8315_s0 + $0x238] sm:$0xff] }
 0x21d   :  { %v1755_v17 = vpop.f32.mrf.mxu1  ;;  %v3293_v43 = vpop.f32.mrf.mxu0  ;;  %v4809_v13 = vcombine.low %v2285_v1, %v2286_v56 }
 0x21e   :  { %v4164_v20 = vmax.f32 %v4036_v44, 0.0  ;;  %v3904_v52 = vmul.f32 %v6750_v6, %v3771_v48  ;;  %v1756_v34 = vadd.f32 %v1755_v17, %v6215_v11  ;;  %v5300_v17 = vld [vmem:[%s8315_s0 + $0x244] ss:$8 sps:$4 sm:$0xff]  }
 0x21f   :  { %v1757_v25 = vpop.f32.mrf.mxu1  ;;  %v3295_v3 = vpop.f32.mrf.mxu0 }
 0x220   :  { %4292 = vst.msk [vmem:[%s8317_s3 + $0x48] sm:$0xff] %vm844_vm0, %v4164_v20  ;;  %v4037_v5 = vadd.f32 %v6755_v9, %v3904_v52  ;;  %v3772_v39 = vadd.f32 %v3293_v43, %v1756_v34 }
 0x221   :  { %v1760_v55 = vpop.f32.mrf.mxu1  ;;  %1951 = vmatmul.mubr.bf16.gmra.mxu1 %v5385_v58  ;;  %v3298_v11 = vpop.f32.mrf.mxu0  ;;  %3489 = vmatmul.mubr.bf16.gmra.mxu0 %v4807_v40  ;;  %v2288_v58 = vld [vmem:[%s8315_s0 + $0x248] sm:$0xff] }
 0x222   :  { %v4165_v49 = vmax.f32 %v4037_v5, 0.0  ;;  %v3905_v35 = vmul.f32 %v6750_v6, %v3772_v39  ;;  %v1761_v26 = vadd.f32 %v1760_v55, %v6231_v23  ;;  %4690 = vmatprep.mubr.msk.bf16.mxu1 %vm844_vm0, %v5386_v51  ;;  %4918 = vmatprep.mubr.msk.bf16.mxu0 %vm844_vm0, %v5298_v62  ;;  %v5387_v62 = vld [vmem:[%s8315_s0 + $0x1f0] ss:$8 sps:$4 sm:$0xff]   ;;  %v5388_v39 = vld [vmem:[%s8315_s0 + $0x204] ss:$8 sps:$4 sm:$0xff]  }
 0x223   :  { %v1762_v47 = vpop.f32.mrf.mxu1  ;;  %v3300_v8 = vpop.f32.mrf.mxu0  ;;  %v2287_v55 = vld [vmem:[%s8315_s0 + $0x240] sm:$0xff] }
 0x224   :  { %4293 = vst.msk [vmem:[%s8317_s3 + $0x50] sm:$0xff] %vm844_vm0, %v4165_v49  ;;  %v4038_v23 = vadd.f32 %v6755_v9, %v3905_v35  ;;  %v3773_v30 = vadd.f32 %v3298_v11, %v1761_v26  ;;  %v4811_v1 = vcombine.low %v2287_v55, %v2288_v58  ;;  %v8401_v58 = vld [vmem:[#allocation19_spill] sm:$0xff] }
 0x225   :  { %v1763_v33 = vpop.f32.mrf.mxu1  ;;  %v3301_v46 = vpop.f32.mrf.mxu0 }
 0x226   :  { %v4166_v53 = vmax.f32 %v4038_v23, 0.0  ;;  %v3906_v44 = vmul.f32 %v6750_v6, %v3773_v30  ;;  %v1764_v48 = vadd.f32 %v1763_v33, %v6237_v31  ;;  %v5302_v23 = vld [vmem:[%s8315_s0 + $0x254] ss:$8 sps:$4 sm:$0xff]  }
 0x227   :  { %v1765_v43 = vpop.f32.mrf.mxu1  ;;  %v3303_v40 = vpop.f32.mrf.mxu0 }
 0x228   :  { %4294 = vst.msk [vmem:[%s8317_s3 + $0x58] sm:$0xff] %vm844_vm0, %v4166_v53  ;;  %v4039_v20 = vadd.f32 %v6755_v9, %v3906_v44  ;;  %v3774_v52 = vadd.f32 %v3301_v46, %v1764_v48  ;;  %v5389_v44 = vld [vmem:[%s8315_s0 + $0x200] ss:$8 sps:$4 sm:$0xff]   ;;  %v5390_v40 = vld [vmem:[%s8315_s0 + $0x214] ss:$8 sps:$4 sm:$0xff]  }
 0x229   :  { %v1768_v34 = vpop.f32.mrf.mxu1  ;;  %1959 = vmatmul.mubr.bf16.gmra.mxu1 %v5387_v62  ;;  %v3306_v31 = vpop.f32.mrf.mxu0  ;;  %3497 = vmatmul.mubr.bf16.gmra.mxu0 %v4809_v13 }
 0x22a   :  { %v4167_v25 = vmax.f32 %v4039_v20, 0.0  ;;  %v3907_v3 = vmul.f32 %v6750_v6, %v3774_v52  ;;  %v1769_v5 = vadd.f32 %v1768_v34, %v6253_v42  ;;  %4691 = vmatprep.mubr.msk.bf16.mxu1 %vm844_vm0, %v5388_v39  ;;  %4919 = vmatprep.mubr.msk.bf16.mxu0 %vm844_vm0, %v5300_v17  ;;  %v2289_v20 = vld [vmem:[%s8315_s0 + $0x250] sm:$0xff]  ;;  %v2290_v52 = vld [vmem:[%s8315_s0 + $0x258] sm:$0xff] }
 0x22b   :  { %v1770_v11 = vpop.f32.mrf.mxu1  ;;  %v3308_v49 = vpop.f32.mrf.mxu0 }
 0x22c   :  { %4295 = vst.msk [vmem:[%s8317_s3 + $0x60] sm:$0xff] %vm844_vm0, %v4167_v25  ;;  %v4040_v42 = vadd.f32 %v6755_v9, %v3907_v3  ;;  %v3775_v35 = vadd.f32 %v3306_v31, %v1769_v5  ;;  %v4813_v5 = vcombine.low %v2289_v20, %v2290_v52  ;;  %v5304_v49 = vld [vmem:[%s8315_s0 + $0x264] ss:$8 sps:$4 sm:$0xff]  }
 0x22d   :  { %v1771_v26 = vpop.f32.mrf.mxu1  ;;  %v3309_v51 = vpop.f32.mrf.mxu0 }
 0x22e   :  { %v4168_v56 = vmax.f32 %v4040_v42, 0.0  ;;  %v3908_v47 = vmul.f32 %v6750_v6, %v3775_v35  ;;  %v1772_v8 = vadd.f32 %v1771_v26, %v6259_v60 }
 0x22f   :  { %v1773_v30 = vpop.f32.mrf.mxu1  ;;  %v3311_v33 = vpop.f32.mrf.mxu0 }
 0x230   :  { %4296 = vst.msk [vmem:[%s8317_s3 + $0x68] sm:$0xff] %vm844_vm0, %v4168_v56  ;;  %v4041_v46 = vadd.f32 %v6755_v9, %v3908_v47  ;;  %v3776_v13 = vadd.f32 %v3309_v51, %v1772_v8  ;;  %v5391_v56 = vld [vmem:[%s8315_s0 + $0x210] ss:$8 sps:$4 sm:$0xff]  }
 0x231   :  { %v1776_v53 = vpop.f32.mrf.mxu1  ;;  %1967 = vmatmul.mubr.bf16.gmra.mxu1 %v5389_v44  ;;  %v3314_v60 = vpop.f32.mrf.mxu0  ;;  %3505 = vmatmul.mubr.bf16.gmra.mxu0 %v4811_v1  ;;  %v8402_v30 = vld [vmem:[#allocation21_spill] sm:$0xff] }
 0x232   :  { %v4169_v48 = vmax.f32 %v4041_v46, 0.0  ;;  %v3909_v17 = vmul.f32 %v6750_v6, %v3776_v13  ;;  %v1777_v43 = vadd.f32 %v1776_v53, %v6275_v54  ;;  %4692 = vmatprep.mubr.msk.bf16.mxu1 %vm844_vm0, %v5390_v40  ;;  %4920 = vmatprep.mubr.msk.bf16.mxu0 %vm844_vm0, %v5302_v23  ;;  %v5392_v46 = vld [vmem:[%s8315_s0 + $0x224] ss:$8 sps:$4 sm:$0xff]  }
 0x233   :  { %v1778_v34 = vpop.f32.mrf.mxu1  ;;  %v3316_v62 = vpop.f32.mrf.mxu0  ;;  %v2291_v13 = vld [vmem:[%s8315_s0 + $0x260] sm:$0xff]  ;;  %v2292_v53 = vld [vmem:[%s8315_s0 + $0x268] sm:$0xff] }
 0x234   :  { %4297 = vst.msk [vmem:[%s8317_s3 + $0x70] sm:$0xff] %vm844_vm0, %v4169_v48  ;;  %v4042_v54 = vadd.f32 %v6755_v9, %v3909_v17  ;;  %v3777_v31 = vadd.f32 %v3314_v60, %v1777_v43  ;;  %v4815_v20 = vcombine.low %v2291_v13, %v2292_v53  ;;  %v8403_v62 = vld [vmem:[#allocation23_spill] sm:$0xff] }
 0x235   :  { %v1779_v25 = vpop.f32.mrf.mxu1  ;;  %v3317_v3 = vpop.f32.mrf.mxu0 }
 0x236   :  { %v4170_v39 = vmax.f32 %v4042_v54, 0.0  ;;  %v3910_v55 = vmul.f32 %v6750_v6, %v3777_v31  ;;  %v1780_v11 = vadd.f32 %v1779_v25, %v8401_v58  ;;  %v5306_v31 = vld [vmem:[%s8315_s0 + $0x274] ss:$8 sps:$4 sm:$0xff]   ;;  %v5393_v58 = vld [vmem:[%s8315_s0 + $0x220] ss:$8 sps:$4 sm:$0xff]  }
 0x237   :  { %v1781_v42 = vpop.f32.mrf.mxu1  ;;  %v3319_v35 = vpop.f32.mrf.mxu0 }
 0x238   :  { %4298 = vst.msk [vmem:[%s8317_s3 + $0x78] sm:$0xff] %vm844_vm0, %v4170_v39  ;;  %v4043_v26 = vadd.f32 %v6755_v9, %v3910_v55  ;;  %v3778_v51 = vadd.f32 %v3317_v3, %v1780_v11  ;;  %v8404_v35 = vld [vmem:[#allocation25_spill] sm:$0xff] }
 0x239   :  { %v1784_v1 = vpop.f32.mrf.mxu1  ;;  %1975 = vmatmul.mubr.bf16.gmra.mxu1 %v5391_v56  ;;  %v3322_v47 = vpop.f32.mrf.mxu0  ;;  %3513 = vmatmul.mubr.bf16.gmra.mxu0 %v4813_v5  ;;  %v2294_v56 = vld [vmem:[%s8315_s0 + $0x278] sm:$0xff] }
 0x23a   :  { %v4171_v8 = vmax.f32 %v4043_v26, 0.0  ;;  %v3911_v23 = vmul.f32 %v6750_v6, %v3778_v51  ;;  %v1785_v33 = vadd.f32 %v1784_v1, %v8402_v30  ;;  %4693 = vmatprep.mubr.msk.bf16.mxu1 %vm844_vm0, %v5392_v46  ;;  %4921 = vmatprep.mubr.msk.bf16.mxu0 %vm844_vm0, %v5304_v49  ;;  %v5394_v51 = vld [vmem:[%s8315_s0 + $0x234] ss:$8 sps:$4 sm:$0xff]  }
 0x23b   :  { %v1786_v44 = vpop.f32.mrf.mxu1  ;;  %v3324_v60 = vpop.f32.mrf.mxu0  ;;  %v2293_v1 = vld [vmem:[%s8315_s0 + $0x270] sm:$0xff] }
 0x23c   :  { %4299 = vst.msk [vmem:[%s8317_s3 + $0x80] sm:$0xff] %vm844_vm0, %v4171_v8  ;;  %v4044_v48 = vadd.f32 %v6755_v9, %v3911_v23  ;;  %v3779_v17 = vadd.f32 %v3322_v47, %v1785_v33  ;;  %v4817_v13 = vcombine.low %v2293_v1, %v2294_v56  ;;  %v8405_v60 = vld [vmem:[#allocation27_spill] sm:$0xff] }
 0x23d   :  { %v1787_v43 = vpop.f32.mrf.mxu1  ;;  %v3325_v40 = vpop.f32.mrf.mxu0 }
 0x23e   :  { %v4172_v52 = vmax.f32 %v4044_v48, 0.0  ;;  %v3912_v34 = vmul.f32 %v6750_v6, %v3779_v17  ;;  %v1788_v54 = vadd.f32 %v1787_v43, %v8403_v62  ;;  %v5308_v17 = vld [vmem:[%s8315_s0 + $0x284] ss:$8 sps:$4 sm:$0xff]   ;;  %v5395_v62 = vld [vmem:[%s8315_s0 + $0x230] ss:$8 sps:$4 sm:$0xff]  }
 0x23f   :  { %v1789_v25 = vpop.f32.mrf.mxu1  ;;  %v3327_v3 = vpop.f32.mrf.mxu0 }
 0x240   :  { %4300 = vst.msk [vmem:[%s8317_s3 + $0x88] sm:$0xff] %vm844_vm0, %v4172_v52  ;;  %v4045_v5 = vadd.f32 %v6755_v9, %v3912_v34  ;;  %v3780_v39 = vadd.f32 %v3325_v40, %v1788_v54  ;;  %v8406_v3 = vld [vmem:[#allocation29_spill] sm:$0xff] }
 0x241   :  { %v1792_v55 = vpop.f32.mrf.mxu1  ;;  %1983 = vmatmul.mubr.bf16.gmra.mxu1 %v5393_v58  ;;  %v3330_v11 = vpop.f32.mrf.mxu0  ;;  %3521 = vmatmul.mubr.bf16.gmra.mxu0 %v4815_v20  ;;  %v2296_v58 = vld [vmem:[%s8315_s0 + $0x288] sm:$0xff] }
 0x242   :  { %v4173_v49 = vmax.f32 %v4045_v5, 0.0  ;;  %v3913_v42 = vmul.f32 %v6750_v6, %v3780_v39  ;;  %v1793_v26 = vadd.f32 %v1792_v55, %v8404_v35  ;;  %4694 = vmatprep.mubr.msk.bf16.mxu1 %vm844_vm0, %v5394_v51  ;;  %4922 = vmatprep.mubr.msk.bf16.mxu0 %vm844_vm0, %v5306_v31  ;;  %v5396_v39 = vld [vmem:[%s8315_s0 + $0x244] ss:$8 sps:$4 sm:$0xff]  }
 0x243   :  { %v1794_v47 = vpop.f32.mrf.mxu1  ;;  %v3332_v8 = vpop.f32.mrf.mxu0  ;;  %v2295_v55 = vld [vmem:[%s8315_s0 + $0x280] sm:$0xff] }
 0x244   :  { %4301 = vst.msk [vmem:[%s8317_s3 + $0x90] sm:$0xff] %vm844_vm0, %v4173_v49  ;;  %v4046_v23 = vadd.f32 %v6755_v9, %v3913_v42  ;;  %v3781_v30 = vadd.f32 %v3330_v11, %v1793_v26  ;;  %v4819_v1 = vcombine.low %v2295_v55, %v2296_v58  ;;  %v8407_v8 = vld [vmem:[#allocation31_spill] sm:$0xff] }
 0x245   :  { %v1795_v33 = vpop.f32.mrf.mxu1  ;;  %v3333_v46 = vpop.f32.mrf.mxu0 }
 0x246   :  { %v4174_v53 = vmax.f32 %v4046_v23, 0.0  ;;  %v3914_v44 = vmul.f32 %v6750_v6, %v3781_v30  ;;  %v1796_v48 = vadd.f32 %v1795_v33, %v8405_v60  ;;  %v5310_v30 = vld [vmem:[%s8315_s0 + $0x294] ss:$8 sps:$4 sm:$0xff]   ;;  %v5397_v60 = vld [vmem:[%s8315_s0 + $0x240] ss:$8 sps:$4 sm:$0xff]  }
 0x247   :  { %v1797_v43 = vpop.f32.mrf.mxu1  ;;  %v3335_v40 = vpop.f32.mrf.mxu0 }
 0x248   :  { %4302 = vst.msk [vmem:[%s8317_s3 + $0x98] sm:$0xff] %vm844_vm0, %v4174_v53  ;;  %v4047_v20 = vadd.f32 %v6755_v9, %v3914_v44  ;;  %v3782_v52 = vadd.f32 %v3333_v46, %v1796_v48  ;;  %v8408_v40 = vld [vmem:[#allocation33_spill] sm:$0xff] }
 0x249   :  { %v1800_v34 = vpop.f32.mrf.mxu1  ;;  %1991 = vmatmul.mubr.bf16.gmra.mxu1 %v5395_v62  ;;  %v3338_v54 = vpop.f32.mrf.mxu0  ;;  %3529 = vmatmul.mubr.bf16.gmra.mxu0 %v4817_v13  ;;  %v2298_v62 = vld [vmem:[%s8315_s0 + $0x298] sm:$0xff] }
 0x24a   :  { %v4175_v31 = vmax.f32 %v4047_v20, 0.0  ;;  %v3915_v25 = vmul.f32 %v6750_v6, %v3782_v52  ;;  %v1801_v5 = vadd.f32 %v1800_v34, %v8406_v3  ;;  %4695 = vmatprep.mubr.msk.bf16.mxu1 %vm844_vm0, %v5396_v39  ;;  %4923 = vmatprep.mubr.msk.bf16.mxu0 %vm844_vm0, %v5308_v17  ;;  %v5398_v52 = vld [vmem:[%s8315_s0 + $0x254] ss:$8 sps:$4 sm:$0xff]  }
 0x24b   :  { %v1802_v11 = vpop.f32.mrf.mxu1  ;;  %v3340_v49 = vpop.f32.mrf.mxu0  ;;  %v2297_v34 = vld [vmem:[%s8315_s0 + $0x290] sm:$0xff] }
 0x24c   :  { %4303 = vst.msk [vmem:[%s8317_s3 + $0xa0] sm:$0xff] %vm844_vm0, %v4175_v31  ;;  %v4048_v42 = vadd.f32 %v6755_v9, %v3915_v25  ;;  %v3783_v35 = vadd.f32 %v3338_v54, %v1801_v5  ;;  %v4821_v55 = vcombine.low %v2297_v34, %v2298_v62  ;;  %v8409_v49 = vld [vmem:[#allocation35_spill] sm:$0xff] }
 0x24d   :  { %v1803_v26 = vpop.f32.mrf.mxu1  ;;  %v3341_v51 = vpop.f32.mrf.mxu0 }
 0x24e   :  { %v4176_v56 = vmax.f32 %v4048_v42, 0.0  ;;  %v3916_v47 = vmul.f32 %v6750_v6, %v3783_v35  ;;  %v1804_v23 = vadd.f32 %v1803_v26, %v8407_v8  ;;  %v5312_v35 = vld [vmem:[%s8315_s0 + $0x2a4] ss:$8 sps:$4 sm:$0xff]   ;;  %v5399_v8 = vld [vmem:[%s8315_s0 + $0x250] ss:$8 sps:$4 sm:$0xff]  }
 0x24f   :  { %v1805_v33 = vpop.f32.mrf.mxu1  ;;  %v3343_v46 = vpop.f32.mrf.mxu0 }
 0x250   :  { %4304 = vst.msk [vmem:[%s8317_s3 + $0xa8] sm:$0xff] %vm844_vm0, %v4176_v56  ;;  %v4049_v13 = vadd.f32 %v6755_v9, %v3916_v47  ;;  %v3784_v53 = vadd.f32 %v3341_v51, %v1804_v23  ;;  %v8410_v46 = vld [vmem:[#allocation37_spill] sm:$0xff] }
 0x251   :  { %v1808_v44 = vpop.f32.mrf.mxu1  ;;  %1999 = vmatmul.mubr.bf16.gmra.mxu1 %v5397_v60  ;;  %v3346_v48 = vpop.f32.mrf.mxu0  ;;  %3537 = vmatmul.mubr.bf16.gmra.mxu0 %v4819_v1  ;;  %v2300_v60 = vld [vmem:[%s8315_s0 + $0x2a8] sm:$0xff] }
 0x252   :  { %v4177_v17 = vmax.f32 %v4049_v13, 0.0  ;;  %v3917_v43 = vmul.f32 %v6750_v6, %v3784_v53  ;;  %v1809_v20 = vadd.f32 %v1808_v44, %v8408_v40  ;;  %4696 = vmatprep.mubr.msk.bf16.mxu1 %vm844_vm0, %v5398_v52  ;;  %4924 = vmatprep.mubr.msk.bf16.mxu0 %vm844_vm0, %v5310_v30  ;;  %v5400_v53 = vld [vmem:[%s8315_s0 + $0x264] ss:$8 sps:$4 sm:$0xff]  }
 0x253   :  { %v1810_v54 = vpop.f32.mrf.mxu1  ;;  %v3348_v31 = vpop.f32.mrf.mxu0  ;;  %v2299_v44 = vld [vmem:[%s8315_s0 + $0x2a0] sm:$0xff] }
 0x254   :  { %4305 = vst.msk [vmem:[%s8317_s3 + $0xb0] sm:$0xff] %vm844_vm0, %v4177_v17  ;;  %v4050_v25 = vadd.f32 %v6755_v9, %v3917_v43  ;;  %v3785_v3 = vadd.f32 %v3346_v48, %v1809_v20  ;;  %v4823_v34 = vcombine.low %v2299_v44, %v2300_v60  ;;  %v8411_v31 = vld [vmem:[#allocation39_spill] sm:$0xff] }
 0x255   :  { %v1811_v5 = vpop.f32.mrf.mxu1  ;;  %v3349_v39 = vpop.f32.mrf.mxu0 }
 0x256   :  { %v4178_v58 = vmax.f32 %v4050_v25, 0.0  ;;  %v3918_v11 = vmul.f32 %v6750_v6, %v3785_v3  ;;  %v1812_v42 = vadd.f32 %v1811_v5, %v8409_v49  ;;  %v5314_v3 = vld [vmem:[%s8315_s0 + $0x2b4] ss:$8 sps:$4 sm:$0xff]   ;;  %v5401_v49 = vld [vmem:[%s8315_s0 + $0x260] ss:$8 sps:$4 sm:$0xff]  }
 0x257   :  { %v1813_v26 = vpop.f32.mrf.mxu1  ;;  %v3351_v51 = vpop.f32.mrf.mxu0 }
 0x258   :  { %4306 = vst.msk [vmem:[%s8317_s3 + $0xb8] sm:$0xff] %vm844_vm0, %v4178_v58  ;;  %v4051_v1 = vadd.f32 %v6755_v9, %v3918_v11  ;;  %v3786_v56 = vadd.f32 %v3349_v39, %v1812_v42  ;;  %v8412_v51 = vld [vmem:[#allocation41_spill] sm:$0xff] }
 0x259   :  { %v1816_v47 = vpop.f32.mrf.mxu1  ;;  %2007 = vmatmul.mubr.bf16.gmra.mxu1 %v5399_v8  ;;  %v3354_v23 = vpop.f32.mrf.mxu0  ;;  %3545 = vmatmul.mubr.bf16.gmra.mxu0 %v4821_v55  ;;  %v2302_v8 = vld [vmem:[%s8315_s0 + $0x2b8] sm:$0xff] }
 0x25a   :  { %v4179_v30 = vmax.f32 %v4051_v1, 0.0  ;;  %v3919_v33 = vmul.f32 %v6750_v6, %v3786_v56  ;;  %v1817_v13 = vadd.f32 %v1816_v47, %v8410_v46  ;;  %4697 = vmatprep.mubr.msk.bf16.mxu1 %vm844_vm0, %v5400_v53  ;;  %4925 = vmatprep.mubr.msk.bf16.mxu0 %vm844_vm0, %v5312_v35  ;;  %v5402_v56 = vld [vmem:[%s8315_s0 + $0x274] ss:$8 sps:$4 sm:$0xff]  }
 0x25b   :  { %v1818_v48 = vpop.f32.mrf.mxu1  ;;  %v3356_v17 = vpop.f32.mrf.mxu0  ;;  %v2301_v47 = vld [vmem:[%s8315_s0 + $0x2b0] sm:$0xff] }
 0x25c   :  { %4307 = vst.msk [vmem:[%s8317_s3 + $0xc0] sm:$0xff] %vm844_vm0, %v4179_v30  ;;  %v4052_v43 = vadd.f32 %v6755_v9, %v3919_v33  ;;  %v3787_v40 = vadd.f32 %v3354_v23, %v1817_v13  ;;  %v4825_v44 = vcombine.low %v2301_v47, %v2302_v8  ;;  %v8413_v17 = vld [vmem:[#allocation43_spill] sm:$0xff] }
 0x25d   :  { %v1819_v20 = vpop.f32.mrf.mxu1  ;;  %v3357_v52 = vpop.f32.mrf.mxu0 }
 0x25e   :  { %v4180_v62 = vmax.f32 %v4052_v43, 0.0  ;;  %v3920_v54 = vmul.f32 %v6750_v6, %v3787_v40  ;;  %v1820_v25 = vadd.f32 %v1819_v20, %v8411_v31  ;;  %v5316_v40 = vld [vmem:[%s8315_s0 + $0x2c4] ss:$8 sps:$4 sm:$0xff]   ;;  %v5403_v31 = vld [vmem:[%s8315_s0 + $0x270] ss:$8 sps:$4 sm:$0xff]  }
 0x25f   :  { %v1821_v5 = vpop.f32.mrf.mxu1  ;;  %v3359_v39 = vpop.f32.mrf.mxu0 }
 0x260   :  { %4308 = vst.msk [vmem:[%s8317_s3 + $0xc8] sm:$0xff] %vm844_vm0, %v4180_v62  ;;  %v4053_v55 = vadd.f32 %v6755_v9, %v3920_v54  ;;  %v3788_v58 = vadd.f32 %v3357_v52, %v1820_v25  ;;  %v8414_v39 = vld [vmem:[#allocation45_spill] sm:$0xff] }
 0x261   :  { %v1824_v11 = vpop.f32.mrf.mxu1  ;;  %2015 = vmatmul.mubr.bf16.gmra.mxu1 %v5401_v49  ;;  %v3362_v42 = vpop.f32.mrf.mxu0  ;;  %3553 = vmatmul.mubr.bf16.gmra.mxu0 %v4823_v34  ;;  %v2304_v49 = vld [vmem:[%s8315_s0 + $0x2c8] sm:$0xff] }
 0x262   :  { %v4181_v35 = vmax.f32 %v4053_v55, 0.0  ;;  %v3921_v26 = vmul.f32 %v6750_v6, %v3788_v58  ;;  %v1825_v1 = vadd.f32 %v1824_v11, %v8412_v51  ;;  %4698 = vmatprep.mubr.msk.bf16.mxu1 %vm844_vm0, %v5402_v56  ;;  %4926 = vmatprep.mubr.msk.bf16.mxu0 %vm844_vm0, %v5314_v3  ;;  %v5404_v58 = vld [vmem:[%s8315_s0 + $0x284] ss:$8 sps:$4 sm:$0xff]  }
 0x263   :  { %v1826_v23 = vpop.f32.mrf.mxu1  ;;  %v3364_v30 = vpop.f32.mrf.mxu0  ;;  %v2303_v11 = vld [vmem:[%s8315_s0 + $0x2c0] sm:$0xff] }
 0x264   :  { %4309 = vst.msk [vmem:[%s8317_s3 + $0xd0] sm:$0xff] %vm844_vm0, %v4181_v35  ;;  %v4054_v33 = vadd.f32 %v6755_v9, %v3921_v26  ;;  %v3789_v46 = vadd.f32 %v3362_v42, %v1825_v1  ;;  %v4827_v47 = vcombine.low %v2303_v11, %v2304_v49  ;;  %v5320_v11 = vld [vmem:[%s8315_s0 + $0x2e4] ss:$8 sps:$4 sm:$0xff]  }
 0x265   :  { %v1827_v13 = vpop.f32.mrf.mxu1  ;;  %v3365_v53 = vpop.f32.mrf.mxu0 }
 0x266   :  { %v4182_v60 = vmax.f32 %v4054_v33, 0.0  ;;  %v3922_v48 = vmul.f32 %v6750_v6, %v3789_v46  ;;  %v1828_v43 = vadd.f32 %v1827_v13, %v8413_v17  ;;  %v5318_v33 = vld [vmem:[%s8315_s0 + $0x2d4] ss:$8 sps:$4 sm:$0xff]  }
 0x267   :  { %v1829_v20 = vpop.f32.mrf.mxu1  ;;  %v3367_v52 = vpop.f32.mrf.mxu0 }
 0x268   :  { %4310 = vst.msk [vmem:[%s8317_s3 + $0xd8] sm:$0xff] %vm844_vm0, %v4182_v60  ;;  %v4055_v34 = vadd.f32 %v6755_v9, %v3922_v48  ;;  %v3790_v62 = vadd.f32 %v3365_v53, %v1828_v43  ;;  %v5405_v48 = vld [vmem:[%s8315_s0 + $0x280] ss:$8 sps:$4 sm:$0xff]   ;;  %v5406_v20 = vld [vmem:[%s8315_s0 + $0x294] ss:$8 sps:$4 sm:$0xff]  }
 0x269   :  { %v1832_v54 = vpop.f32.mrf.mxu1  ;;  %2023 = vmatmul.mubr.bf16.gmra.mxu1 %v5403_v31  ;;  %v3370_v25 = vpop.f32.mrf.mxu0  ;;  %3561 = vmatmul.mubr.bf16.gmra.mxu0 %v4825_v44  ;;  %v2305_v52 = vld [vmem:[%s8315_s0 + $0x2d0] sm:$0xff] }
 0x26a   :  { %v4183_v3 = vmax.f32 %v4055_v34, 0.0  ;;  %v3923_v5 = vmul.f32 %v6750_v6, %v3790_v62  ;;  %v1833_v55 = vadd.f32 %v1832_v54, %v8414_v39  ;;  %4699 = vmatprep.mubr.msk.bf16.mxu1 %vm844_vm0, %v5404_v58  ;;  %4927 = vmatprep.mubr.msk.bf16.mxu0 %vm844_vm0, %v5316_v40  ;;  %v2306_v34 = vld [vmem:[%s8315_s0 + $0x2d8] sm:$0xff] }
 0x26b   :  { %v1834_v42 = vpop.f32.mrf.mxu1  ;;  %v3372_v35 = vpop.f32.mrf.mxu0 }
 0x26c   :  { %4311 = vst.msk [vmem:[%s8317_s3 + $0xe0] sm:$0xff] %vm844_vm0, %v4183_v3  ;;  %v4056_v26 = vadd.f32 %v6755_v9, %v3923_v5  ;;  %v3791_v51 = vadd.f32 %v3370_v25, %v1833_v55  ;;  %v4829_v5 = vcombine.low %v2305_v52, %v2306_v34 }
 0x26d   :  { %v1835_v1 = vpop.f32.mrf.mxu1  ;;  %v3373_v56 = vpop.f32.mrf.mxu0 }
 0x26e   :  { %v4184_v8 = vmax.f32 %v4056_v26, 0.0  ;;  %v3924_v23 = vmul.f32 %v6750_v6, %v3791_v51  ;;  %v1836_v30 = vadd.f32 %v1835_v1, %v6435_v15  ;;  %v5407_v1 = vld [vmem:[%s8315_s0 + $0x290] ss:$8 sps:$4 sm:$0xff]  }
 0x26f   :  { %v1837_v46 = vpop.f32.mrf.mxu1  ;;  %v3375_v13 = vpop.f32.mrf.mxu0 }
 0x270   :  { %4312 = vst.msk [vmem:[%s8317_s3 + $0xe8] sm:$0xff] %vm844_vm0, %v4184_v8  ;;  %v4057_v53 = vadd.f32 %v6755_v9, %v3924_v23  ;;  %v3792_v44 = vadd.f32 %v3373_v56, %v1836_v30  ;;  %v5408_v23 = vld [vmem:[%s8315_s0 + $0x2a4] ss:$8 sps:$4 sm:$0xff]  }
 0x271   :  { %v1840_v60 = vpop.f32.mrf.mxu1  ;;  %2031 = vmatmul.mubr.bf16.gmra.mxu1 %v5405_v48  ;;  %v3378_v15 = vpop.f32.mrf.mxu0  ;;  %3569 = vmatmul.mubr.bf16.gmra.mxu0 %v4827_v47  ;;  %v2307_v30 = vld [vmem:[%s8315_s0 + $0x2e0] sm:$0xff] }
 0x272   :  { %v4185_v17 = vmax.f32 %v4057_v53, 0.0  ;;  %v3925_v43 = vmul.f32 %v6750_v6, %v3792_v44  ;;  %v1841_v40 = vadd.f32 %v1840_v60, %v6445_v21  ;;  %4700 = vmatprep.mubr.msk.bf16.mxu1 %vm844_vm0, %v5406_v20  ;;  %4928 = vmatprep.mubr.msk.bf16.mxu0 %vm844_vm0, %v5318_v33  ;;  %v2308_v33 = vld [vmem:[%s8315_s0 + $0x2e8] sm:$0xff] }
 0x273   :  { %v1842_v62 = vpop.f32.mrf.mxu1  ;;  %v3380_v54 = vpop.f32.mrf.mxu0  ;;  %v4831_v48 = vcombine.low %v2307_v30, %v2308_v33  ;;  %v5413_v33 = vld [vmem:[%s8315_s0 + $0x2b0] ss:$8 sps:$4 sm:$0xff]  }
 0x274   :  { %4313 = vst.msk [vmem:[%s8317_s3 + $0xf0] sm:$0xff] %vm844_vm0, %v4185_v17  ;;  %v4058_v21 = vadd.f32 %v6755_v9, %v3925_v43  ;;  %v3793_v31 = vadd.f32 %v3378_v15, %v1841_v40  ;;  %v5322_v40 = vld [vmem:[%s8315_s0 + $0x2f4] ss:$8 sps:$4 sm:$0xff]  }
 0x275   :  { %v1843_v25 = vpop.f32.mrf.mxu1  ;;  %v3381_v3 = vpop.f32.mrf.mxu0 }
 0x276   :  { %v4186_v39 = vmax.f32 %v4058_v21, 0.0  ;;  %v3926_v55 = vmul.f32 %v6750_v6, %v3793_v31  ;;  %v1844_v58 = vadd.f32 %v1843_v25, %v6453_v38  ;;  %v5409_v21 = vld [vmem:[%s8315_s0 + $0x2a0] ss:$8 sps:$4 sm:$0xff]  }
 0x277   :  { %v1845_v49 = vpop.f32.mrf.mxu1  ;;  %v3383_v42 = vpop.f32.mrf.mxu0 }
 0x278   :  { %4314 = vst.msk [vmem:[%s8317_s3 + $0xf8] sm:$0xff] %vm844_vm0, %v4186_v39  ;;  %v4059_v35 = vadd.f32 %v6755_v9, %v3926_v55  ;;  %v3794_v26 = vadd.f32 %v3381_v3, %v1844_v58  ;;  %v2309_v39 = vld [vmem:[%s8315_s0 + $0x2f0] sm:$0xff]  ;;  %v2310_v55 = vld [vmem:[%s8315_s0 + $0x2f8] sm:$0xff] }
 0x279   :  { %v1848_v51 = vpop.f32.mrf.mxu1  ;;  %2039 = vmatmul.mubr.bf16.gmra.mxu1 %v5407_v1  ;;  %v3386_v38 = vpop.f32.mrf.mxu0  ;;  %3577 = vmatmul.mubr.bf16.gmra.mxu0 %v4829_v5  ;;  %v5410_v5 = vld [vmem:[%s8315_s0 + $0x2b4] ss:$8 sps:$4 sm:$0xff]  }
 0x27a   :  { %v4187_v56 = vmax.f32 %v4059_v35, 0.0  ;;  %v3927_v47 = vmul.f32 %v6750_v6, %v3794_v26  ;;  %v1849_v8 = vadd.f32 %v1848_v51, %v6463_v36  ;;  %4701 = vmatprep.mubr.msk.bf16.mxu1 %vm844_vm0, %v5408_v23  ;;  %4929 = vmatprep.mubr.msk.bf16.mxu0 %vm844_vm0, %v5320_v11  ;;  %v4833_v35 = vcombine.low %v2309_v39, %v2310_v55  ;;  %v7310_v51 = vld [vmem:[%s8316_s2] ss:$0 sm:$0xff] }
 0x27b   :  { %v1850_v46 = vpop.f32.mrf.mxu1  ;;  %v3388_v13 = vpop.f32.mrf.mxu0  ;;  %v5415_v39 = vld [vmem:[%s8315_s0 + $0x2c0] ss:$8 sps:$4 sm:$0xff]  }
 0x27c   :  { %4315 = vst.msk [vmem:[%s8317_s3 + $0x100] sm:$0xff] %vm844_vm0, %v4187_v56  ;;  %v4060_v36 = vadd.f32 %v6755_v9, %v3927_v47  ;;  %v3795_v53 = vadd.f32 %v3386_v38, %v1849_v8  ;;  %v5324_v56 = vld [vmem:[%s8315_s0 + $0x304] ss:$8 sps:$4 sm:$0xff]   ;;  %v7324_v8 = vld [vmem:[%s8316_s2 + $0x1] ss:$0 sm:$0xff] }
 0x27d   :  { %v1851_v44 = vpop.f32.mrf.mxu1  ;;  %v3389_v60 = vpop.f32.mrf.mxu0 }
 0x27e   :  { %v4188_v15 = vmax.f32 %v4060_v36, 0.0  ;;  %v3928_v17 = vmul.f32 %v6750_v6, %v3795_v53  ;;  %v1852_v43 = vadd.f32 %v1851_v44, %v6471_v28  ;;  %v5414_v44 = vld [vmem:[%s8315_s0 + $0x2c4] ss:$8 sps:$4 sm:$0xff]  }
 0x27f   :  { %v1853_v20 = vpop.f32.mrf.mxu1  ;;  %v3391_v52 = vpop.f32.mrf.mxu0 }
 0x280   :  { %4316 = vst.msk [vmem:[%s8317_s3 + $0x108] sm:$0xff] %vm844_vm0, %v4188_v15  ;;  %v4061_v34 = vadd.f32 %v6755_v9, %v3928_v17  ;;  %v3796_v62 = vadd.f32 %v3389_v60, %v1852_v43  ;;  %v2311_v60 = vld [vmem:[%s8315_s0 + $0x300] sm:$0xff] }
 0x281   :  { %v1856_v54 = vpop.f32.mrf.mxu1  ;;  %2047 = vmatmul.mubr.bf16.gmra.mxu1 %v5409_v21  ;;  %v3394_v28 = vpop.f32.mrf.mxu0  ;;  %3585 = vmatmul.mubr.bf16.gmra.mxu0 %v4831_v48  ;;  %v2312_v48 = vld [vmem:[%s8315_s0 + $0x308] sm:$0xff]  ;;  %v5326_v21 = vld [vmem:[%s8315_s0 + $0x314] ss:$8 sps:$4 sm:$0xff]  }
 0x282   :  { %v4189_v31 = vmax.f32 %v4061_v34, 0.0  ;;  %v3929_v25 = vmul.f32 %v6750_v6, %v3796_v62  ;;  %v1857_v3 = vadd.f32 %v1856_v54, %v6481_v59  ;;  %4702 = vmatprep.mubr.msk.bf16.mxu1 %vm844_vm0, %v5410_v5  ;;  %4930 = vmatprep.mubr.msk.bf16.mxu0 %vm844_vm0, %v5322_v40  ;;  %v4835_v52 = vcombine.low %v2311_v60, %v2312_v48 }
 0x283   :  { %v1858_v58 = vpop.f32.mrf.mxu1  ;;  %v3396_v6 = vpop.f32.mrf.mxu0 }
 0x284   :  { %4317 = vst.msk [vmem:[%s8317_s3 + $0x110] sm:$0xff] %vm844_vm0, %v4189_v31  ;;  %v4062_v59 = vadd.f32 %v6755_v9, %v3929_v25  ;;  %v3797_v11 = vadd.f32 %v3394_v28, %v1857_v3 }
 0x285   :  { %v1859_v49 = vpop.f32.mrf.mxu1  ;;  %v3397_v42 = vpop.f32.mrf.mxu0 }
 0x286   :  { %v4190_v26 = vmax.f32 %v4062_v59, 0.0  ;;  %v3930_v1 = vmul.f32 %v7310_v51, %v3797_v11  ;;  %v1860_v38 = vadd.f32 %v1859_v49, %v6489_v19  ;;  %v5416_v59 = vld [vmem:[%s8315_s0 + $0x2d4] ss:$8 sps:$4 sm:$0xff]  }
 0x287   :  { %v1861_v47 = vpop.f32.mrf.mxu1  ;;  %v3399_v9 = vpop.f32.mrf.mxu0  ;;  %v2313_v11 = vld [vmem:[%s8315_s0 + $0x310] sm:$0xff]  ;;  %v2314_v49 = vld [vmem:[%s8315_s0 + $0x318] sm:$0xff] }
 0x288   :  { %4318 = vst.msk [vmem:[%s8317_s3 + $0x118] sm:$0xff] %vm844_vm0, %v4190_v26  ;;  %v4063_v23 = vadd.f32 %v7324_v8, %v3930_v1  ;;  %v3798_v30 = vadd.f32 %v3397_v42, %v1860_v38 }
 0x289   :  { %v1864_v19 = vpop.f32.mrf.mxu1  ;;  %2055 = vmatmul.mubr.bf16.gmra.mxu1 %v5413_v33  ;;  %v3402_v46 = vpop.f32.mrf.mxu0  ;;  %3593 = vmatmul.mubr.bf16.gmra.mxu0 %v4833_v35 }
 0x28a   :  { %v4191_v13 = vmax.f32 %v4063_v23, 0.0  ;;  %v3931_v36 = vmul.f32 %v7310_v51, %v3798_v30  ;;  %v1865_v53 = vadd.f32 %v1864_v19, %v6499_v63  ;;  %4703 = vmatprep.mubr.msk.bf16.mxu1 %vm844_vm0, %v5414_v44  ;;  %4931 = vmatprep.mubr.msk.bf16.mxu0 %vm844_vm0, %v5324_v56  ;;  %v4837_v56 = vcombine.low %v2313_v11, %v2314_v49  ;;  %v5328_v30 = vld [vmem:[%s8315_s0 + $0x324] ss:$8 sps:$4 sm:$0xff]   ;;  %v5420_v11 = vld [vmem:[%s8315_s0 + $0x2f4] ss:$8 sps:$4 sm:$0xff]  }
 0x28b   :  { %v1866_v15 = vpop.f32.mrf.mxu1  ;;  %v3404_v17 = vpop.f32.mrf.mxu0  ;;  %v2317_v49 = vld [vmem:[%s8315_s0 + $0x330] sm:$0xff] }
 0x28c   :  { %4319 = vst.msk [vmem:[%s8317_s3 + $0x120] sm:$0xff] %vm844_vm0, %v4191_v13  ;;  %v4064_v63 = vadd.f32 %v7324_v8, %v3931_v36  ;;  %v3799_v43 = vadd.f32 %v3402_v46, %v1865_v53  ;;  %v5417_v53 = vld [vmem:[%s8315_s0 + $0x2d0] ss:$8 sps:$4 sm:$0xff]   ;;  %v5418_v15 = vld [vmem:[%s8315_s0 + $0x2e4] ss:$8 sps:$4 sm:$0xff]  }
 0x28d   :  { %v1867_v40 = vpop.f32.mrf.mxu1  ;;  %v3405_v20 = vpop.f32.mrf.mxu0  ;;  %v2315_v17 = vld [vmem:[%s8315_s0 + $0x320] sm:$0xff] }
 0x28e   :  { %v4192_v34 = vmax.f32 %v4064_v63, 0.0  ;;  %v3932_v62 = vmul.f32 %v7310_v51, %v3799_v43  ;;  %v1868_v54 = vadd.f32 %v1867_v40, %v6507_v50  ;;  %v2316_v63 = vld [vmem:[%s8315_s0 + $0x328] sm:$0xff] }
 0x28f   :  { %v1869_v28 = vpop.f32.mrf.mxu1  ;;  %v3407_v31 = vpop.f32.mrf.mxu0 }
 0x290   :  { %4320 = vst.msk [vmem:[%s8317_s3 + $0x128] sm:$0xff] %vm844_vm0, %v4192_v34  ;;  %v4065_v25 = vadd.f32 %v7324_v8, %v3932_v62  ;;  %v3800_v3 = vadd.f32 %v3405_v20, %v1868_v54  ;;  %v4839_v62 = vcombine.low %v2315_v17, %v2316_v63  ;;  %v5330_v31 = vld [vmem:[%s8315_s0 + $0x334] ss:$8 sps:$4 sm:$0xff]   ;;  %v2320_v17 = vld [vmem:[%s8315_s0 + $0x348] sm:$0xff] }
 0x291   :  { %v1872_v5 = vpop.f32.mrf.mxu1  ;;  %2063 = vmatmul.mubr.bf16.gmra.mxu1 %v5415_v39  ;;  %v3410_v50 = vpop.f32.mrf.mxu0  ;;  %3601 = vmatmul.mubr.bf16.gmra.mxu0 %v4835_v52 }
 0x292   :  { %v4193_v55 = vmax.f32 %v4065_v25, 0.0  ;;  %v3933_v58 = vmul.f32 %v7310_v51, %v3800_v3  ;;  %v1873_v6 = vadd.f32 %v1872_v5, %v6517_v4  ;;  %4704 = vmatprep.mubr.msk.bf16.mxu1 %vm844_vm0, %v5416_v59  ;;  %4932 = vmatprep.mubr.msk.bf16.mxu0 %vm844_vm0, %v5326_v21 }
 0x293   :  { %v1874_v42 = vpop.f32.mrf.mxu1  ;;  %v3412_v35 = vpop.f32.mrf.mxu0 }
 0x294   :  { %4321 = vst.msk [vmem:[%s8317_s3 + $0x130] sm:$0xff] %vm844_vm0, %v4193_v55  ;;  %v4066_v4 = vadd.f32 %v7324_v8, %v3933_v58  ;;  %v3801_v26 = vadd.f32 %v3410_v50, %v1873_v6  ;;  %v5419_v55 = vld [vmem:[%s8315_s0 + $0x2e0] ss:$8 sps:$4 sm:$0xff]   ;;  %v2318_v42 = vld [vmem:[%s8315_s0 + $0x338] sm:$0xff] }
 0x295   :  { %v1875_v1 = vpop.f32.mrf.mxu1  ;;  %v3413_v38 = vpop.f32.mrf.mxu0 }
 0x296   :  { %v4194_v47 = vmax.f32 %v4066_v4, 0.0  ;;  %v3934_v9 = vmul.f32 %v7310_v51, %v3801_v26  ;;  %v1876_v23 = vadd.f32 %v1875_v1, %v6525_v57 }
 0x297   :  { %v1877_v19 = vpop.f32.mrf.mxu1  ;;  %v3415_v33 = vpop.f32.mrf.mxu0 }
 0x298   :  { %4322 = vst.msk [vmem:[%s8317_s3 + $0x138] sm:$0xff] %vm844_vm0, %v4194_v47  ;;  %v4067_v46 = vadd.f32 %v7324_v8, %v3934_v9  ;;  %v3802_v13 = vadd.f32 %v3413_v38, %v1876_v23 }
 0x299   :  { %v1880_v36 = vpop.f32.mrf.mxu1  ;;  %2071 = vmatmul.mubr.bf16.gmra.mxu1 %v5417_v53  ;;  %v3418_v57 = vpop.f32.mrf.mxu0  ;;  %3609 = vmatmul.mubr.bf16.gmra.mxu0 %v4837_v56  ;;  %v4841_v56 = vcombine.low %v2317_v49, %v2318_v42  ;;  %v5421_v53 = vld [vmem:[%s8315_s0 + $0x2f0] ss:$8 sps:$4 sm:$0xff]  }
 0x29a   :  { %v4195_v44 = vmax.f32 %v4067_v46, 0.0  ;;  %v3935_v60 = vmul.f32 %v7310_v51, %v3802_v13  ;;  %v1881_v48 = vadd.f32 %v1880_v36, %v6535_v10  ;;  %4705 = vmatprep.mubr.msk.bf16.mxu1 %vm844_vm0, %v5418_v15  ;;  %4933 = vmatprep.mubr.msk.bf16.mxu0 %vm844_vm0, %v5328_v30  ;;  %v5332_v30 = vld [vmem:[%s8315_s0 + $0x344] ss:$8 sps:$4 sm:$0xff]  }
 0x29b   :  { %v1882_v43 = vpop.f32.mrf.mxu1  ;;  %v3420_v40 = vpop.f32.mrf.mxu0  ;;  %v2319_v15 = vld [vmem:[%s8315_s0 + $0x340] sm:$0xff] }
 0x29c   :  { %4323 = vst.msk [vmem:[%s8317_s3 + $0x140] sm:$0xff] %vm844_vm0, %v4195_v44  ;;  %v4068_v10 = vadd.f32 %v7324_v8, %v3935_v60  ;;  %v3803_v20 = vadd.f32 %v3418_v57, %v1881_v48  ;;  %v5422_v48 = vld [vmem:[%s8315_s0 + $0x304] ss:$8 sps:$4 sm:$0xff]  }
 0x29d   :  { %v1883_v52 = vpop.f32.mrf.mxu1  ;;  %v3421_v34 = vpop.f32.mrf.mxu0 }
 0x29e   :  { %v4196_v54 = vmax.f32 %v4068_v10, 0.0  ;;  %v3936_v21 = vmul.f32 %v7310_v51, %v3803_v20  ;;  %v1884_v28 = vadd.f32 %v1883_v52, %v6543_v61  ;;  %v4843_v52 = vcombine.low %v2319_v15, %v2320_v17 }
 0x29f   :  { %v1885_v25 = vpop.f32.mrf.mxu1  ;;  %v3423_v3 = vpop.f32.mrf.mxu0 }
 0x2a0   :  { %4324 = vst.msk [vmem:[%s8317_s3 + $0x148] sm:$0xff] %vm844_vm0, %v4196_v54  ;;  %v4069_v5 = vadd.f32 %v7324_v8, %v3936_v21  ;;  %v3804_v39 = vadd.f32 %v3421_v34, %v1884_v28  ;;  %v5334_v21 = vld [vmem:[%s8315_s0 + $0x354] ss:$8 sps:$4 sm:$0xff]  }
 0x2a1   :  { %v1888_v50 = vpop.f32.mrf.mxu1  ;;  %2079 = vmatmul.mubr.bf16.gmra.mxu1 %v5419_v55  ;;  %v3426_v61 = vpop.f32.mrf.mxu0  ;;  %3617 = vmatmul.mubr.bf16.gmra.mxu0 %v4839_v62 }
 0x2a2   :  { %v4197_v58 = vmax.f32 %v4069_v5, 0.0  ;;  %v3937_v6 = vmul.f32 %v7310_v51, %v3804_v39  ;;  %v1889_v59 = vadd.f32 %v1888_v50, %v6553_v14  ;;  %4706 = vmatprep.mubr.msk.bf16.mxu1 %vm844_vm0, %v5420_v11  ;;  %4934 = vmatprep.mubr.msk.bf16.mxu0 %vm844_vm0, %v5330_v31  ;;  %v5423_v39 = vld [vmem:[%s8315_s0 + $0x300] ss:$8 sps:$4 sm:$0xff]  }
 0x2a3   :  { %v1890_v35 = vpop.f32.mrf.mxu1  ;;  %v3428_v4 = vpop.f32.mrf.mxu0 }
 0x2a4   :  { %4325 = vst.msk [vmem:[%s8317_s3 + $0x150] sm:$0xff] %vm844_vm0, %v4197_v58  ;;  %v4070_v14 = vadd.f32 %v7324_v8, %v3937_v6  ;;  %v3805_v26 = vadd.f32 %v3426_v61, %v1889_v59  ;;  %v5424_v58 = vld [vmem:[%s8315_s0 + $0x314] ss:$8 sps:$4 sm:$0xff]  }
 0x2a5   :  { %v1891_v1 = vpop.f32.mrf.mxu1  ;;  %v3429_v38 = vpop.f32.mrf.mxu0  ;;  %v2321_v6 = vld [vmem:[%s8315_s0 + $0x350] sm:$0xff]  ;;  %v2322_v59 = vld [vmem:[%s8315_s0 + $0x358] sm:$0xff] }
 0x2a6   :  { %v4198_v47 = vmax.f32 %v4070_v14, 0.0  ;;  %v3938_v9 = vmul.f32 %v7310_v51, %v3805_v26  ;;  %v1892_v23 = vadd.f32 %v1891_v1, %v6561_v2  ;;  %v4845_v14 = vcombine.low %v2321_v6, %v2322_v59 }
 0x2a7   :  { %v1893_v19 = vpop.f32.mrf.mxu1  ;;  %v3431_v33 = vpop.f32.mrf.mxu0 }
 0x2a8   :  { %4326 = vst.msk [vmem:[%s8317_s3 + $0x158] sm:$0xff] %vm844_vm0, %v4198_v47  ;;  %v4071_v46 = vadd.f32 %v7324_v8, %v3938_v9  ;;  %v3806_v13 = vadd.f32 %v3429_v38, %v1892_v23  ;;  %v5425_v33 = vld [vmem:[%s8315_s0 + $0x310] ss:$8 sps:$4 sm:$0xff]  }
 0x2a9   :  { %v1896_v36 = vpop.f32.mrf.mxu1  ;;  %2087 = vmatmul.mubr.bf16.gmra.mxu1 %v5421_v53  ;;  %v3434_v2 = vpop.f32.mrf.mxu0  ;;  %3625 = vmatmul.mubr.bf16.gmra.mxu0 %v4841_v56  ;;  %v5336_v56 = vld [vmem:[%s8315_s0 + $0x364] ss:$8 sps:$4 sm:$0xff]  }
 0x2aa   :  { %v4199_v57 = vmax.f32 %v4071_v46, 0.0  ;;  %v3939_v44 = vmul.f32 %v7310_v51, %v3806_v13  ;;  %v1897_v60 = vadd.f32 %v1896_v36, %v6571_v18  ;;  %4707 = vmatprep.mubr.msk.bf16.mxu1 %vm844_vm0, %v5422_v48  ;;  %4935 = vmatprep.mubr.msk.bf16.mxu0 %vm844_vm0, %v5332_v30  ;;  %v5426_v53 = vld [vmem:[%s8315_s0 + $0x324] ss:$8 sps:$4 sm:$0xff]  }
 0x2ab   :  { %v1898_v63 = vpop.f32.mrf.mxu1  ;;  %v3436_v43 = vpop.f32.mrf.mxu0 }
 0x2ac   :  { %4327 = vst.msk [vmem:[%s8317_s3 + $0x160] sm:$0xff] %vm844_vm0, %v4199_v57  ;;  %v4072_v18 = vadd.f32 %v7324_v8, %v3939_v44  ;;  %v3807_v40 = vadd.f32 %v3434_v2, %v1897_v60  ;;  %v2323_v2 = vld [vmem:[%s8315_s0 + $0x360] sm:$0xff]  ;;  %v2324_v57 = vld [vmem:[%s8315_s0 + $0x368] sm:$0xff] }
 0x2ad   :  { %v1899_v10 = vpop.f32.mrf.mxu1  ;;  %v3437_v20 = vpop.f32.mrf.mxu0  ;;  %v4847_v63 = vcombine.low %v2323_v2, %v2324_v57 }
 0x2ae   :  { %v4200_v34 = vmax.f32 %v4072_v18, 0.0  ;;  %v3940_v62 = vmul.f32 %v7310_v51, %v3807_v40  ;;  %v1900_v54 = vadd.f32 %v1899_v10, %v6579_v7  ;;  %v5338_v10 = vld [vmem:[%s8315_s0 + $0x374] ss:$8 sps:$4 sm:$0xff]  }
 0x2af   :  { %v1901_v28 = vpop.f32.mrf.mxu1  ;;  %v3439_v31 = vpop.f32.mrf.mxu0 }
 0x2b0   :  { %4328 = vst.msk [vmem:[%s8317_s3 + $0x168] sm:$0xff] %vm844_vm0, %v4200_v34  ;;  %v4073_v25 = vadd.f32 %v7324_v8, %v3940_v62  ;;  %v3808_v3 = vadd.f32 %v3437_v20, %v1900_v54 }
 0x2b1   :  { %v1904_v5 = vpop.f32.mrf.mxu1  ;;  %2095 = vmatmul.mubr.bf16.gmra.mxu1 %v5423_v39  ;;  %v3442_v7 = vpop.f32.mrf.mxu0  ;;  %3633 = vmatmul.mubr.bf16.gmra.mxu0 %v4843_v52  ;;  %v2326_v39 = vld [vmem:[%s8315_s0 + $0x378] sm:$0xff] }
 0x2b2   :  { %v4201_v50 = vmax.f32 %v4073_v25, 0.0  ;;  %v3941_v55 = vmul.f32 %v7310_v51, %v3808_v3  ;;  %v1905_v61 = vadd.f32 %v1904_v5, %v6589_v24  ;;  %4708 = vmatprep.mubr.msk.bf16.mxu1 %vm844_vm0, %v5424_v58  ;;  %4936 = vmatprep.mubr.msk.bf16.mxu0 %vm844_vm0, %v5334_v21  ;;  %v5427_v21 = vld [vmem:[%s8315_s0 + $0x320] ss:$8 sps:$4 sm:$0xff]   ;;  %v5428_v3 = vld [vmem:[%s8315_s0 + $0x334] ss:$8 sps:$4 sm:$0xff]  }
 0x2b3   :  { %v1906_v11 = vpop.f32.mrf.mxu1  ;;  %v3444_v49 = vpop.f32.mrf.mxu0  ;;  %v2325_v5 = vld [vmem:[%s8315_s0 + $0x370] sm:$0xff] }
 0x2b4   :  { %4329 = vst.msk [vmem:[%s8317_s3 + $0x170] sm:$0xff] %vm844_vm0, %v4201_v50  ;;  %v4074_v24 = vadd.f32 %v7324_v8, %v3941_v55  ;;  %v3809_v42 = vadd.f32 %v3442_v7, %v1905_v61  ;;  %v4849_v6 = vcombine.low %v2325_v5, %v2326_v39  ;;  %v5344_v5 = vld [vmem:[%s8315_s0 + $0x3a4] ss:$8 sps:$4 sm:$0xff]  }
 0x2b5   :  { %v1907_v35 = vpop.f32.mrf.mxu1  ;;  %v3445_v4 = vpop.f32.mrf.mxu0 }
 0x2b6   :  { %v4202_v26 = vmax.f32 %v4074_v24, 0.0  ;;  %v3942_v1 = vmul.f32 %v7310_v51, %v3809_v42  ;;  %v1908_v38 = vadd.f32 %v1907_v35, %v6597_v12  ;;  %v5340_v24 = vld [vmem:[%s8315_s0 + $0x384] ss:$8 sps:$4 sm:$0xff]  }
 0x2b7   :  { %v1909_v47 = vpop.f32.mrf.mxu1  ;;  %v3447_v9 = vpop.f32.mrf.mxu0 }
 0x2b8   :  { %4330 = vst.msk [vmem:[%s8317_s3 + $0x178] sm:$0xff] %vm844_vm0, %v4202_v26  ;;  %v4075_v23 = vadd.f32 %v7324_v8, %v3942_v1  ;;  %v3810_v30 = vadd.f32 %v3445_v4, %v1908_v38  ;;  %v5429_v1 = vld [vmem:[%s8315_s0 + $0x330] ss:$8 sps:$4 sm:$0xff]   ;;  %v5430_v9 = vld [vmem:[%s8315_s0 + $0x344] ss:$8 sps:$4 sm:$0xff]  }
 0x2b9   :  { %v1912_v19 = vpop.f32.mrf.mxu1  ;;  %2103 = vmatmul.mubr.bf16.gmra.mxu1 %v5425_v33  ;;  %v3450_v12 = vpop.f32.mrf.mxu0  ;;  %3641 = vmatmul.mubr.bf16.gmra.mxu0 %v4845_v14 }
 0x2ba   :  { %v4203_v46 = vmax.f32 %v4075_v23, 0.0  ;;  %v3943_v13 = vmul.f32 %v7310_v51, %v3810_v30  ;;  %v1913_v36 = vadd.f32 %v1912_v19, %v6607_v27  ;;  %4709 = vmatprep.mubr.msk.bf16.mxu1 %vm844_vm0, %v5426_v53  ;;  %4937 = vmatprep.mubr.msk.bf16.mxu0 %vm844_vm0, %v5336_v56  ;;  %v2327_v23 = vld [vmem:[%s8315_s0 + $0x380] sm:$0xff]  ;;  %v2328_v30 = vld [vmem:[%s8315_s0 + $0x388] sm:$0xff] }
 0x2bb   :  { %v1914_v44 = vpop.f32.mrf.mxu1  ;;  %v3452_v60 = vpop.f32.mrf.mxu0 }
 0x2bc   :  { %4331 = vst.msk [vmem:[%s8317_s3 + $0x180] sm:$0xff] %vm844_vm0, %v4203_v46  ;;  %v4076_v27 = vadd.f32 %v7324_v8, %v3943_v13  ;;  %v3811_v48 = vadd.f32 %v3450_v12, %v1913_v36  ;;  %v4851_v36 = vcombine.low %v2327_v23, %v2328_v30  ;;  %v5342_v44 = vld [vmem:[%s8315_s0 + $0x394] ss:$8 sps:$4 sm:$0xff]  }
 0x2bd   :  { %v1915_v15 = vpop.f32.mrf.mxu1  ;;  %v3453_v17 = vpop.f32.mrf.mxu0 }
 0x2be   :  { %v4204_v43 = vmax.f32 %v4076_v27, 0.0  ;;  %v3944_v18 = vmul.f32 %v7310_v51, %v3811_v48  ;;  %v1916_v40 = vadd.f32 %v1915_v15, %v6615_v16 }
 0x2bf   :  { %v1917_v20 = vpop.f32.mrf.mxu1  ;;  %v3455_v52 = vpop.f32.mrf.mxu0 }
 0x2c0   :  { %4332 = vst.msk [vmem:[%s8317_s3 + $0x188] sm:$0xff] %vm844_vm0, %v4204_v43  ;;  %v4077_v34 = vadd.f32 %v7324_v8, %v3944_v18  ;;  %v3812_v62 = vadd.f32 %v3453_v17, %v1916_v40  ;;  %v2329_v20 = vld [vmem:[%s8315_s0 + $0x390] sm:$0xff]  ;;  %v2330_v52 = vld [vmem:[%s8315_s0 + $0x398] sm:$0xff] }
 0x2c1   :  { %v1920_v54 = vpop.f32.mrf.mxu1  ;;  %2111 = vmatmul.mubr.bf16.gmra.mxu1 %v5427_v21  ;;  %v3458_v16 = vpop.f32.mrf.mxu0  ;;  %3649 = vmatmul.mubr.bf16.gmra.mxu0 %v4847_v63  ;;  %v5431_v63 = vld [vmem:[%s8315_s0 + $0x340] ss:$8 sps:$4 sm:$0xff]  }
 0x2c2   :  { %v4205_v28 = vmax.f32 %v4077_v34, 0.0  ;;  %v3945_v31 = vmul.f32 %v7310_v51, %v3812_v62  ;;  %v1921_v25 = vadd.f32 %v1920_v54, %v6625_v32  ;;  %4710 = vmatprep.mubr.msk.bf16.mxu1 %vm844_vm0, %v5428_v3  ;;  %4938 = vmatprep.mubr.msk.bf16.mxu0 %vm844_vm0, %v5338_v10  ;;  %v5432_v10 = vld [vmem:[%s8315_s0 + $0x354] ss:$8 sps:$4 sm:$0xff]  }
 0x2c3   :  { %v1922_v7 = vpop.f32.mrf.mxu1  ;;  %v3460_v50 = vpop.f32.mrf.mxu0 }
 0x2c4   :  { %4333 = vst.msk [vmem:[%s8317_s3 + $0x190] sm:$0xff] %vm844_vm0, %v4205_v28  ;;  %v4078_v32 = vadd.f32 %v7324_v8, %v3945_v31  ;;  %v3813_v55 = vadd.f32 %v3458_v16, %v1921_v25  ;;  %v4853_v28 = vcombine.low %v2329_v20, %v2330_v52  ;;  %v5348_v52 = vld [vmem:[%s8315_s0 + $0x3c4] ss:$8 sps:$4 sm:$0xff]  }
 0x2c5   :  { %v1923_v61 = vpop.f32.mrf.mxu1  ;;  %v3461_v58 = vpop.f32.mrf.mxu0 }
 0x2c6   :  { %v4206_v59 = vmax.f32 %v4078_v32, 0.0  ;;  %v3946_v11 = vmul.f32 %v7310_v51, %v3813_v55  ;;  %v1924_v49 = vadd.f32 %v1923_v61, %v6633_v22  ;;  %v5433_v61 = vld [vmem:[%s8315_s0 + $0x350] ss:$8 sps:$4 sm:$0xff]  }
 0x2c7   :  { %v1925_v42 = vpop.f32.mrf.mxu1  ;;  %v3463_v35 = vpop.f32.mrf.mxu0 }
 0x2c8   :  { %4334 = vst.msk [vmem:[%s8317_s3 + $0x198] sm:$0xff] %vm844_vm0, %v4206_v59  ;;  %v4079_v4 = vadd.f32 %v7324_v8, %v3946_v11  ;;  %v3814_v14 = vadd.f32 %v3461_v58, %v1924_v49  ;;  %v5434_v11 = vld [vmem:[%s8315_s0 + $0x364] ss:$8 sps:$4 sm:$0xff]  }
 0x2c9   :  { %v1928_v26 = vpop.f32.mrf.mxu1  ;;  %2119 = vmatmul.mubr.bf16.gmra.mxu1 %v5429_v1  ;;  %v3466_v22 = vpop.f32.mrf.mxu0  ;;  %3657 = vmatmul.mubr.bf16.gmra.mxu0 %v4849_v6  ;;  %v2331_v49 = vld [vmem:[%s8315_s0 + $0x3a0] sm:$0xff] }
 0x2ca   :  { %v4207_v38 = vmax.f32 %v4079_v4, 0.0  ;;  %v3947_v56 = vmul.f32 %v7310_v51, %v3814_v14  ;;  %v1929_v47 = vadd.f32 %v1928_v26, %v6643_v37  ;;  %4711 = vmatprep.mubr.msk.bf16.mxu1 %vm844_vm0, %v5430_v9  ;;  %4939 = vmatprep.mubr.msk.bf16.mxu0 %vm844_vm0, %v5340_v24  ;;  %v2332_v24 = vld [vmem:[%s8315_s0 + $0x3a8] sm:$0xff]  ;;  %v5346_v9 = vld [vmem:[%s8315_s0 + $0x3b4] ss:$8 sps:$4 sm:$0xff]  }
 0x2cb   :  { %v1930_v19 = vpop.f32.mrf.mxu1  ;;  %v3468_v33 = vpop.f32.mrf.mxu0  ;;  %v4855_v1 = vcombine.low %v2331_v49, %v2332_v24  ;;  %v8419_v24 = vld [vmem:[#allocation83_spill] sm:$0xff] }
 0x2cc   :  { %4335 = vst.msk [vmem:[%s8317_s3 + $0x1a0] sm:$0xff] %vm844_vm0, %v4207_v38  ;;  %v4080_v37 = vadd.f32 %v7324_v8, %v3947_v56  ;;  %v3815_v12 = vadd.f32 %v3466_v22, %v1929_v47  ;;  %v8415_v56 = vld [vmem:[#allocation75_spill] sm:$0xff] }
 0x2cd   :  { %v1931_v46 = vpop.f32.mrf.mxu1  ;;  %v3469_v13 = vpop.f32.mrf.mxu0 }
 0x2ce   :  { %v4208_v53 = vmax.f32 %v4080_v37, 0.0  ;;  %v3948_v2 = vmul.f32 %v7310_v51, %v3815_v12  ;;  %v1932_v57 = vadd.f32 %v1931_v46, %v6651_v0  ;;  %v5435_v12 = vld [vmem:[%s8315_s0 + $0x360] ss:$8 sps:$4 sm:$0xff]  }
 0x2cf   :  { %v1933_v60 = vpop.f32.mrf.mxu1  ;;  %v3471_v27 = vpop.f32.mrf.mxu0 }
 0x2d0   :  { %4336 = vst.msk [vmem:[%s8317_s3 + $0x1a8] sm:$0xff] %vm844_vm0, %v4208_v53  ;;  %v4081_v48 = vadd.f32 %v7324_v8, %v3948_v2  ;;  %v3816_v15 = vadd.f32 %v3469_v13, %v1932_v57  ;;  %v8416_v53 = vld [vmem:[#allocation77_spill] sm:$0xff] }
 0x2d1   :  { %v1936_v17 = vpop.f32.mrf.mxu1  ;;  %2127 = vmatmul.mubr.bf16.gmra.mxu1 %v5431_v63  ;;  %v3474_v0 = vpop.f32.mrf.mxu0  ;;  %3665 = vmatmul.mubr.bf16.gmra.mxu0 %v4851_v36  ;;  %v5436_v57 = vld [vmem:[%s8315_s0 + $0x374] ss:$8 sps:$4 sm:$0xff]  }
 0x2d2   :  { %v4209_v43 = vmax.f32 %v4081_v48, 0.0  ;;  %v3949_v18 = vmul.f32 %v7310_v51, %v3816_v15  ;;  %v1937_v40 = vadd.f32 %v1936_v17, %v6661_v41  ;;  %4712 = vmatprep.mubr.msk.bf16.mxu1 %vm844_vm0, %v5432_v10  ;;  %4940 = vmatprep.mubr.msk.bf16.mxu0 %vm844_vm0, %v5342_v44  ;;  %v2333_v44 = vld [vmem:[%s8315_s0 + $0x3b0] sm:$0xff]  ;;  %v2334_v60 = vld [vmem:[%s8315_s0 + $0x3b8] sm:$0xff]  ;;  %v8417_v10 = vld [vmem:[#allocation79_spill] sm:$0xff] }
 0x2d3   :  { %v1938_v34 = vpop.f32.mrf.mxu1  ;;  %v3476_v62 = vpop.f32.mrf.mxu0 }
 0x2d4   :  { %4337 = vst.msk [vmem:[%s8317_s3 + $0x1b0] sm:$0xff] %vm844_vm0, %v4209_v43  ;;  %v4082_v41 = vadd.f32 %v7324_v8, %v3949_v18  ;;  %v3817_v54 = vadd.f32 %v3474_v0, %v1937_v40  ;;  %v4857_v43 = vcombine.low %v2333_v44, %v2334_v60  ;;  %v8421_v60 = vld [vmem:[#allocation3_spill] sm:$0xff] }
 0x2d5   :  { %v1939_v21 = vpop.f32.mrf.mxu1  ;;  %v3477_v16 = vpop.f32.mrf.mxu0 }
 0x2d6   :  { %v4210_v31 = vmax.f32 %v4082_v41, 0.0  ;;  %v3950_v25 = vmul.f32 %v7310_v51, %v3817_v54  ;;  %v1940_v3 = vadd.f32 %v1939_v21, %v6669_v29 }
 0x2d7   :  { %v1941_v39 = vpop.f32.mrf.mxu1  ;;  %v3479_v7 = vpop.f32.mrf.mxu0 }
 0x2d8   :  { %4338 = vst.msk [vmem:[%s8317_s3 + $0x1b8] sm:$0xff] %vm844_vm0, %v4210_v31  ;;  %v4083_v50 = vadd.f32 %v7324_v8, %v3950_v25  ;;  %v3818_v32 = vadd.f32 %v3477_v16, %v1940_v3  ;;  %v5437_v16 = vld [vmem:[%s8315_s0 + $0x370] ss:$8 sps:$4 sm:$0xff]   ;;  %v5438_v39 = vld [vmem:[%s8315_s0 + $0x384] ss:$8 sps:$4 sm:$0xff]  }
 0x2d9   :  { %v1944_v55 = vpop.f32.mrf.mxu1  ;;  %2135 = vmatmul.mubr.bf16.gmra.mxu1 %v5433_v61  ;;  %v3482_v29 = vpop.f32.mrf.mxu0  ;;  %3673 = vmatmul.mubr.bf16.gmra.mxu0 %v4853_v28  ;;  %v8418_v3 = vld [vmem:[#allocation81_spill] sm:$0xff]  ;;  %v2335_v7 = vld [vmem:[%s8315_s0 + $0x3c0] sm:$0xff] }
 0x2da   :  { %v4211_v58 = vmax.f32 %v4083_v50, 0.0  ;;  %v3951_v6 = vmul.f32 %v7310_v51, %v3818_v32  ;;  %v1945_v59 = vadd.f32 %v1944_v55, %v6679_v45  ;;  %4713 = vmatprep.mubr.msk.bf16.mxu1 %vm844_vm0, %v5434_v11  ;;  %4941 = vmatprep.mubr.msk.bf16.mxu0 %vm844_vm0, %v5344_v5  ;;  %v2336_v50 = vld [vmem:[%s8315_s0 + $0x3c8] sm:$0xff] }
 0x2db   :  { %v1946_v42 = vpop.f32.mrf.mxu1  ;;  %v3484_v35 = vpop.f32.mrf.mxu0 }
 0x2dc   :  { %4339 = vst.msk [vmem:[%s8317_s3 + $0x1c0] sm:$0xff] %vm844_vm0, %v4211_v58  ;;  %v4084_v45 = vadd.f32 %v7324_v8, %v3951_v6  ;;  %v3819_v4 = vadd.f32 %v3482_v29, %v1945_v59  ;;  %v4859_v59 = vcombine.low %v2335_v7, %v2336_v50  ;;  %v5350_v35 = vld [vmem:[%s8315_s0 + $0x3d4] ss:$8 sps:$4 sm:$0xff]  }
 0x2dd   :  { %v1947_v14 = vpop.f32.mrf.mxu1  ;;  %v3485_v26 = vpop.f32.mrf.mxu0  ;;  %v8423_v50 = vld [vmem:[#allocation5_spill] sm:$0xff] }
 0x2de   :  { %v4212_v22 = vmax.f32 %v4084_v45, 0.0  ;;  %v3952_v38 = vmul.f32 %v7310_v51, %v3819_v4  ;;  %v1948_v47 = vadd.f32 %v1947_v14, %v8415_v56 }
 0x2df   :  { %v1949_v23 = vpop.f32.mrf.mxu1  ;;  %v3487_v30 = vpop.f32.mrf.mxu0 }
 0x2e0   :  { %4340 = vst.msk [vmem:[%s8317_s3 + $0x1c8] sm:$0xff] %vm844_vm0, %v4212_v22  ;;  %v4085_v19 = vadd.f32 %v7324_v8, %v3952_v38  ;;  %v3820_v33 = vadd.f32 %v3485_v26, %v1948_v47  ;;  %v5439_v22 = vld [vmem:[%s8315_s0 + $0x380] ss:$8 sps:$4 sm:$0xff]   ;;  %v5440_v30 = vld [vmem:[%s8315_s0 + $0x394] ss:$8 sps:$4 sm:$0xff]  }
 0x2e1   :  { %v1952_v37 = vpop.f32.mrf.mxu1  ;;  %2143 = vmatmul.mubr.bf16.gmra.mxu1 %v5435_v12  ;;  %v3490_v46 = vpop.f32.mrf.mxu0  ;;  %3681 = vmatmul.mubr.bf16.gmra.mxu0 %v4855_v1 }
 0x2e2   :  { %v4213_v13 = vmax.f32 %v4085_v19, 0.0  ;;  %v3953_v36 = vmul.f32 %v7310_v51, %v3820_v33  ;;  %v1953_v2 = vadd.f32 %v1952_v37, %v8416_v53  ;;  %4714 = vmatprep.mubr.msk.bf16.mxu1 %vm844_vm0, %v5436_v57  ;;  %4942 = vmatprep.mubr.msk.bf16.mxu0 %vm844_vm0, %v5346_v9  ;;  %v8420_v9 = vld [vmem:[#allocation2_spill] sm:$0xff]  ;;  %v2337_v19 = vld [vmem:[%s8315_s0 + $0x3d0] sm:$0xff]  ;;  %v2338_v33 = vld [vmem:[%s8315_s0 + $0x3d8] sm:$0xff] }
 0x2e3   :  { %v1954_v27 = vpop.f32.mrf.mxu1  ;;  %v3492_v48 = vpop.f32.mrf.mxu0 }
 0x2e4   :  { %4341 = vst.msk [vmem:[%s8317_s3 + $0x1d0] sm:$0xff] %vm844_vm0, %v4213_v13  ;;  %v4086_v15 = vadd.f32 %v7324_v8, %v3953_v36  ;;  %v3821_v17 = vadd.f32 %v3490_v46, %v1953_v2  ;;  %v4861_v2 = vcombine.low %v2337_v19, %v2338_v33  ;;  %v5352_v48 = vld [vmem:[%s8315_s0 + $0x3e4] ss:$8 sps:$4 sm:$0xff]  }
 0x2e5   :  { %v1955_v63 = vpop.f32.mrf.mxu1  ;;  %v3493_v0 = vpop.f32.mrf.mxu0  ;;  %v8425_v33 = vld [vmem:[#allocation7_spill] sm:$0xff] }
 0x2e6   :  { %v4214_v18 = vmax.f32 %v4086_v15, 0.0  ;;  %v3954_v40 = vmul.f32 %v7310_v51, %v3821_v17  ;;  %v1956_v20 = vadd.f32 %v1955_v63, %v8417_v10 }
 0x2e7   :  { %v1957_v34 = vpop.f32.mrf.mxu1  ;;  %v3495_v62 = vpop.f32.mrf.mxu0 }
 0x2e8   :  { %4342 = vst.msk [vmem:[%s8317_s3 + $0x1d8] sm:$0xff] %vm844_vm0, %v4214_v18  ;;  %v4087_v41 = vadd.f32 %v7324_v8, %v3954_v40  ;;  %v3822_v54 = vadd.f32 %v3493_v0, %v1956_v20  ;;  %v5441_v18 = vld [vmem:[%s8315_s0 + $0x390] ss:$8 sps:$4 sm:$0xff]   ;;  %v5442_v62 = vld [vmem:[%s8315_s0 + $0x3a4] ss:$8 sps:$4 sm:$0xff]  }
 0x2e9   :  { %v1960_v21 = vpop.f32.mrf.mxu1  ;;  %2151 = vmatmul.mubr.bf16.gmra.mxu1 %v5437_v16  ;;  %v3498_v28 = vpop.f32.mrf.mxu0  ;;  %3689 = vmatmul.mubr.bf16.gmra.mxu0 %v4857_v43 }
 0x2ea   :  { %v4215_v31 = vmax.f32 %v4087_v41, 0.0  ;;  %v3955_v25 = vmul.f32 %v7310_v51, %v3822_v54  ;;  %v1961_v5 = vadd.f32 %v1960_v21, %v8418_v3  ;;  %4715 = vmatprep.mubr.msk.bf16.mxu1 %vm844_vm0, %v5438_v39  ;;  %4943 = vmatprep.mubr.msk.bf16.mxu0 %vm844_vm0, %v5348_v52  ;;  %v8422_v52 = vld [vmem:[#allocation4_spill] sm:$0xff]  ;;  %v2339_v41 = vld [vmem:[%s8315_s0 + $0x3e0] sm:$0xff]  ;;  %v2340_v54 = vld [vmem:[%s8315_s0 + $0x3e8] sm:$0xff] }
 0x2eb   :  { %v1962_v32 = vpop.f32.mrf.mxu1  ;;  %v3500_v55 = vpop.f32.mrf.mxu0 }
 0x2ec   :  { %4343 = vst.msk [vmem:[%s8317_s3 + $0x1e0] sm:$0xff] %vm844_vm0, %v4215_v31  ;;  %v4088_v61 = vadd.f32 %v7324_v8, %v3955_v25  ;;  %v3823_v29 = vadd.f32 %v3498_v28, %v1961_v5  ;;  %v4863_v5 = vcombine.low %v2339_v41, %v2340_v54  ;;  %v5354_v55 = vld [vmem:[%s8315_s0 + $0x3f4] ss:$8 sps:$4 sm:$0xff]  }
 0x2ed   :  { %v1963_v58 = vpop.f32.mrf.mxu1  ;;  %v3501_v6 = vpop.f32.mrf.mxu0  ;;  %v8427_v54 = vld [vmem:[#allocation9_spill] sm:$0xff] }
 0x2ee   :  { %v4216_v11 = vmax.f32 %v4088_v61, 0.0  ;;  %v3956_v49 = vmul.f32 %v7310_v51, %v3823_v29  ;;  %v1964_v42 = vadd.f32 %v1963_v58, %v8419_v24 }
 0x2ef   :  { %v1965_v45 = vpop.f32.mrf.mxu1  ;;  %v3503_v4 = vpop.f32.mrf.mxu0 }
 0x2f0   :  { %4344 = vst.msk [vmem:[%s8317_s3 + $0x1e8] sm:$0xff] %vm844_vm0, %v4216_v11  ;;  %v4089_v14 = vadd.f32 %v7324_v8, %v3956_v49  ;;  %v3824_v26 = vadd.f32 %v3501_v6, %v1964_v42  ;;  %v5443_v11 = vld [vmem:[%s8315_s0 + $0x3a0] ss:$8 sps:$4 sm:$0xff]   ;;  %v5444_v4 = vld [vmem:[%s8315_s0 + $0x3b4] ss:$8 sps:$4 sm:$0xff]  }
 0x2f1   :  { %v1968_v1 = vpop.f32.mrf.mxu1  ;;  %2159 = vmatmul.mubr.bf16.gmra.mxu1 %v5439_v22  ;;  %v3506_v38 = vpop.f32.mrf.mxu0  ;;  %3697 = vmatmul.mubr.bf16.gmra.mxu0 %v4859_v59 }
 0x2f2   :  { %v4217_v56 = vmax.f32 %v4089_v14, 0.0  ;;  %v3957_v47 = vmul.f32 %v7310_v51, %v3824_v26  ;;  %v1969_v23 = vadd.f32 %v1968_v1, %v8420_v9  ;;  %4716 = vmatprep.mubr.msk.bf16.mxu1 %vm844_vm0, %v5440_v30  ;;  %4944 = vmatprep.mubr.msk.bf16.mxu0 %vm844_vm0, %v5350_v35  ;;  %v8424_v35 = vld [vmem:[#allocation6_spill] sm:$0xff]  ;;  %v2341_v14 = vld [vmem:[%s8315_s0 + $0x3f0] sm:$0xff]  ;;  %v2342_v26 = vld [vmem:[%s8315_s0 + $0x3f8] sm:$0xff] }
 0x2f3   :  { %v1970_v37 = vpop.f32.mrf.mxu1  ;;  %v3508_v12 = vpop.f32.mrf.mxu0 }
 0x2f4   :  { %4345 = vst.msk [vmem:[%s8317_s3 + $0x1f0] sm:$0xff] %vm844_vm0, %v4217_v56  ;;  %v4090_v46 = vadd.f32 %v7324_v8, %v3957_v47  ;;  %v3825_v13 = vadd.f32 %v3506_v38, %v1969_v23  ;;  %v4865_v23 = vcombine.low %v2341_v14, %v2342_v26  ;;  %v5356_v12 = vld [vmem:[%s8315_s0 + $0x404] ss:$8 sps:$4 sm:$0xff]  }
 0x2f5   :  { %v1971_v36 = vpop.f32.mrf.mxu1  ;;  %v3509_v53 = vpop.f32.mrf.mxu0  ;;  %v8429_v26 = vld [vmem:[#allocation11_spill] sm:$0xff] }
 0x2f6   :  { %v4218_v57 = vmax.f32 %v4090_v46, 0.0  ;;  %v3958_v44 = vmul.f32 %v7310_v51, %v3825_v13  ;;  %v1972_v27 = vadd.f32 %v1971_v36, %v8421_v60 }
 0x2f7   :  { %v1973_v15 = vpop.f32.mrf.mxu1  ;;  %v3511_v17 = vpop.f32.mrf.mxu0 }
 0x2f8   :  { %4346 = vst.msk [vmem:[%s8317_s3 + $0x1f8] sm:$0xff] %vm844_vm0, %v4218_v57  ;;  %v4091_v63 = vadd.f32 %v7324_v8, %v3958_v44  ;;  %v3826_v0 = vadd.f32 %v3509_v53, %v1972_v27  ;;  %v5445_v57 = vld [vmem:[%s8315_s0 + $0x3b0] ss:$8 sps:$4 sm:$0xff]   ;;  %v5446_v17 = vld [vmem:[%s8315_s0 + $0x3c4] ss:$8 sps:$4 sm:$0xff]  }
 0x2f9   :  { %v1976_v43 = vpop.f32.mrf.mxu1  ;;  %2167 = vmatmul.mubr.bf16.gmra.mxu1 %v5441_v18  ;;  %v3514_v40 = vpop.f32.mrf.mxu0  ;;  %3705 = vmatmul.mubr.bf16.gmra.mxu0 %v4861_v2 }
 0x2fa   :  { %v4219_v10 = vmax.f32 %v4091_v63, 0.0  ;;  %v3959_v20 = vmul.f32 %v7310_v51, %v3826_v0  ;;  %v1977_v34 = vadd.f32 %v1976_v43, %v8422_v52  ;;  %4717 = vmatprep.mubr.msk.bf16.mxu1 %vm844_vm0, %v5442_v62  ;;  %4945 = vmatprep.mubr.msk.bf16.mxu0 %vm844_vm0, %v5352_v48  ;;  %v8426_v48 = vld [vmem:[#allocation8_spill] sm:$0xff]  ;;  %v2343_v63 = vld [vmem:[%s8315_s0 + $0x400] sm:$0xff]  ;;  %v2344_v0 = vld [vmem:[%s8315_s0 + $0x408] sm:$0xff] }
 0x2fb   :  { %v1978_v21 = vpop.f32.mrf.mxu1  ;;  %v3516_v16 = vpop.f32.mrf.mxu0 }
 0x2fc   :  { %4347 = vst.msk [vmem:[%s8317_s3 + $0x200] sm:$0xff] %vm844_vm0, %v4219_v10  ;;  %v4092_v28 = vadd.f32 %v7324_v8, %v3959_v20  ;;  %v3827_v31 = vadd.f32 %v3514_v40, %v1977_v34  ;;  %v4867_v34 = vcombine.low %v2343_v63, %v2344_v0  ;;  %v5358_v16 = vld [vmem:[%s8315_s0 + $0x414] ss:$8 sps:$4 sm:$0xff]  }
 0x2fd   :  { %v1979_v25 = vpop.f32.mrf.mxu1  ;;  %v3517_v3 = vpop.f32.mrf.mxu0  ;;  %v8431_v0 = vld [vmem:[#allocation13_spill] sm:$0xff] }
 0x2fe   :  { %v4220_v39 = vmax.f32 %v4092_v28, 0.0  ;;  %v3960_v7 = vmul.f32 %v7310_v51, %v3827_v31  ;;  %v1980_v32 = vadd.f32 %v1979_v25, %v8423_v50 }
 0x2ff   :  { %v1981_v61 = vpop.f32.mrf.mxu1  ;;  %v3519_v29 = vpop.f32.mrf.mxu0 }
 0x300   :  { %4348 = vst.msk [vmem:[%s8317_s3 + $0x208] sm:$0xff] %vm844_vm0, %v4220_v39  ;;  %v4093_v58 = vadd.f32 %v7324_v8, %v3960_v7  ;;  %v3828_v6 = vadd.f32 %v3517_v3, %v1980_v32  ;;  %v5447_v39 = vld [vmem:[%s8315_s0 + $0x3c0] ss:$8 sps:$4 sm:$0xff]   ;;  %v5448_v29 = vld [vmem:[%s8315_s0 + $0x3d4] ss:$8 sps:$4 sm:$0xff]  }
 0x301   :  { %v1984_v59 = vpop.f32.mrf.mxu1  ;;  %2175 = vmatmul.mubr.bf16.gmra.mxu1 %v5443_v11  ;;  %v3522_v49 = vpop.f32.mrf.mxu0  ;;  %3713 = vmatmul.mubr.bf16.gmra.mxu0 %v4863_v5 }
 0x302   :  { %v4221_v24 = vmax.f32 %v4093_v58, 0.0  ;;  %v3961_v42 = vmul.f32 %v7310_v51, %v3828_v6  ;;  %v1985_v45 = vadd.f32 %v1984_v59, %v8424_v35  ;;  %4718 = vmatprep.mubr.msk.bf16.mxu1 %vm844_vm0, %v5444_v4  ;;  %4946 = vmatprep.mubr.msk.bf16.mxu0 %vm844_vm0, %v5354_v55  ;;  %v8428_v55 = vld [vmem:[#allocation10_spill] sm:$0xff]  ;;  %v2345_v58 = vld [vmem:[%s8315_s0 + $0x410] sm:$0xff]  ;;  %v2346_v6 = vld [vmem:[%s8315_s0 + $0x418] sm:$0xff] }
 0x303   :  { %v1986_v1 = vpop.f32.mrf.mxu1  ;;  %v3524_v22 = vpop.f32.mrf.mxu0 }
 0x304   :  { %4349 = vst.msk [vmem:[%s8317_s3 + $0x210] sm:$0xff] %vm844_vm0, %v4221_v24  ;;  %v4094_v38 = vadd.f32 %v7324_v8, %v3961_v42  ;;  %v3829_v56 = vadd.f32 %v3522_v49, %v1985_v45  ;;  %v4869_v45 = vcombine.low %v2345_v58, %v2346_v6  ;;  %v5360_v22 = vld [vmem:[%s8315_s0 + $0x424] ss:$8 sps:$4 sm:$0xff]  }
 0x305   :  { %v1987_v47 = vpop.f32.mrf.mxu1  ;;  %v3525_v9 = vpop.f32.mrf.mxu0  ;;  %v8433_v6 = vld [vmem:[#allocation15_spill] sm:$0xff] }
 0x306   :  { %v4222_v30 = vmax.f32 %v4094_v38, 0.0  ;;  %v3962_v19 = vmul.f32 %v7310_v51, %v3829_v56  ;;  %v1988_v37 = vadd.f32 %v1987_v47, %v8425_v33  ;;  %v7891_v33 = vld [vmem:[%s8316_s2] ss:$0 sm:$0xff] }
 0x307   :  { %v1989_v46 = vpop.f32.mrf.mxu1  ;;  %v3527_v13 = vpop.f32.mrf.mxu0 }
 0x308   :  { %4350 = vst.msk [vmem:[%s8317_s3 + $0x218] sm:$0xff] %vm844_vm0, %v4222_v30  ;;  %v4095_v36 = vadd.f32 %v7324_v8, %v3962_v19  ;;  %v3830_v53 = vadd.f32 %v3525_v9, %v1988_v37  ;;  %v2347_v13 = vld [vmem:[%s8315_s0 + $0x420] sm:$0xff] }
 0x309   :  { %v1992_v2 = vpop.f32.mrf.mxu1  ;;  %2183 = vmatmul.mubr.bf16.gmra.mxu1 %v5445_v57  ;;  %v3530_v44 = vpop.f32.mrf.mxu0  ;;  %3721 = vmatmul.mubr.bf16.gmra.mxu0 %v4865_v23  ;;  %v7913_v57 = vld [vmem:[%s8316_s2 + $0x1] ss:$0 sm:$0xff] }
 0x30a   :  { %v4223_v60 = vmax.f32 %v4095_v36, 0.0  ;;  %v3963_v27 = vmul.f32 %v7310_v51, %v3830_v53  ;;  %v1993_v15 = vadd.f32 %v1992_v2, %v8426_v48  ;;  %4719 = vmatprep.mubr.msk.bf16.mxu1 %vm844_vm0, %v5446_v17  ;;  %4947 = vmatprep.mubr.msk.bf16.mxu0 %vm844_vm0, %v5356_v12  ;;  %v8430_v12 = vld [vmem:[#allocation12_spill] sm:$0xff]  ;;  %v2348_v36 = vld [vmem:[%s8315_s0 + $0x428] sm:$0xff] }
 0x30b   :  { %v1994_v43 = vpop.f32.mrf.mxu1  ;;  %v3532_v18 = vpop.f32.mrf.mxu0 }
 0x30c   :  { %4351 = vst.msk [vmem:[%s8317_s3 + $0x220] sm:$0xff] %vm844_vm0, %v4223_v60  ;;  %v4096_v40 = vadd.f32 %v7324_v8, %v3963_v27  ;;  %v3831_v10 = vadd.f32 %v3530_v44, %v1993_v15  ;;  %v4871_v15 = vcombine.low %v2347_v13, %v2348_v36  ;;  %v5362_v18 = vld [vmem:[%s8315_s0 + $0x434] ss:$8 sps:$4 sm:$0xff]  }
 0x30d   :  { %v1995_v20 = vpop.f32.mrf.mxu1  ;;  %v3533_v52 = vpop.f32.mrf.mxu0 }
 0x30e   :  { %v4224_v62 = vmax.f32 %v4096_v40, 0.0  ;;  %v3964_v41 = vmul.f32 %v7310_v51, %v3831_v10  ;;  %v1996_v21 = vadd.f32 %v1995_v20, %v8427_v54 }
 0x30f   :  { %v1997_v28 = vpop.f32.mrf.mxu1  ;;  %v3535_v31 = vpop.f32.mrf.mxu0 }
 0x310   :  { %4352 = vst.msk [vmem:[%s8317_s3 + $0x228] sm:$0xff] %vm844_vm0, %v4224_v62  ;;  %v4097_v25 = vadd.f32 %v7324_v8, %v3964_v41  ;;  %v3832_v3 = vadd.f32 %v3533_v52, %v1996_v21  ;;  %v5453_v62 = vld [vmem:[%s8315_s0 + $0x3e0] ss:$8 sps:$4 sm:$0xff]   ;;  %v5454_v31 = vld [vmem:[%s8315_s0 + $0x3f4] ss:$8 sps:$4 sm:$0xff]  }
 0x311   :  { %v2000_v5 = vpop.f32.mrf.mxu1  ;;  %2191 = vmatmul.mubr.bf16.gmra.mxu1 %v5447_v39  ;;  %v3538_v7 = vpop.f32.mrf.mxu0  ;;  %3729 = vmatmul.mubr.bf16.gmra.mxu0 %v4867_v34 }
 0x312   :  { %v4225_v50 = vmax.f32 %v4097_v25, 0.0  ;;  %v3965_v32 = vmul.f32 %v7310_v51, %v3832_v3  ;;  %v2001_v61 = vadd.f32 %v2000_v5, %v8428_v55  ;;  %4720 = vmatprep.mubr.msk.bf16.mxu1 %vm844_vm0, %v5448_v29  ;;  %4948 = vmatprep.mubr.msk.bf16.mxu0 %vm844_vm0, %v5358_v16  ;;  %v8432_v16 = vld [vmem:[#allocation14_spill] sm:$0xff]  ;;  %v2349_v25 = vld [vmem:[%s8315_s0 + $0x430] sm:$0xff]  ;;  %v2350_v3 = vld [vmem:[%s8315_s0 + $0x438] sm:$0xff] }
 0x313   :  { %v2002_v59 = vpop.f32.mrf.mxu1  ;;  %v3540_v11 = vpop.f32.mrf.mxu0 }
 0x314   :  { %4353 = vst.msk [vmem:[%s8317_s3 + $0x230] sm:$0xff] %vm844_vm0, %v4225_v50  ;;  %v4098_v49 = vadd.f32 %v7324_v8, %v3965_v32  ;;  %v3833_v24 = vadd.f32 %v3538_v7, %v2001_v61  ;;  %v4873_v61 = vcombine.low %v2349_v25, %v2350_v3  ;;  %v8438_v25 = vld [vmem:[#allocation22_spill] sm:$0xff] }
 0x315   :  { %v2003_v42 = vpop.f32.mrf.mxu1  ;;  %v3541_v35 = vpop.f32.mrf.mxu0 }
 0x316   :  { %v4226_v4 = vmax.f32 %v4098_v49, 0.0  ;;  %v3966_v14 = vmul.f32 %v7310_v51, %v3833_v24  ;;  %v2004_v1 = vadd.f32 %v2003_v42, %v8429_v26  ;;  %v5449_v51 = vld [vmem:[%s8315_s0 + $0x3d0] ss:$8 sps:$4 sm:$0xff]  }
 0x317   :  { %v2005_v38 = vpop.f32.mrf.mxu1  ;;  %v3543_v56 = vpop.f32.mrf.mxu0 }
 0x318   :  { %4354 = vst.msk [vmem:[%s8317_s3 + $0x238] sm:$0xff] %vm844_vm0, %v4226_v4  ;;  %v4099_v47 = vadd.f32 %v7324_v8, %v3966_v14  ;;  %v3834_v9 = vadd.f32 %v3541_v35, %v2004_v1  ;;  %v5451_v8 = vld [vmem:[%s8315_s0 + $0x3e4] ss:$8 sps:$4 sm:$0xff]   ;;  %v8434_v1 = vld [vmem:[#allocation16_spill] sm:$0xff] }
 0x319   :  { %v2008_v23 = vpop.f32.mrf.mxu1  ;;  %2199 = vmatmul.mubr.bf16.gmra.mxu1 %v5449_v51  ;;  %v3546_v30 = vpop.f32.mrf.mxu0  ;;  %3737 = vmatmul.mubr.bf16.gmra.mxu0 %v4869_v45  ;;  %v5455_v45 = vld [vmem:[%s8315_s0 + $0x3f0] ss:$8 sps:$4 sm:$0xff]  }
 0x31a   :  { %v4227_v19 = vmax.f32 %v4099_v47, 0.0  ;;  %v3967_v37 = vmul.f32 %v7891_v33, %v3834_v9  ;;  %v2009_v46 = vadd.f32 %v2008_v23, %v8430_v12  ;;  %4721 = vmatprep.mubr.msk.bf16.mxu1 %vm844_vm0, %v5451_v8  ;;  %4949 = vmatprep.mubr.msk.bf16.mxu0 %vm844_vm0, %v5360_v22 }
 0x31b   :  { %v2010_v53 = vpop.f32.mrf.mxu1  ;;  %v3548_v2 = vpop.f32.mrf.mxu0 }
 0x31c   :  { %4355 = vst.msk [vmem:[%s8317_s3 + $0x240] sm:$0xff] %vm844_vm0, %v4227_v19  ;;  %v4100_v44 = vadd.f32 %v7913_v57, %v3967_v37  ;;  %v3835_v60 = vadd.f32 %v3546_v30, %v2009_v46  ;;  %v8435_v37 = vld [vmem:[#allocation17_spill] sm:$0xff] }
 0x31d   :  { %v2011_v27 = vpop.f32.mrf.mxu1  ;;  %v3549_v48 = vpop.f32.mrf.mxu0 }
 0x31e   :  { %v4228_v17 = vmax.f32 %v4100_v44, 0.0  ;;  %v3968_v63 = vmul.f32 %v7891_v33, %v3835_v60  ;;  %v2012_v43 = vadd.f32 %v2011_v27, %v8431_v0  ;;  %v8436_v27 = vld [vmem:[#allocation18_spill] sm:$0xff] }
 0x31f   :  { %v2013_v40 = vpop.f32.mrf.mxu1  ;;  %v3551_v10 = vpop.f32.mrf.mxu0 }
 0x320   :  { %4356 = vst.msk [vmem:[%s8317_s3 + $0x248] sm:$0xff] %vm844_vm0, %v4228_v17  ;;  %v4101_v20 = vadd.f32 %v7913_v57, %v3968_v63  ;;  %v3836_v52 = vadd.f32 %v3549_v48, %v2012_v43 }
 0x321   :  { %v2016_v34 = vpop.f32.mrf.mxu1  ;;  %2207 = vmatmul.mubr.bf16.gmra.mxu1 %v5453_v62  ;;  %v3554_v41 = vpop.f32.mrf.mxu0  ;;  %3745 = vmatmul.mubr.bf16.gmra.mxu0 %v4871_v15 }
 0x322   :  { %v4229_v54 = vmax.f32 %v4101_v20, 0.0  ;;  %v3969_v21 = vmul.f32 %v7891_v33, %v3836_v52  ;;  %v2017_v28 = vadd.f32 %v2016_v34, %v8432_v16  ;;  %4722 = vmatprep.mubr.msk.bf16.mxu1 %vm844_vm0, %v5454_v31  ;;  %4950 = vmatprep.mubr.msk.bf16.mxu0 %vm844_vm0, %v5362_v18  ;;  %v8437_v20 = vld [vmem:[#allocation20_spill] sm:$0xff] }
 0x323   :  { %v2018_v5 = vpop.f32.mrf.mxu1  ;;  %v3556_v39 = vpop.f32.mrf.mxu0 }
 0x324   :  { %4357 = vst.msk [vmem:[%s8317_s3 + $0x250] sm:$0xff] %vm844_vm0, %v4229_v54  ;;  %v4102_v7 = vadd.f32 %v7913_v57, %v3969_v21  ;;  %v3837_v50 = vadd.f32 %v3554_v41, %v2017_v28 }
 0x325   :  { %v2019_v32 = vpop.f32.mrf.mxu1  ;;  %v3557_v55 = vpop.f32.mrf.mxu0 }
 0x326   :  { %v4230_v29 = vmax.f32 %v4102_v7, 0.0  ;;  %v3970_v58 = vmul.f32 %v7891_v33, %v3837_v50  ;;  %v2020_v59 = vadd.f32 %v2019_v32, %v8433_v6 }
 0x327   :  { %v2021_v11 = vpop.f32.mrf.mxu1  ;;  %v3559_v49 = vpop.f32.mrf.mxu0 }
 0x328   :  { %4358 = vst.msk [vmem:[%s8317_s3 + $0x258] sm:$0xff] %vm844_vm0, %v4230_v29  ;;  %v4103_v24 = vadd.f32 %v7913_v57, %v3970_v58  ;;  %v3838_v42 = vadd.f32 %v3557_v55, %v2020_v59  ;;  %v8439_v58 = vld [vmem:[#allocation24_spill] sm:$0xff] }
 0x329   :  { %v2024_v35 = vpop.f32.mrf.mxu1  ;;  %2215 = vmatmul.mubr.bf16.gmra.mxu1 %v5455_v45  ;;  %v3562_v4 = vpop.f32.mrf.mxu0  ;;  %3753 = vmatmul.mubr.bf16.gmra.mxu0 %v4873_v61 }
 0x32a   :  { %v4231_v14 = vmax.f32 %v4103_v24, 0.0  ;;  %v3971_v26 = vmul.f32 %v7891_v33, %v3838_v42  ;;  %v2025_v22 = vadd.f32 %v2024_v35, %v8434_v1 }
 0x32b   :  { %v2026_v38 = vpop.f32.mrf.mxu1  ;;  %v3564_v56 = vpop.f32.mrf.mxu0 }
 0x32c   :  { %4359 = vst.msk [vmem:[%s8317_s3 + $0x260] sm:$0xff] %vm844_vm0, %v4231_v14  ;;  %v4104_v47 = vadd.f32 %v7913_v57, %v3971_v26  ;;  %v3839_v9 = vadd.f32 %v3562_v4, %v2025_v22  ;;  %v8440_v14 = vld [vmem:[#allocation26_spill] sm:$0xff] }
 0x32d   :  { %v2027_v23 = vpop.f32.mrf.mxu1  ;;  %v3565_v51 = vpop.f32.mrf.mxu0 }
 0x32e   :  { %v4232_v30 = vmax.f32 %v4104_v47, 0.0  ;;  %v3972_v19 = vmul.f32 %v7891_v33, %v3839_v9  ;;  %v2028_v12 = vadd.f32 %v2027_v23, %v8435_v37 }
 0x32f   :  { %v2029_v46 = vpop.f32.mrf.mxu1  ;;  %v3567_v8 = vpop.f32.mrf.mxu0 }
 0x330   :  { %4360 = vst.msk [vmem:[%s8317_s3 + $0x268] sm:$0xff] %vm844_vm0, %v4232_v30  ;;  %v4105_v13 = vadd.f32 %v7913_v57, %v3972_v19  ;;  %v3840_v36 = vadd.f32 %v3565_v51, %v2028_v12  ;;  %v8441_v30 = vld [vmem:[#allocation28_spill] sm:$0xff] }
 0x331   :  { %v2032_v53 = vpop.f32.mrf.mxu1  ;;  %v3570_v2 = vpop.f32.mrf.mxu0 }
 0x332   :  { %v4233_v44 = vmax.f32 %v4105_v13, 0.0  ;;  %v3973_v60 = vmul.f32 %v7891_v33, %v3840_v36  ;;  %v2033_v48 = vadd.f32 %v2032_v53, %v8436_v27 }
 0x333   :  { %v2034_v15 = vpop.f32.mrf.mxu1  ;;  %v3572_v17 = vpop.f32.mrf.mxu0 }
 0x334   :  { %4361 = vst.msk [vmem:[%s8317_s3 + $0x270] sm:$0xff] %vm844_vm0, %v4233_v44  ;;  %v4106_v63 = vadd.f32 %v7913_v57, %v3973_v60  ;;  %v3841_v0 = vadd.f32 %v3570_v2, %v2033_v48  ;;  %v8442_v44 = vld [vmem:[#allocation30_spill] sm:$0xff] }
 0x335   :  { %v2035_v43 = vpop.f32.mrf.mxu1  ;;  %v3573_v18 = vpop.f32.mrf.mxu0 }
 0x336   :  { %v4234_v40 = vmax.f32 %v4106_v63, 0.0  ;;  %v3974_v10 = vmul.f32 %v7891_v33, %v3841_v0  ;;  %v2036_v52 = vadd.f32 %v2035_v43, %v8437_v20 }
 0x337   :  { %v2037_v34 = vpop.f32.mrf.mxu1  ;;  %v3575_v62 = vpop.f32.mrf.mxu0 }
 0x338   :  { %4362 = vst.msk [vmem:[%s8317_s3 + $0x278] sm:$0xff] %vm844_vm0, %v4234_v40  ;;  %v4107_v41 = vadd.f32 %v7913_v57, %v3974_v10  ;;  %v3842_v54 = vadd.f32 %v3573_v18, %v2036_v52  ;;  %v8443_v40 = vld [vmem:[#allocation32_spill] sm:$0xff] }
 0x339   :  { %v2040_v21 = vpop.f32.mrf.mxu1  ;;  %v3578_v16 = vpop.f32.mrf.mxu0 }
 0x33a   :  { %v4235_v28 = vmax.f32 %v4107_v41, 0.0  ;;  %v3975_v31 = vmul.f32 %v7891_v33, %v3842_v54  ;;  %v2041_v3 = vadd.f32 %v2040_v21, %v8438_v25 }
 0x33b   :  { %v2042_v5 = vpop.f32.mrf.mxu1  ;;  %v3580_v39 = vpop.f32.mrf.mxu0 }
 0x33c   :  { %4363 = vst.msk [vmem:[%s8317_s3 + $0x280] sm:$0xff] %vm844_vm0, %v4235_v28  ;;  %v4108_v7 = vadd.f32 %v7913_v57, %v3975_v31  ;;  %v3843_v50 = vadd.f32 %v3578_v16, %v2041_v3  ;;  %v8444_v28 = vld [vmem:[#allocation34_spill] sm:$0xff] }
 0x33d   :  { %v2043_v32 = vpop.f32.mrf.mxu1  ;;  %v3581_v55 = vpop.f32.mrf.mxu0 }
 0x33e   :  { %v4236_v61 = vmax.f32 %v4108_v7, 0.0  ;;  %v3976_v29 = vmul.f32 %v7891_v33, %v3843_v50  ;;  %v2044_v6 = vadd.f32 %v2043_v32, %v8439_v58 }
 0x33f   :  { %v2045_v59 = vpop.f32.mrf.mxu1  ;;  %v3583_v11 = vpop.f32.mrf.mxu0 }
 0x340   :  { %4364 = vst.msk [vmem:[%s8317_s3 + $0x288] sm:$0xff] %vm844_vm0, %v4236_v61  ;;  %v4109_v49 = vadd.f32 %v7913_v57, %v3976_v29  ;;  %v3844_v24 = vadd.f32 %v3581_v55, %v2044_v6  ;;  %v8445_v61 = vld [vmem:[#allocation36_spill] sm:$0xff] }
 0x341   :  { %v2048_v42 = vpop.f32.mrf.mxu1  ;;  %v3586_v35 = vpop.f32.mrf.mxu0 }
 0x342   :  { %v4237_v45 = vmax.f32 %v4109_v49, 0.0  ;;  %v3977_v4 = vmul.f32 %v7891_v33, %v3844_v24  ;;  %v2049_v26 = vadd.f32 %v2048_v42, %v8440_v14 }
 0x343   :  { %v2050_v1 = vpop.f32.mrf.mxu1  ;;  %v3588_v22 = vpop.f32.mrf.mxu0 }
 0x344   :  { %4365 = vst.msk [vmem:[%s8317_s3 + $0x290] sm:$0xff] %vm844_vm0, %v4237_v45  ;;  %v4110_v38 = vadd.f32 %v7913_v57, %v3977_v4  ;;  %v3845_v56 = vadd.f32 %v3586_v35, %v2049_v26  ;;  %v8446_v45 = vld [vmem:[#allocation38_spill] sm:$0xff] }
 0x345   :  { %v2051_v47 = vpop.f32.mrf.mxu1  ;;  %v3589_v9 = vpop.f32.mrf.mxu0 }
 0x346   :  { %v4238_v23 = vmax.f32 %v4110_v38, 0.0  ;;  %v3978_v51 = vmul.f32 %v7891_v33, %v3845_v56  ;;  %v2052_v19 = vadd.f32 %v2051_v47, %v8441_v30 }
 0x347   :  { %v2053_v37 = vpop.f32.mrf.mxu1  ;;  %v3591_v12 = vpop.f32.mrf.mxu0 }
 0x348   :  { %4366 = vst.msk [vmem:[%s8317_s3 + $0x298] sm:$0xff] %vm844_vm0, %v4238_v23  ;;  %v4111_v46 = vadd.f32 %v7913_v57, %v3978_v51  ;;  %v3846_v8 = vadd.f32 %v3589_v9, %v2052_v19  ;;  %v8447_v23 = vld [vmem:[#allocation40_spill] sm:$0xff] }
 0x349   :  { %v2056_v13 = vpop.f32.mrf.mxu1  ;;  %v3594_v36 = vpop.f32.mrf.mxu0 }
 0x34a   :  { %v4239_v53 = vmax.f32 %v4111_v46, 0.0  ;;  %v3979_v2 = vmul.f32 %v7891_v33, %v3846_v8  ;;  %v2057_v60 = vadd.f32 %v2056_v13, %v8442_v44 }
 0x34b   :  { %v2058_v27 = vpop.f32.mrf.mxu1  ;;  %v3596_v48 = vpop.f32.mrf.mxu0 }
 0x34c   :  { %4367 = vst.msk [vmem:[%s8317_s3 + $0x2a0] sm:$0xff] %vm844_vm0, %v4239_v53  ;;  %v4112_v15 = vadd.f32 %v7913_v57, %v3979_v2  ;;  %v3847_v17 = vadd.f32 %v3594_v36, %v2057_v60  ;;  %v8448_v53 = vld [vmem:[#allocation42_spill] sm:$0xff] }
 0x34d   :  { %v2059_v63 = vpop.f32.mrf.mxu1  ;;  %v3597_v0 = vpop.f32.mrf.mxu0 }
 0x34e   :  { %v4240_v43 = vmax.f32 %v4112_v15, 0.0  ;;  %v3980_v18 = vmul.f32 %v7891_v33, %v3847_v17  ;;  %v2060_v10 = vadd.f32 %v2059_v63, %v8443_v40 }
 0x34f   :  { %v2061_v20 = vpop.f32.mrf.mxu1  ;;  %v3599_v52 = vpop.f32.mrf.mxu0 }
 0x350   :  { %4368 = vst.msk [vmem:[%s8317_s3 + $0x2a8] sm:$0xff] %vm844_vm0, %v4240_v43  ;;  %v4113_v34 = vadd.f32 %v7913_v57, %v3980_v18  ;;  %v3848_v62 = vadd.f32 %v3597_v0, %v2060_v10  ;;  %v8449_v43 = vld [vmem:[#allocation44_spill] sm:$0xff] }
 0x351   :  { %v2064_v41 = vpop.f32.mrf.mxu1  ;;  %v3602_v54 = vpop.f32.mrf.mxu0 }
 0x352   :  { %v4241_v21 = vmax.f32 %v4113_v34, 0.0  ;;  %v3981_v16 = vmul.f32 %v7891_v33, %v3848_v62  ;;  %v2065_v31 = vadd.f32 %v2064_v41, %v8444_v28 }
 0x353   :  { %v2066_v25 = vpop.f32.mrf.mxu1  ;;  %v3604_v3 = vpop.f32.mrf.mxu0 }
 0x354   :  { %4369 = vst.msk [vmem:[%s8317_s3 + $0x2b0] sm:$0xff] %vm844_vm0, %v4241_v21  ;;  %v4114_v5 = vadd.f32 %v7913_v57, %v3981_v16  ;;  %v3849_v39 = vadd.f32 %v3602_v54, %v2065_v31  ;;  %v8450_v21 = vld [vmem:[#allocation46_spill] sm:$0xff] }
 0x355   :  { %v2067_v7 = vpop.f32.mrf.mxu1  ;;  %v3605_v50 = vpop.f32.mrf.mxu0 }
 0x356   :  { %v4242_v32 = vmax.f32 %v4114_v5, 0.0  ;;  %v3982_v55 = vmul.f32 %v7891_v33, %v3849_v39  ;;  %v2068_v29 = vadd.f32 %v2067_v7, %v8445_v61 }
 0x357   :  { %v2069_v58 = vpop.f32.mrf.mxu1  ;;  %v3607_v6 = vpop.f32.mrf.mxu0 }
 0x358   :  { %4370 = vst.msk [vmem:[%s8317_s3 + $0x2b8] sm:$0xff] %vm844_vm0, %v4242_v32  ;;  %v4115_v59 = vadd.f32 %v7913_v57, %v3982_v55  ;;  %v3850_v11 = vadd.f32 %v3605_v50, %v2068_v29  ;;  %v8451_v32 = vld [vmem:[#allocation47_spill] sm:$0xff] }
 0x359   :  { %v2072_v49 = vpop.f32.mrf.mxu1  ;;  %v3610_v24 = vpop.f32.mrf.mxu0 }
 0x35a   :  { %v4243_v42 = vmax.f32 %v4115_v59, 0.0  ;;  %v3983_v35 = vmul.f32 %v7891_v33, %v3850_v11  ;;  %v2073_v4 = vadd.f32 %v2072_v49, %v8446_v45 }
 0x35b   :  { %v2074_v14 = vpop.f32.mrf.mxu1  ;;  %v3612_v26 = vpop.f32.mrf.mxu0 }
 0x35c   :  { %4371 = vst.msk [vmem:[%s8317_s3 + $0x2c0] sm:$0xff] %vm844_vm0, %v4243_v42  ;;  %v4116_v1 = vadd.f32 %v7913_v57, %v3983_v35  ;;  %v3851_v22 = vadd.f32 %v3610_v24, %v2073_v4  ;;  %v8452_v42 = vld [vmem:[#allocation48_spill] sm:$0xff] }
 0x35d   :  { %v2075_v38 = vpop.f32.mrf.mxu1  ;;  %v3613_v56 = vpop.f32.mrf.mxu0 }
 0x35e   :  { %v4244_v47 = vmax.f32 %v4116_v1, 0.0  ;;  %v3984_v9 = vmul.f32 %v7891_v33, %v3851_v22  ;;  %v2076_v51 = vadd.f32 %v2075_v38, %v8447_v23 }
 0x35f   :  { %v2077_v30 = vpop.f32.mrf.mxu1  ;;  %v3615_v19 = vpop.f32.mrf.mxu0 }
 0x360   :  { %4372 = vst.msk [vmem:[%s8317_s3 + $0x2c8] sm:$0xff] %vm844_vm0, %v4244_v47  ;;  %v4117_v37 = vadd.f32 %v7913_v57, %v3984_v9  ;;  %v3852_v12 = vadd.f32 %v3613_v56, %v2076_v51  ;;  %v8453_v47 = vld [vmem:[#allocation49_spill] sm:$0xff] }
 0x361   :  { %v2080_v46 = vpop.f32.mrf.mxu1  ;;  %v3618_v8 = vpop.f32.mrf.mxu0 }
 0x362   :  { %v4245_v13 = vmax.f32 %v4117_v37, 0.0  ;;  %v3985_v36 = vmul.f32 %v7891_v33, %v3852_v12  ;;  %v2081_v2 = vadd.f32 %v2080_v46, %v8448_v53 }
 0x363   :  { %v2082_v44 = vpop.f32.mrf.mxu1  ;;  %v3620_v60 = vpop.f32.mrf.mxu0 }
 0x364   :  { %4373 = vst.msk [vmem:[%s8317_s3 + $0x2d0] sm:$0xff] %vm844_vm0, %v4245_v13  ;;  %v4118_v27 = vadd.f32 %v7913_v57, %v3985_v36  ;;  %v3853_v48 = vadd.f32 %v3618_v8, %v2081_v2  ;;  %v8454_v13 = vld [vmem:[#allocation50_spill] sm:$0xff] }
 0x365   :  { %v2083_v15 = vpop.f32.mrf.mxu1  ;;  %v3621_v17 = vpop.f32.mrf.mxu0 }
 0x366   :  { %v4246_v63 = vmax.f32 %v4118_v27, 0.0  ;;  %v3986_v0 = vmul.f32 %v7891_v33, %v3853_v48  ;;  %v2084_v18 = vadd.f32 %v2083_v15, %v8449_v43 }
 0x367   :  { %v2085_v40 = vpop.f32.mrf.mxu1  ;;  %v3623_v10 = vpop.f32.mrf.mxu0 }
 0x368   :  { %4374 = vst.msk [vmem:[%s8317_s3 + $0x2d8] sm:$0xff] %vm844_vm0, %v4246_v63  ;;  %v4119_v20 = vadd.f32 %v7913_v57, %v3986_v0  ;;  %v3854_v52 = vadd.f32 %v3621_v17, %v2084_v18  ;;  %v8455_v63 = vld [vmem:[#allocation51_spill] sm:$0xff] }
 0x369   :  { %v2088_v34 = vpop.f32.mrf.mxu1  ;;  %v3626_v62 = vpop.f32.mrf.mxu0 }
 0x36a   :  { %v4247_v41 = vmax.f32 %v4119_v20, 0.0  ;;  %v3987_v54 = vmul.f32 %v7891_v33, %v3854_v52  ;;  %v2089_v16 = vadd.f32 %v2088_v34, %v8450_v21 }
 0x36b   :  { %v2090_v28 = vpop.f32.mrf.mxu1  ;;  %v3628_v31 = vpop.f32.mrf.mxu0 }
 0x36c   :  { %4375 = vst.msk [vmem:[%s8317_s3 + $0x2e0] sm:$0xff] %vm844_vm0, %v4247_v41  ;;  %v4120_v25 = vadd.f32 %v7913_v57, %v3987_v54  ;;  %v3855_v3 = vadd.f32 %v3626_v62, %v2089_v16  ;;  %v8456_v41 = vld [vmem:[#allocation52_spill] sm:$0xff] }
 0x36d   :  { %v2091_v5 = vpop.f32.mrf.mxu1  ;;  %v3629_v39 = vpop.f32.mrf.mxu0 }
 0x36e   :  { %v4248_v7 = vmax.f32 %v4120_v25, 0.0  ;;  %v3988_v50 = vmul.f32 %v7891_v33, %v3855_v3  ;;  %v2092_v55 = vadd.f32 %v2091_v5, %v8451_v32 }
 0x36f   :  { %v2093_v61 = vpop.f32.mrf.mxu1  ;;  %v3631_v29 = vpop.f32.mrf.mxu0 }
 0x370   :  { %4376 = vst.msk [vmem:[%s8317_s3 + $0x2e8] sm:$0xff] %vm844_vm0, %v4248_v7  ;;  %v4121_v58 = vadd.f32 %v7913_v57, %v3988_v50  ;;  %v3856_v6 = vadd.f32 %v3629_v39, %v2092_v55  ;;  %v8457_v7 = vld [vmem:[#allocation53_spill] sm:$0xff] }
 0x371   :  { %v2096_v59 = vpop.f32.mrf.mxu1  ;;  %v3634_v11 = vpop.f32.mrf.mxu0 }
 0x372   :  { %v4249_v49 = vmax.f32 %v4121_v58, 0.0  ;;  %v3989_v24 = vmul.f32 %v7891_v33, %v3856_v6  ;;  %v2097_v35 = vadd.f32 %v2096_v59, %v8452_v42 }
 0x373   :  { %v2098_v45 = vpop.f32.mrf.mxu1  ;;  %v3636_v4 = vpop.f32.mrf.mxu0 }
 0x374   :  { %4377 = vst.msk [vmem:[%s8317_s3 + $0x2f0] sm:$0xff] %vm844_vm0, %v4249_v49  ;;  %v4122_v14 = vadd.f32 %v7913_v57, %v3989_v24  ;;  %v3857_v26 = vadd.f32 %v3634_v11, %v2097_v35  ;;  %v8458_v49 = vld [vmem:[#allocation54_spill] sm:$0xff] }
 0x375   :  { %v2099_v1 = vpop.f32.mrf.mxu1  ;;  %v3637_v22 = vpop.f32.mrf.mxu0 }
 0x376   :  { %v4250_v38 = vmax.f32 %v4122_v14, 0.0  ;;  %v3990_v56 = vmul.f32 %v7891_v33, %v3857_v26  ;;  %v2100_v9 = vadd.f32 %v2099_v1, %v8453_v47 }
 0x377   :  { %v2101_v23 = vpop.f32.mrf.mxu1  ;;  %v3639_v51 = vpop.f32.mrf.mxu0 }
 0x378   :  { %4378 = vst.msk [vmem:[%s8317_s3 + $0x2f8] sm:$0xff] %vm844_vm0, %v4250_v38  ;;  %v4123_v30 = vadd.f32 %v7913_v57, %v3990_v56  ;;  %v3858_v19 = vadd.f32 %v3637_v22, %v2100_v9  ;;  %v8459_v38 = vld [vmem:[#allocation55_spill] sm:$0xff] }
 0x379   :  { %v2104_v37 = vpop.f32.mrf.mxu1  ;;  %v3642_v12 = vpop.f32.mrf.mxu0 }
 0x37a   :  { %v4251_v46 = vmax.f32 %v4123_v30, 0.0  ;;  %v3991_v8 = vmul.f32 %v7891_v33, %v3858_v19  ;;  %v2105_v36 = vadd.f32 %v2104_v37, %v8454_v13 }
 0x37b   :  { %v2106_v53 = vpop.f32.mrf.mxu1  ;;  %v3644_v2 = vpop.f32.mrf.mxu0 }
 0x37c   :  { %4379 = vst.msk [vmem:[%s8317_s3 + $0x300] sm:$0xff] %vm844_vm0, %v4251_v46  ;;  %v4124_v44 = vadd.f32 %v7913_v57, %v3991_v8  ;;  %v3859_v60 = vadd.f32 %v3642_v12, %v2105_v36  ;;  %v8460_v46 = vld [vmem:[#allocation56_spill] sm:$0xff] }
 0x37d   :  { %v2107_v27 = vpop.f32.mrf.mxu1  ;;  %v3645_v48 = vpop.f32.mrf.mxu0 }
 0x37e   :  { %v4252_v15 = vmax.f32 %v4124_v44, 0.0  ;;  %v3992_v17 = vmul.f32 %v7891_v33, %v3859_v60  ;;  %v2108_v0 = vadd.f32 %v2107_v27, %v8455_v63 }
 0x37f   :  { %v2109_v43 = vpop.f32.mrf.mxu1  ;;  %v3647_v18 = vpop.f32.mrf.mxu0 }
 0x380   :  { %4380 = vst.msk [vmem:[%s8317_s3 + $0x308] sm:$0xff] %vm844_vm0, %v4252_v15  ;;  %v4125_v40 = vadd.f32 %v7913_v57, %v3992_v17  ;;  %v3860_v10 = vadd.f32 %v3645_v48, %v2108_v0  ;;  %v8461_v15 = vld [vmem:[#allocation57_spill] sm:$0xff] }
 0x381   :  { %v2112_v20 = vpop.f32.mrf.mxu1  ;;  %v3650_v52 = vpop.f32.mrf.mxu0 }
 0x382   :  { %v4253_v34 = vmax.f32 %v4125_v40, 0.0  ;;  %v3993_v62 = vmul.f32 %v7891_v33, %v3860_v10  ;;  %v2113_v54 = vadd.f32 %v2112_v20, %v8456_v41 }
 0x383   :  { %v2114_v21 = vpop.f32.mrf.mxu1  ;;  %v3652_v16 = vpop.f32.mrf.mxu0 }
 0x384   :  { %4381 = vst.msk [vmem:[%s8317_s3 + $0x310] sm:$0xff] %vm844_vm0, %v4253_v34  ;;  %v4126_v28 = vadd.f32 %v7913_v57, %v3993_v62  ;;  %v3861_v31 = vadd.f32 %v3650_v52, %v2113_v54  ;;  %v8462_v34 = vld [vmem:[#allocation58_spill] sm:$0xff] }
 0x385   :  { %v2115_v25 = vpop.f32.mrf.mxu1  ;;  %v3653_v3 = vpop.f32.mrf.mxu0 }
 0x386   :  { %v4254_v5 = vmax.f32 %v4126_v28, 0.0  ;;  %v3994_v39 = vmul.f32 %v7891_v33, %v3861_v31  ;;  %v2116_v50 = vadd.f32 %v2115_v25, %v8457_v7 }
 0x387   :  { %v2117_v32 = vpop.f32.mrf.mxu1  ;;  %v3655_v55 = vpop.f32.mrf.mxu0 }
 0x388   :  { %4382 = vst.msk [vmem:[%s8317_s3 + $0x318] sm:$0xff] %vm844_vm0, %v4254_v5  ;;  %v4127_v61 = vadd.f32 %v7913_v57, %v3994_v39  ;;  %v3862_v29 = vadd.f32 %v3653_v3, %v2116_v50  ;;  %v8463_v5 = vld [vmem:[#allocation59_spill] sm:$0xff] }
 0x389   :  { %v2120_v58 = vpop.f32.mrf.mxu1  ;;  %v3658_v6 = vpop.f32.mrf.mxu0 }
 0x38a   :  { %v4255_v59 = vmax.f32 %v4127_v61, 0.0  ;;  %v3995_v11 = vmul.f32 %v7891_v33, %v3862_v29  ;;  %v2121_v24 = vadd.f32 %v2120_v58, %v8458_v49 }
 0x38b   :  { %v2122_v42 = vpop.f32.mrf.mxu1  ;;  %v3660_v35 = vpop.f32.mrf.mxu0 }
 0x38c   :  { %4383 = vst.msk [vmem:[%s8317_s3 + $0x320] sm:$0xff] %vm844_vm0, %v4255_v59  ;;  %v4128_v45 = vadd.f32 %v7913_v57, %v3995_v11  ;;  %v3863_v4 = vadd.f32 %v3658_v6, %v2121_v24  ;;  %v8464_v59 = vld [vmem:[#allocation60_spill] sm:$0xff] }
 0x38d   :  { %v2123_v14 = vpop.f32.mrf.mxu1  ;;  %v3661_v26 = vpop.f32.mrf.mxu0 }
 0x38e   :  { %v4256_v1 = vmax.f32 %v4128_v45, 0.0  ;;  %v3996_v22 = vmul.f32 %v7891_v33, %v3863_v4  ;;  %v2124_v56 = vadd.f32 %v2123_v14, %v8459_v38 }
 0x38f   :  { %v2125_v47 = vpop.f32.mrf.mxu1  ;;  %v3663_v9 = vpop.f32.mrf.mxu0 }
 0x390   :  { %4384 = vst.msk [vmem:[%s8317_s3 + $0x328] sm:$0xff] %vm844_vm0, %v4256_v1  ;;  %v4129_v23 = vadd.f32 %v7913_v57, %v3996_v22  ;;  %v3864_v51 = vadd.f32 %v3661_v26, %v2124_v56  ;;  %v8465_v1 = vld [vmem:[#allocation61_spill] sm:$0xff] }
 0x391   :  { %v2128_v30 = vpop.f32.mrf.mxu1  ;;  %v3666_v19 = vpop.f32.mrf.mxu0 }
 0x392   :  { %v4257_v37 = vmax.f32 %v4129_v23, 0.0  ;;  %v3997_v12 = vmul.f32 %v7891_v33, %v3864_v51  ;;  %v2129_v8 = vadd.f32 %v2128_v30, %v8460_v46 }
 0x393   :  { %v2130_v13 = vpop.f32.mrf.mxu1  ;;  %v3668_v36 = vpop.f32.mrf.mxu0 }
 0x394   :  { %4385 = vst.msk [vmem:[%s8317_s3 + $0x330] sm:$0xff] %vm844_vm0, %v4257_v37  ;;  %v4130_v53 = vadd.f32 %v7913_v57, %v3997_v12  ;;  %v3865_v2 = vadd.f32 %v3666_v19, %v2129_v8  ;;  %v8466_v37 = vld [vmem:[#allocation62_spill] sm:$0xff] }
 0x395   :  { %v2131_v44 = vpop.f32.mrf.mxu1  ;;  %v3669_v60 = vpop.f32.mrf.mxu0 }
 0x396   :  { %v4258_v27 = vmax.f32 %v4130_v53, 0.0  ;;  %v3998_v48 = vmul.f32 %v7891_v33, %v3865_v2  ;;  %v2132_v17 = vadd.f32 %v2131_v44, %v8461_v15 }
 0x397   :  { %v2133_v63 = vpop.f32.mrf.mxu1  ;;  %v3671_v0 = vpop.f32.mrf.mxu0 }
 0x398   :  { %4386 = vst.msk [vmem:[%s8317_s3 + $0x338] sm:$0xff] %vm844_vm0, %v4258_v27  ;;  %v4131_v43 = vadd.f32 %v7913_v57, %v3998_v48  ;;  %v3866_v18 = vadd.f32 %v3669_v60, %v2132_v17  ;;  %v8467_v27 = vld [vmem:[#allocation63_spill] sm:$0xff] }
 0x399   :  { %v2136_v40 = vpop.f32.mrf.mxu1  ;;  %v3674_v10 = vpop.f32.mrf.mxu0 }
 0x39a   :  { %v4259_v20 = vmax.f32 %v4131_v43, 0.0  ;;  %v3999_v52 = vmul.f32 %v7891_v33, %v3866_v18  ;;  %v2137_v62 = vadd.f32 %v2136_v40, %v8462_v34 }
 0x39b   :  { %v2138_v41 = vpop.f32.mrf.mxu1  ;;  %v3676_v54 = vpop.f32.mrf.mxu0 }
 0x39c   :  { %4387 = vst.msk [vmem:[%s8317_s3 + $0x340] sm:$0xff] %vm844_vm0, %v4259_v20  ;;  %v4132_v21 = vadd.f32 %v7913_v57, %v3999_v52  ;;  %v3867_v16 = vadd.f32 %v3674_v10, %v2137_v62  ;;  %v8468_v20 = vld [vmem:[#allocation64_spill] sm:$0xff] }
 0x39d   :  { %v2139_v28 = vpop.f32.mrf.mxu1  ;;  %v3677_v31 = vpop.f32.mrf.mxu0 }
 0x39e   :  { %v4260_v25 = vmax.f32 %v4132_v21, 0.0  ;;  %v4000_v3 = vmul.f32 %v7891_v33, %v3867_v16  ;;  %v2140_v39 = vadd.f32 %v2139_v28, %v8463_v5 }
 0x39f   :  { %v2141_v7 = vpop.f32.mrf.mxu1  ;;  %v3679_v50 = vpop.f32.mrf.mxu0 }
 0x3a0   :  { %4388 = vst.msk [vmem:[%s8317_s3 + $0x348] sm:$0xff] %vm844_vm0, %v4260_v25  ;;  %v4133_v32 = vadd.f32 %v7913_v57, %v4000_v3  ;;  %v3868_v55 = vadd.f32 %v3677_v31, %v2140_v39  ;;  %v8469_v25 = vld [vmem:[#allocation65_spill] sm:$0xff] }
 0x3a1   :  { %v2144_v61 = vpop.f32.mrf.mxu1  ;;  %v3682_v29 = vpop.f32.mrf.mxu0 }
 0x3a2   :  { %v4261_v58 = vmax.f32 %v4133_v32, 0.0  ;;  %v4001_v6 = vmul.f32 %v7891_v33, %v3868_v55  ;;  %v2145_v11 = vadd.f32 %v2144_v61, %v8464_v59 }
 0x3a3   :  { %v2146_v49 = vpop.f32.mrf.mxu1  ;;  %v3684_v24 = vpop.f32.mrf.mxu0 }
 0x3a4   :  { %4389 = vst.msk [vmem:[%s8317_s3 + $0x350] sm:$0xff] %vm844_vm0, %v4261_v58  ;;  %v4134_v42 = vadd.f32 %v7913_v57, %v4001_v6  ;;  %v3869_v35 = vadd.f32 %v3682_v29, %v2145_v11  ;;  %v8470_v58 = vld [vmem:[#allocation66_spill] sm:$0xff] }
 0x3a5   :  { %v2147_v45 = vpop.f32.mrf.mxu1  ;;  %v3685_v4 = vpop.f32.mrf.mxu0 }
 0x3a6   :  { %v4262_v14 = vmax.f32 %v4134_v42, 0.0  ;;  %v4002_v26 = vmul.f32 %v7891_v33, %v3869_v35  ;;  %v2148_v22 = vadd.f32 %v2147_v45, %v8465_v1 }
 0x3a7   :  { %v2149_v38 = vpop.f32.mrf.mxu1  ;;  %v3687_v56 = vpop.f32.mrf.mxu0 }
 0x3a8   :  { %4390 = vst.msk [vmem:[%s8317_s3 + $0x358] sm:$0xff] %vm844_vm0, %v4262_v14  ;;  %v4135_v47 = vadd.f32 %v7913_v57, %v4002_v26  ;;  %v3870_v9 = vadd.f32 %v3685_v4, %v2148_v22  ;;  %v8471_v14 = vld [vmem:[#allocation67_spill] sm:$0xff] }
 0x3a9   :  { %v2152_v23 = vpop.f32.mrf.mxu1  ;;  %v3690_v51 = vpop.f32.mrf.mxu0 }
 0x3aa   :  { %v4263_v30 = vmax.f32 %v4135_v47, 0.0  ;;  %v4003_v19 = vmul.f32 %v7891_v33, %v3870_v9  ;;  %v2153_v12 = vadd.f32 %v2152_v23, %v8466_v37 }
 0x3ab   :  { %v2154_v46 = vpop.f32.mrf.mxu1  ;;  %v3692_v8 = vpop.f32.mrf.mxu0 }
 0x3ac   :  { %4391 = vst.msk [vmem:[%s8317_s3 + $0x360] sm:$0xff] %vm844_vm0, %v4263_v30  ;;  %v4136_v13 = vadd.f32 %v7913_v57, %v4003_v19  ;;  %v3871_v36 = vadd.f32 %v3690_v51, %v2153_v12  ;;  %v8472_v30 = vld [vmem:[#allocation68_spill] sm:$0xff] }
 0x3ad   :  { %v2155_v53 = vpop.f32.mrf.mxu1  ;;  %v3693_v2 = vpop.f32.mrf.mxu0 }
 0x3ae   :  { %v4264_v44 = vmax.f32 %v4136_v13, 0.0  ;;  %v4004_v60 = vmul.f32 %v7891_v33, %v3871_v36  ;;  %v2156_v48 = vadd.f32 %v2155_v53, %v8467_v27 }
 0x3af   :  { %v2157_v15 = vpop.f32.mrf.mxu1  ;;  %v3695_v17 = vpop.f32.mrf.mxu0 }
 0x3b0   :  { %4392 = vst.msk [vmem:[%s8317_s3 + $0x368] sm:$0xff] %vm844_vm0, %v4264_v44  ;;  %v4137_v63 = vadd.f32 %v7913_v57, %v4004_v60  ;;  %v3872_v0 = vadd.f32 %v3693_v2, %v2156_v48  ;;  %v8473_v44 = vld [vmem:[#allocation69_spill] sm:$0xff] }
 0x3b1   :  { %v2160_v43 = vpop.f32.mrf.mxu1  ;;  %v3698_v18 = vpop.f32.mrf.mxu0 }
 0x3b2   :  { %v4265_v40 = vmax.f32 %v4137_v63, 0.0  ;;  %v4005_v10 = vmul.f32 %v7891_v33, %v3872_v0  ;;  %v2161_v52 = vadd.f32 %v2160_v43, %v8468_v20 }
 0x3b3   :  { %v2162_v34 = vpop.f32.mrf.mxu1  ;;  %v3700_v62 = vpop.f32.mrf.mxu0 }
 0x3b4   :  { %4393 = vst.msk [vmem:[%s8317_s3 + $0x370] sm:$0xff] %vm844_vm0, %v4265_v40  ;;  %v4138_v41 = vadd.f32 %v7913_v57, %v4005_v10  ;;  %v3873_v54 = vadd.f32 %v3698_v18, %v2161_v52  ;;  %v8474_v40 = vld [vmem:[#allocation70_spill] sm:$0xff] }
 0x3b5   :  { %v2163_v21 = vpop.f32.mrf.mxu1  ;;  %v3701_v16 = vpop.f32.mrf.mxu0 }
 0x3b6   :  { %v4266_v28 = vmax.f32 %v4138_v41, 0.0  ;;  %v4006_v31 = vmul.f32 %v7891_v33, %v3873_v54  ;;  %v2164_v3 = vadd.f32 %v2163_v21, %v8469_v25 }
 0x3b7   :  { %v2165_v5 = vpop.f32.mrf.mxu1  ;;  %v3703_v39 = vpop.f32.mrf.mxu0 }
 0x3b8   :  { %4394 = vst.msk [vmem:[%s8317_s3 + $0x378] sm:$0xff] %vm844_vm0, %v4266_v28  ;;  %v4139_v7 = vadd.f32 %v7913_v57, %v4006_v31  ;;  %v3874_v50 = vadd.f32 %v3701_v16, %v2164_v3  ;;  %v8475_v28 = vld [vmem:[#allocation71_spill] sm:$0xff] }
 0x3b9   :  { %v2168_v32 = vpop.f32.mrf.mxu1  ;;  %v3706_v55 = vpop.f32.mrf.mxu0 }
 0x3ba   :  { %v4267_v61 = vmax.f32 %v4139_v7, 0.0  ;;  %v4007_v29 = vmul.f32 %v7891_v33, %v3874_v50  ;;  %v2169_v6 = vadd.f32 %v2168_v32, %v8470_v58 }
 0x3bb   :  { %v2170_v59 = vpop.f32.mrf.mxu1  ;;  %v3708_v11 = vpop.f32.mrf.mxu0 }
 0x3bc   :  { %4395 = vst.msk [vmem:[%s8317_s3 + $0x380] sm:$0xff] %vm844_vm0, %v4267_v61  ;;  %v4140_v49 = vadd.f32 %v7913_v57, %v4007_v29  ;;  %v3875_v24 = vadd.f32 %v3706_v55, %v2169_v6  ;;  %v8476_v61 = vld [vmem:[#allocation72_spill] sm:$0xff] }
 0x3bd   :  { %v2171_v42 = vpop.f32.mrf.mxu1  ;;  %v3709_v35 = vpop.f32.mrf.mxu0 }
 0x3be   :  { %v4268_v45 = vmax.f32 %v4140_v49, 0.0  ;;  %v4008_v4 = vmul.f32 %v7891_v33, %v3875_v24  ;;  %v2172_v26 = vadd.f32 %v2171_v42, %v8471_v14 }
 0x3bf   :  { %v2173_v1 = vpop.f32.mrf.mxu1  ;;  %v3711_v22 = vpop.f32.mrf.mxu0 }
 0x3c0   :  { %4396 = vst.msk [vmem:[%s8317_s3 + $0x388] sm:$0xff] %vm844_vm0, %v4268_v45  ;;  %v4141_v38 = vadd.f32 %v7913_v57, %v4008_v4  ;;  %v3876_v56 = vadd.f32 %v3709_v35, %v2172_v26  ;;  %v8477_v45 = vld [vmem:[#allocation73_spill] sm:$0xff] }
 0x3c1   :  { %v2176_v47 = vpop.f32.mrf.mxu1  ;;  %v3714_v9 = vpop.f32.mrf.mxu0 }
 0x3c2   :  { %v4269_v23 = vmax.f32 %v4141_v38, 0.0  ;;  %v4009_v51 = vmul.f32 %v7891_v33, %v3876_v56  ;;  %v2177_v19 = vadd.f32 %v2176_v47, %v8472_v30 }
 0x3c3   :  { %v2178_v37 = vpop.f32.mrf.mxu1  ;;  %v3716_v12 = vpop.f32.mrf.mxu0 }
 0x3c4   :  { %4397 = vst.msk [vmem:[%s8317_s3 + $0x390] sm:$0xff] %vm844_vm0, %v4269_v23  ;;  %v4142_v46 = vadd.f32 %v7913_v57, %v4009_v51  ;;  %v3877_v8 = vadd.f32 %v3714_v9, %v2177_v19  ;;  %v8478_v23 = vld [vmem:[#allocation74_spill] sm:$0xff] }
 0x3c5   :  { %v2179_v13 = vpop.f32.mrf.mxu1  ;;  %v3717_v36 = vpop.f32.mrf.mxu0 }
 0x3c6   :  { %v4270_v53 = vmax.f32 %v4142_v46, 0.0  ;;  %v4010_v2 = vmul.f32 %v7891_v33, %v3877_v8  ;;  %v2180_v60 = vadd.f32 %v2179_v13, %v8473_v44 }
 0x3c7   :  { %v2181_v27 = vpop.f32.mrf.mxu1  ;;  %v3719_v48 = vpop.f32.mrf.mxu0 }
 0x3c8   :  { %4398 = vst.msk [vmem:[%s8317_s3 + $0x398] sm:$0xff] %vm844_vm0, %v4270_v53  ;;  %v4143_v15 = vadd.f32 %v7913_v57, %v4010_v2  ;;  %v3878_v17 = vadd.f32 %v3717_v36, %v2180_v60  ;;  %v8479_v53 = vld [vmem:[#allocation76_spill] sm:$0xff] }
 0x3c9   :  { %v2184_v63 = vpop.f32.mrf.mxu1  ;;  %v3722_v0 = vpop.f32.mrf.mxu0 }
 0x3ca   :  { %v4271_v43 = vmax.f32 %v4143_v15, 0.0  ;;  %v4011_v18 = vmul.f32 %v7891_v33, %v3878_v17  ;;  %v2185_v10 = vadd.f32 %v2184_v63, %v8474_v40 }
 0x3cb   :  { %v2186_v20 = vpop.f32.mrf.mxu1  ;;  %v3724_v52 = vpop.f32.mrf.mxu0 }
 0x3cc   :  { %4399 = vst.msk [vmem:[%s8317_s3 + $0x3a0] sm:$0xff] %vm844_vm0, %v4271_v43  ;;  %v4144_v34 = vadd.f32 %v7913_v57, %v4011_v18  ;;  %v3879_v62 = vadd.f32 %v3722_v0, %v2185_v10  ;;  %v5456_v0 = vld [vmem:[%s8316_s2] ss:$0 sm:$0xff] }
 0x3cd   :  { %v2187_v41 = vpop.f32.mrf.mxu1  ;;  %v3725_v54 = vpop.f32.mrf.mxu0  ;;  %v8480_v43 = vld [vmem:[#allocation78_spill] sm:$0xff] }
 0x3ce   :  { %v4272_v21 = vmax.f32 %v4144_v34, 0.0  ;;  %v4012_v16 = vmul.f32 %v7891_v33, %v3879_v62  ;;  %v2188_v31 = vadd.f32 %v2187_v41, %v8475_v28 }
 0x3cf   :  { %v2189_v25 = vpop.f32.mrf.mxu1  ;;  %v3727_v3 = vpop.f32.mrf.mxu0 }
 0x3d0   :  { %4400 = vst.msk [vmem:[%s8317_s3 + $0x3a8] sm:$0xff] %vm844_vm0, %v4272_v21  ;;  %v4145_v5 = vadd.f32 %v7913_v57, %v4012_v16  ;;  %v3880_v39 = vadd.f32 %v3725_v54, %v2188_v31  ;;  %v8481_v21 = vld [vmem:[#allocation80_spill] sm:$0xff]  ;;  %v5457_v25 = vld [vmem:[%s8316_s2 + $0x1] ss:$0 sm:$0xff] }
 0x3d1   :  { %v2192_v7 = vpop.f32.mrf.mxu1  ;;  %v3730_v50 = vpop.f32.mrf.mxu0 }
 0x3d2   :  { %v4273_v32 = vmax.f32 %v4145_v5, 0.0  ;;  %v4013_v55 = vmul.f32 %v7891_v33, %v3880_v39  ;;  %v2193_v29 = vadd.f32 %v2192_v7, %v8476_v61 }
 0x3d3   :  { %v2194_v58 = vpop.f32.mrf.mxu1  ;;  %v3732_v6 = vpop.f32.mrf.mxu0 }
 0x3d4   :  { %4401 = vst.msk [vmem:[%s8317_s3 + $0x3b0] sm:$0xff] %vm844_vm0, %v4273_v32  ;;  %v4146_v59 = vadd.f32 %v7913_v57, %v4013_v55  ;;  %v3881_v11 = vadd.f32 %v3730_v50, %v2193_v29  ;;  %v8482_v32 = vld [vmem:[#allocation82_spill] sm:$0xff] }
 0x3d5   :  { %v2195_v49 = vpop.f32.mrf.mxu1  ;;  %v3733_v24 = vpop.f32.mrf.mxu0 }
 0x3d6   :  { %v4274_v42 = vmax.f32 %v4146_v59, 0.0  ;;  %v4014_v35 = vmul.f32 %v7891_v33, %v3881_v11  ;;  %v2196_v4 = vadd.f32 %v2195_v49, %v8477_v45 }
 0x3d7   :  { %v2197_v14 = vpop.f32.mrf.mxu1  ;;  %v3735_v26 = vpop.f32.mrf.mxu0 }
 0x3d8   :  { %4402 = vst.msk [vmem:[%s8317_s3 + $0x3b8] sm:$0xff] %vm844_vm0, %v4274_v42  ;;  %v4147_v1 = vadd.f32 %v7913_v57, %v4014_v35  ;;  %v3882_v22 = vadd.f32 %v3733_v24, %v2196_v4  ;;  %v8483_v42 = vld [vmem:[#allocation84_spill] sm:$0xff] }
 0x3d9   :  { %v2200_v38 = vpop.f32.mrf.mxu1  ;;  %v3738_v56 = vpop.f32.mrf.mxu0 }
 0x3da   :  { %v4275_v47 = vmax.f32 %v4147_v1, 0.0  ;;  %v4015_v9 = vmul.f32 %v7891_v33, %v3882_v22  ;;  %v2201_v51 = vadd.f32 %v2200_v38, %v8478_v23 }
 0x3db   :  { %v2202_v30 = vpop.f32.mrf.mxu1  ;;  %v3740_v19 = vpop.f32.mrf.mxu0 }
 0x3dc   :  { %4403 = vst.msk [vmem:[%s8317_s3 + $0x3c0] sm:$0xff] %vm844_vm0, %v4275_v47  ;;  %v4148_v37 = vadd.f32 %v7913_v57, %v4015_v9  ;;  %v3883_v12 = vadd.f32 %v3738_v56, %v2201_v51 }
 0x3dd   :  { %v2203_v46 = vpop.f32.mrf.mxu1  ;;  %v3741_v8 = vpop.f32.mrf.mxu0 }
 0x3de   :  { %v4276_v13 = vmax.f32 %v4148_v37, 0.0  ;;  %v4016_v36 = vmul.f32 %v7891_v33, %v3883_v12  ;;  %v2204_v2 = vadd.f32 %v2203_v46, %v8479_v53 }
 0x3df   :  { %v2205_v44 = vpop.f32.mrf.mxu1  ;;  %v3743_v60 = vpop.f32.mrf.mxu0 }
 0x3e0   :  { %4404 = vst.msk [vmem:[%s8317_s3 + $0x3c8] sm:$0xff] %vm844_vm0, %v4276_v13  ;;  %v4149_v27 = vadd.f32 %v7913_v57, %v4016_v36  ;;  %v3884_v48 = vadd.f32 %v3741_v8, %v2204_v2 }
 0x3e1   :  { %v2208_v15 = vpop.f32.mrf.mxu1  ;;  %v3746_v17 = vpop.f32.mrf.mxu0 }
 0x3e2   :  { %v4277_v63 = vmax.f32 %v4149_v27, 0.0  ;;  %v4017_v33 = vmul.f32 %v5456_v0, %v3884_v48  ;;  %v2209_v18 = vadd.f32 %v2208_v15, %v8480_v43 }
 0x3e3   :  { %v2210_v40 = vpop.f32.mrf.mxu1  ;;  %v3748_v10 = vpop.f32.mrf.mxu0 }
 0x3e4   :  { %4405 = vst.msk [vmem:[%s8317_s3 + $0x3d0] sm:$0xff] %vm844_vm0, %v4277_v63  ;;  %v4150_v20 = vadd.f32 %v7913_v57, %v4017_v33  ;;  %v3885_v52 = vadd.f32 %v3746_v17, %v2209_v18 }
 0x3e5   :  { %v2211_v34 = vpop.f32.mrf.mxu1  ;;  %v3749_v62 = vpop.f32.mrf.mxu0 }
 0x3e6   :  { %v4278_v41 = vmax.f32 %v4150_v20, 0.0  ;;  %v4018_v54 = vmul.f32 %v5456_v0, %v3885_v52  ;;  %v2212_v16 = vadd.f32 %v2211_v34, %v8481_v21 }
 0x3e7   :  { %v2213_v28 = vpop.f32.mrf.mxu1  ;;  %v3751_v31 = vpop.f32.mrf.mxu0 }
 0x3e8   :  { %4406 = vst.msk [vmem:[%s8317_s3 + $0x3d8] sm:$0xff] %vm844_vm0, %v4278_v41  ;;  %v4151_v3 = vadd.f32 %v5457_v25, %v4018_v54  ;;  %v3886_v57 = vadd.f32 %v3749_v62, %v2212_v16 }
 0x3e9   :  { %v2216_v5 = vpop.f32.mrf.mxu1  ;;  %v3754_v39 = vpop.f32.mrf.mxu0 }
 0x3ea   :  { %v4279_v7 = vmax.f32 %v4151_v3, 0.0  ;;  %v4019_v50 = vmul.f32 %v5456_v0, %v3886_v57  ;;  %v2217_v55 = vadd.f32 %v2216_v5, %v8482_v32 }
 0x3eb   :  { %v2218_v61 = vpop.f32.mrf.mxu1  ;;  %v3756_v29 = vpop.f32.mrf.mxu0 }
 0x3ec   :  { %4407 = vst.msk [vmem:[%s8317_s3 + $0x3e0] sm:$0xff] %vm844_vm0, %v4279_v7  ;;  %v4152_v58 = vadd.f32 %v5457_v25, %v4019_v50  ;;  %v3887_v6 = vadd.f32 %v3754_v39, %v2217_v55 }
 0x3ed   :  { %v2219_v59 = vpop.f32.mrf.mxu1  ;;  %v3757_v11 = vpop.f32.mrf.mxu0 }
 0x3ee   :  { %v4280_v49 = vmax.f32 %v4152_v58, 0.0  ;;  %v4020_v24 = vmul.f32 %v5456_v0, %v3887_v6  ;;  %v2220_v35 = vadd.f32 %v2219_v59, %v8483_v42 }
 0x3ef   :  { %v2221_v45 = vpop.f32.mrf.mxu1  ;;  %v3759_v4 = vpop.f32.mrf.mxu0 }
 0x3f0   :  { %4408 = vst.msk [vmem:[%s8317_s3 + $0x3e8] sm:$0xff] %vm844_vm0, %v4280_v49  ;;  %v4153_v14 = vadd.f32 %v5457_v25, %v4020_v24  ;;  %v3888_v26 = vadd.f32 %v3757_v11, %v2220_v35 }
 0x3f2   :  { %v4281_v1 = vmax.f32 %v4153_v14, 0.0  ;;  %v4021_v22 = vmul.f32 %v5456_v0, %v3888_v26 }
 0x3f4   :  { %4409 = vst.msk [vmem:[%s8317_s3 + $0x3f0] sm:$0xff] %vm844_vm0, %v4281_v1  ;;  %v4154_v38 = vadd.f32 %v5457_v25, %v4021_v22 }
 0x3f6   :  { %v4282_v56 = vmax.f32 %v4154_v38, 0.0 }
 0x3f8   :  { %4410 = vst.msk [vmem:[%s8317_s3 + $0x3f8] sm:$0xff] %vm844_vm0, %v4282_v56 }

</bundles_post_ra>
